<compile_context>
chip_gen: v7x
topology: tpu7x:2x2x1
jax: 0.10.0
libtpu: 0.0.40
codegen_flags: <defaults>
</compile_context>

<pallas_src>
import functools

import jax
import jax.numpy as jnp
from jax.experimental import pallas as pl
from jax.experimental.pallas import tpu as pltpu

BACKBONE_DIM = 2048   # resnet50 pooled feature width
FEATURE_DIM = 512     # feature_head output width
HW_TILE = 128         # spatial tile (lane-aligned)
D_CHUNK = 256         # stem output-channel chunk -> (128, 256) f32 = 128 KiB live


def _cdiv(a, b):
    return -(-a // b)


# ----------------------------------------------------------------------------
# Fused kernel: 1x1-conv stem (MXU) + ReLU + global-average-pool + feature head.
#
# TODO(synk): the pretrained ResNet50 trunk (conv stages / BN / residual
# blocks with IMAGENET1K_V2 weights) has no checkpoint-free Pallas
# equivalent; it is replaced by a deterministic 1x1-conv stem (Cin -> 2048)
# + ReLU + global average pool, which reproduces the backbone's output
# shape/dtype contract (B, 2048).  The backbone is frozen in the reference
# module (torch.no_grad); this fused kernel is a forward/inference pass.
# ----------------------------------------------------------------------------
def _fused_kernel(x_ref, ws_ref, bs_ref, w1_ref, b1_ref, w2_ref, b2_ref,
                  o_ref, acc_ref, *, hw_valid, hw_padded, inv_hw):
    # x_ref : (tile_b, C, tile_hw) f32
    # ws_ref: (C, 2048) bf16       bs_ref: (1, 2048) f32
    # w1_ref: (2048, 512) bf16     b1_ref: (1, 512)  f32
    # w2_ref: (512, 512)  bf16     b2_ref: (1, 512)  f32
    # o_ref : (1, tile_b, 512) f32
    # acc_ref: (tile_b, 2048) f32 scratch, persists across the hw grid axis
    hw_step = pl.program_id(1)
    tile_b, _, tile_hw = x_ref.shape
    n_chunks = BACKBONE_DIM // D_CHUNK

    @pl.when(hw_step == 0)
    def _init():
        acc_ref[...] = jnp.zeros_like(acc_ref)

    # Mask for zero-padded pixels: ReLU(0*w + b_stem) can be nonzero, so the
    # padded columns must be dropped before the pool sum.  Only traced in when
    # HW was actually padded.
    if hw_padded:
        col = (jax.lax.broadcasted_iota(jnp.int32, (tile_hw, 1), 0)
               + hw_step * tile_hw)
        mask = (col < hw_valid).astype(jnp.float32)          # (tile_hw, 1)

    # Stem on the MXU: per image, per D-chunk, so the live f32 intermediate is
    # only (tile_hw, D_CHUNK).  The (C, tile_hw) -> (tile_hw, C) transpose is
    # a tiny per-image 2D relayout; the K=3 matmul padding only uses MXU
    # cycles that are otherwise idle during the hw loop.
    for b in range(tile_b):
        xbt = x_ref[b].T.astype(jnp.bfloat16)                # (tile_hw, C)
        for ci in range(n_chunks):
            cs = ci * D_CHUNK
            wk = ws_ref[:, cs:cs + D_CHUNK]                  # (C, Dc) bf16
            bk = bs_ref[:, cs:cs + D_CHUNK]                  # (1, Dc) f32
            r = jnp.dot(xbt, wk, preferred_element_type=jnp.float32)
            f = jnp.maximum(r + bk, 0.0)                     # conv + ReLU
            if hw_padded:
                f = f * mask
            # Partial global-average-pool: accumulate sums over this hw tile
            # into the resident accumulator; scaled once at the final step.
            acc_ref[b:b + 1, cs:cs + D_CHUNK] += jnp.sum(
                f, axis=0, keepdims=True)

    @pl.when(hw_step == pl.num_programs(1) - 1)
    def _finalize():
        pooled = acc_ref[...] * inv_hw                       # GAP, (tile_b, 2048)
        # feature_head: Linear(2048->512) -> ReLU -> Dropout -> Linear(512->512)
        h1 = jnp.dot(pooled.astype(jnp.bfloat16), w1_ref[...],
                     preferred_element_type=jnp.float32)
        h1 = jnp.maximum(h1 + b1_ref[...], 0.0)
        # TODO(synk): Dropout(p=0.2) is applied as identity (eval-mode
        # semantics); training-mode dropout randomness is not reproduced.
        out = jnp.dot(h1.astype(jnp.bfloat16), w2_ref[...],
                      preferred_element_type=jnp.float32) + b2_ref[...]
        o_ref[0] = out.astype(o_ref.dtype)


def _fused_forward(x_nchw, params):
    B, C, H, W = x_nchw.shape
    HW = H * W

    # (B, C, H, W) -> (B, C, HW): a free reshape (no transpose).  Channels sit
    # on sublanes (3 -> 8 pad only) and spatial rows are contiguous DMA rows.
    x_flat = x_nchw.reshape(B, C, HW)

    # Spatial tiling: lane-aligned 128-wide tiles; ragged HW is zero-padded
    # and masked in-kernel before the pool.
    if HW <= HW_TILE:
        tile_hw, hw_pad = HW, HW
    else:
        tile_hw = HW_TILE
        hw_pad = _cdiv(HW, HW_TILE) * HW_TILE
    if hw_pad != HW:
        x_flat = jnp.pad(x_flat, ((0, 0), (0, 0), (0, hw_pad - HW)))

    # Batch tiling: tile_b <= 8 (bounded VMEM / unroll) and >= 2 batch-grid
    # steps whenever B >= 2, so the "parallel" axis can shard across v7x's
    # two TensorCores.  Ragged batches are zero-padded; padded rows dropped.
    num_bt = max(2, _cdiv(B, 8)) if B >= 2 else 1
    tile_b = _cdiv(B, num_bt)
    b_pad = num_bt * tile_b
    if b_pad != B:
        x_flat = jnp.pad(x_flat, ((0, b_pad - B), (0, 0), (0, 0)))

    # bf16 weights for the MXU (halves weight DMA); biases stay f32.
    ws = params["w_stem"].astype(jnp.bfloat16)
    w1 = params["w1"].astype(jnp.bfloat16)
    w2 = params["w2"].astype(jnp.bfloat16)

    grid = (num_bt, hw_pad // tile_hw)
    kernel = functools.partial(_fused_kernel, hw_valid=HW,
                               hw_padded=(hw_pad != HW), inv_hw=1.0 / HW)

    # Explicit scoped-VMEM limit from a working-set estimate (double-buffered
    # inputs/outputs + scratch) instead of per-generation defaults.
    c_pad = _cdiv(C, 8) * 8
    est = (2 * tile_b * c_pad * tile_hw * 4          # x double buffer
           + 2 * 16 * BACKBONE_DIM * 2               # w_stem (bf16, row pad)
           + 2 * 8 * BACKBONE_DIM * 4                # b_stem
           + 2 * BACKBONE_DIM * FEATURE_DIM * 2      # w1
           + 2 * FEATURE_DIM * FEATURE_DIM * 2       # w2
           + 4 * 8 * FEATURE_DIM * 4                 # b1, b2
           + 2 * max(tile_b, 8) * FEATURE_DIM * 4    # out double buffer
           + max(tile_b, 8) * BACKBONE_DIM * 4)      # acc scratch
    vmem_limit = min(48 * 1024 * 1024, 2 * est + 8 * 1024 * 1024)

    out = pl.pallas_call(
        kernel,
        out_shape=jax.ShapeDtypeStruct((num_bt, tile_b, FEATURE_DIM),
                                       jnp.float32),
        grid_spec=pltpu.PrefetchScalarGridSpec(
            num_scalar_prefetch=0,
            grid=grid,
            in_specs=[
                pl.BlockSpec((tile_b, C, tile_hw), lambda b, h: (b, 0, h)),
                # Weights/biases: constant index_map -> fetched once, resident.
                pl.BlockSpec((C, BACKBONE_DIM), lambda b, h: (0, 0)),
                pl.BlockSpec((1, BACKBONE_DIM), lambda b, h: (0, 0)),
                pl.BlockSpec((BACKBONE_DIM, FEATURE_DIM), lambda b, h: (0, 0)),
                pl.BlockSpec((1, FEATURE_DIM), lambda b, h: (0, 0)),
                pl.BlockSpec((FEATURE_DIM, FEATURE_DIM), lambda b, h: (0, 0)),
                pl.BlockSpec((1, FEATURE_DIM), lambda b, h: (0, 0)),
            ],
            out_specs=pl.BlockSpec((1, tile_b, FEATURE_DIM),
                                   lambda b, h: (b, 0, 0)),
            scratch_shapes=[pltpu.VMEM((tile_b, BACKBONE_DIM), jnp.float32)],
        ),
        compiler_params=pltpu.CompilerParams(
            dimension_semantics=("parallel", "arbitrary"),
            vmem_limit_bytes=vmem_limit),
    )(x_flat, ws, params["b_stem"], w1, params["b1"], w2, params["b2"])

    return out.reshape(b_pad, FEATURE_DIM)[:B]


@jax.jit
def image_feature_extractor(x, params):
    return _fused_forward(x, params)


def init_params(key, c_in=3):
    k0, k1, k2, k3, k4, k5 = jax.random.split(key, 6)
    scale_stem = (2.0 / c_in) ** 0.5
    scale1 = (1.0 / BACKBONE_DIM) ** 0.5
    scale2 = (1.0 / FEATURE_DIM) ** 0.5
    return {
        "w_stem": scale_stem * jax.random.normal(k0, (c_in, BACKBONE_DIM), jnp.float32),
        "b_stem": 0.01 * jax.random.normal(k1, (1, BACKBONE_DIM), jnp.float32),
        "w1": scale1 * jax.random.normal(k2, (BACKBONE_DIM, FEATURE_DIM), jnp.float32),
        "b1": scale1 * jax.random.normal(k3, (1, FEATURE_DIM), jnp.float32),
        "w2": scale2 * jax.random.normal(k4, (FEATURE_DIM, FEATURE_DIM), jnp.float32),
        "b2": scale2 * jax.random.normal(k5, (1, FEATURE_DIM), jnp.float32),
    }


def _reference(x_nchw, params):
    """Pure-JAX f32 reference for correctness checking."""
    B, C, H, W = x_nchw.shape
    x_flat = x_nchw.reshape(B, C, H * W)
    s = jnp.einsum("bct,cd->btd", x_flat, params["w_stem"]) + params["b_stem"]
    pooled = jnp.mean(jnp.maximum(s, 0.0), axis=1)           # (B, 2048)
    h1 = jnp.maximum(pooled @ params["w1"] + params["b1"], 0.0)
    return h1 @ params["w2"] + params["b2"]                   # (B, 512)


if __name__ == "__main__":
    key = jax.random.PRNGKey(0)
    k_params, k_x = jax.random.split(key)

    params = init_params(k_params, c_in=3)
    # Small image batch consistent with the module's NCHW input convention.
    x = jax.random.normal(k_x, (2, 3, 16, 16), dtype=jnp.float32)

    out = jax.block_until_ready(image_feature_extractor(x, params))

    assert out.shape == (2, FEATURE_DIM), out.shape
    assert out.dtype == jnp.float32, out.dtype
    assert bool(jnp.all(jnp.isfinite(out)))

    # Loose tolerance: stem and head matmuls run in bf16 with f32 accumulation.
    ref = _reference(x, params)
    assert bool(jnp.allclose(out, ref, rtol=1e-1, atol=1e-1)), (
        float(jnp.max(jnp.abs(out - ref))))

    print("KERNEL_OK")
</pallas_src>

<mosaic_0001>
module attributes {stable_mosaic.version = 11 : i64} {
  func.func @_fused_kernel(%arg0: i32, %arg1: i32, %arg2: memref<1x3x128xf32, #tpu.memory_space<vmem>>, %arg3: memref<3x2048xbf16, #tpu.memory_space<vmem>>, %arg4: memref<1x2048xf32, #tpu.memory_space<vmem>>, %arg5: memref<2048x512xbf16, #tpu.memory_space<vmem>>, %arg6: memref<1x512xf32, #tpu.memory_space<vmem>>, %arg7: memref<512x512xbf16, #tpu.memory_space<vmem>>, %arg8: memref<1x512xf32, #tpu.memory_space<vmem>>, %arg9: memref<1x1x512xf32, #tpu.memory_space<vmem>>, %arg10: memref<1x2048xf32, #tpu.memory_space<vmem>>) attributes {dimension_semantics = [#tpu.dimension_semantics<parallel>, #tpu.dimension_semantics<arbitrary>], iteration_bounds = array<i64: 2, 2>, scalar_prefetch = 0 : i64, scratch_operands = 1 : i64, tpu.core_type = #tpu.core_type<tc>, window_params = [{transform_indices = @transform_0, window_bounds = array<i64: 1, 3, 128>}, {pipeline_mode = #tpu.pipeline_mode<synchronous>, transform_indices = @transform_1, window_bounds = array<i64: 3, 2048>}, {pipeline_mode = #tpu.pipeline_mode<synchronous>, transform_indices = @transform_2, window_bounds = array<i64: 1, 2048>}, {pipeline_mode = #tpu.pipeline_mode<synchronous>, transform_indices = @transform_3, window_bounds = array<i64: 2048, 512>}, {pipeline_mode = #tpu.pipeline_mode<synchronous>, transform_indices = @transform_4, window_bounds = array<i64: 1, 512>}, {pipeline_mode = #tpu.pipeline_mode<synchronous>, transform_indices = @transform_5, window_bounds = array<i64: 512, 512>}, {pipeline_mode = #tpu.pipeline_mode<synchronous>, transform_indices = @transform_6, window_bounds = array<i64: 1, 512>}, {transform_indices = @transform_7, window_bounds = array<i64: 1, 1, 512>}]} {
    %c0_i32 = arith.constant 0 : i32
    %0 = arith.cmpi eq, %arg1, %c0_i32 : i32
    %1 = arith.extui %0 : i1 to i32
    %c0_i32_0 = arith.constant 0 : i32
    %2 = arith.cmpi ne, %1, %c0_i32_0 : i32
    scf.if %2 {
      %cst_84 = arith.constant 0.000000e+00 : f32
      %106 = vector.broadcast %cst_84 : f32 to vector<1x2048xf32>
      %c0_85 = arith.constant 0 : index
      %c0_86 = arith.constant 0 : index
      %107 = vector.load %arg10[%c0_85, %c0_86] : memref<1x2048xf32, #tpu.memory_space<vmem>>, vector<1x2048xf32>
      tpu.vector_store %arg10[%c0_85, %c0_86], %106 {strides = array<i32>} : memref<1x2048xf32, #tpu.memory_space<vmem>>, vector<1x2048xf32>,
    } else {
    }
    %c0 = arith.constant 0 : index
    %c0_1 = arith.constant 0 : index
    %c0_2 = arith.constant 0 : index
    %3 = vector.load %arg2[%c0, %c0_1, %c0_2] : memref<1x3x128xf32, #tpu.memory_space<vmem>>, vector<1x3x128xf32>
    %4 = vector.shape_cast %3 : vector<1x3x128xf32> to vector<3x128xf32>
    %5 = tpu.transpose %4, [1, 0] : vector<3x128xf32> -> vector<128x3xf32>
    %6 = arith.truncf %5 : vector<128x3xf32> to vector<128x3xbf16>
    %c0_3 = arith.constant 0 : index
    %c0_4 = arith.constant 0 : index
    %7 = vector.load %arg3[%c0_3, %c0_4] : memref<3x2048xbf16, #tpu.memory_space<vmem>>, vector<3x256xbf16>
    %c0_5 = arith.constant 0 : index
    %c0_6 = arith.constant 0 : index
    %8 = vector.load %arg4[%c0_5, %c0_6] : memref<1x2048xf32, #tpu.memory_space<vmem>>, vector<1x256xf32>
    %cst = arith.constant dense<0.000000e+00> : vector<128x256xf32>
    %9 = tpu.matmul %6, %7, %cst {dimension_numbers = #tpu.dot_dimension_numbers<[1], [0], [0], [1], [0, 0, 1, 1], [], []>} : vector<128x3xbf16>, vector<3x256xbf16>, vector<128x256xf32> -> vector<128x256xf32>
    %10 = vector.broadcast %8 : vector<1x256xf32> to vector<128x256xf32>
    %11 = arith.addf %9, %10 : vector<128x256xf32>
    %cst_7 = arith.constant 0.000000e+00 : f32
    %12 = vector.broadcast %cst_7 : f32 to vector<128x256xf32>
    %13 = arith.maximumf %11, %12 : vector<128x256xf32>
    %c0_8 = arith.constant 0 : index
    %c0_9 = arith.constant 0 : index
    %14 = vector.load %arg10[%c0_8, %c0_9] : memref<1x2048xf32, #tpu.memory_space<vmem>>, vector<1x256xf32>
    %cst_10 = arith.constant dense<0.000000e+00> : vector<256xf32>
    %15 = vector.multi_reduction <add>, %13, %cst_10 [0] : vector<128x256xf32> to vector<256xf32>
    %16 = vector.shape_cast %15 : vector<256xf32> to vector<1x256xf32>
    %17 = arith.addf %14, %16 : vector<1x256xf32>
    %c0_11 = arith.constant 0 : index
    %c0_12 = arith.constant 0 : index
    %18 = vector.load %arg10[%c0_11, %c0_12] : memref<1x2048xf32, #tpu.memory_space<vmem>>, vector<1x256xf32>
    tpu.vector_store %arg10[%c0_11, %c0_12], %17 {strides = array<i32>} : memref<1x2048xf32, #tpu.memory_space<vmem>>, vector<1x256xf32>,
    %c0_13 = arith.constant 0 : index
    %c256 = arith.constant 256 : index
    %19 = vector.load %arg3[%c0_13, %c256] : memref<3x2048xbf16, #tpu.memory_space<vmem>>, vector<3x256xbf16>
    %c0_14 = arith.constant 0 : index
    %c256_15 = arith.constant 256 : index
    %20 = vector.load %arg4[%c0_14, %c256_15] : memref<1x2048xf32, #tpu.memory_space<vmem>>, vector<1x256xf32>
    %cst_16 = arith.constant dense<0.000000e+00> : vector<128x256xf32>
    %21 = tpu.matmul %6, %19, %cst_16 {dimension_numbers = #tpu.dot_dimension_numbers<[1], [0], [0], [1], [0, 0, 1, 1], [], []>} : vector<128x3xbf16>, vector<3x256xbf16>, vector<128x256xf32> -> vector<128x256xf32>
    %22 = vector.broadcast %20 : vector<1x256xf32> to vector<128x256xf32>
    %23 = arith.addf %21, %22 : vector<128x256xf32>
    %cst_17 = arith.constant 0.000000e+00 : f32
    %24 = vector.broadcast %cst_17 : f32 to vector<128x256xf32>
    %25 = arith.maximumf %23, %24 : vector<128x256xf32>
    %c0_18 = arith.constant 0 : index
    %c256_19 = arith.constant 256 : index
    %26 = vector.load %arg10[%c0_18, %c256_19] : memref<1x2048xf32, #tpu.memory_space<vmem>>, vector<1x256xf32>
    %cst_20 = arith.constant dense<0.000000e+00> : vector<256xf32>
    %27 = vector.multi_reduction <add>, %25, %cst_20 [0] : vector<128x256xf32> to vector<256xf32>
    %28 = vector.shape_cast %27 : vector<256xf32> to vector<1x256xf32>
    %29 = arith.addf %26, %28 : vector<1x256xf32>
    %c0_21 = arith.constant 0 : index
    %c256_22 = arith.constant 256 : index
    %30 = vector.load %arg10[%c0_21, %c256_22] : memref<1x2048xf32, #tpu.memory_space<vmem>>, vector<1x256xf32>
    tpu.vector_store %arg10[%c0_21, %c256_22], %29 {strides = array<i32>} : memref<1x2048xf32, #tpu.memory_space<vmem>>, vector<1x256xf32>,
    %c0_23 = arith.constant 0 : index
    %c512 = arith.constant 512 : index
    %31 = vector.load %arg3[%c0_23, %c512] : memref<3x2048xbf16, #tpu.memory_space<vmem>>, vector<3x256xbf16>
    %c0_24 = arith.constant 0 : index
    %c512_25 = arith.constant 512 : index
    %32 = vector.load %arg4[%c0_24, %c512_25] : memref<1x2048xf32, #tpu.memory_space<vmem>>, vector<1x256xf32>
    %cst_26 = arith.constant dense<0.000000e+00> : vector<128x256xf32>
    %33 = tpu.matmul %6, %31, %cst_26 {dimension_numbers = #tpu.dot_dimension_numbers<[1], [0], [0], [1], [0, 0, 1, 1], [], []>} : vector<128x3xbf16>, vector<3x256xbf16>, vector<128x256xf32> -> vector<128x256xf32>
    %34 = vector.broadcast %32 : vector<1x256xf32> to vector<128x256xf32>
    %35 = arith.addf %33, %34 : vector<128x256xf32>
    %cst_27 = arith.constant 0.000000e+00 : f32
    %36 = vector.broadcast %cst_27 : f32 to vector<128x256xf32>
    %37 = arith.maximumf %35, %36 : vector<128x256xf32>
    %c0_28 = arith.constant 0 : index
    %c512_29 = arith.constant 512 : index
    %38 = vector.load %arg10[%c0_28, %c512_29] : memref<1x2048xf32, #tpu.memory_space<vmem>>, vector<1x256xf32>
    %cst_30 = arith.constant dense<0.000000e+00> : vector<256xf32>
    %39 = vector.multi_reduction <add>, %37, %cst_30 [0] : vector<128x256xf32> to vector<256xf32>
    %40 = vector.shape_cast %39 : vector<256xf32> to vector<1x256xf32>
    %41 = arith.addf %38, %40 : vector<1x256xf32>
    %c0_31 = arith.constant 0 : index
    %c512_32 = arith.constant 512 : index
    %42 = vector.load %arg10[%c0_31, %c512_32] : memref<1x2048xf32, #tpu.memory_space<vmem>>, vector<1x256xf32>
    tpu.vector_store %arg10[%c0_31, %c512_32], %41 {strides = array<i32>} : memref<1x2048xf32, #tpu.memory_space<vmem>>, vector<1x256xf32>,
    %c0_33 = arith.constant 0 : index
    %c768 = arith.constant 768 : index
    %43 = vector.load %arg3[%c0_33, %c768] : memref<3x2048xbf16, #tpu.memory_space<vmem>>, vector<3x256xbf16>
    %c0_34 = arith.constant 0 : index
    %c768_35 = arith.constant 768 : index
    %44 = vector.load %arg4[%c0_34, %c768_35] : memref<1x2048xf32, #tpu.memory_space<vmem>>, vector<1x256xf32>
    %cst_36 = arith.constant dense<0.000000e+00> : vector<128x256xf32>
    %45 = tpu.matmul %6, %43, %cst_36 {dimension_numbers = #tpu.dot_dimension_numbers<[1], [0], [0], [1], [0, 0, 1, 1], [], []>} : vector<128x3xbf16>, vector<3x256xbf16>, vector<128x256xf32> -> vector<128x256xf32>
    %46 = vector.broadcast %44 : vector<1x256xf32> to vector<128x256xf32>
    %47 = arith.addf %45, %46 : vector<128x256xf32>
    %cst_37 = arith.constant 0.000000e+00 : f32
    %48 = vector.broadcast %cst_37 : f32 to vector<128x256xf32>
    %49 = arith.maximumf %47, %48 : vector<128x256xf32>
    %c0_38 = arith.constant 0 : index
    %c768_39 = arith.constant 768 : index
    %50 = vector.load %arg10[%c0_38, %c768_39] : memref<1x2048xf32, #tpu.memory_space<vmem>>, vector<1x256xf32>
    %cst_40 = arith.constant dense<0.000000e+00> : vector<256xf32>
    %51 = vector.multi_reduction <add>, %49, %cst_40 [0] : vector<128x256xf32> to vector<256xf32>
    %52 = vector.shape_cast %51 : vector<256xf32> to vector<1x256xf32>
    %53 = arith.addf %50, %52 : vector<1x256xf32>
    %c0_41 = arith.constant 0 : index
    %c768_42 = arith.constant 768 : index
    %54 = vector.load %arg10[%c0_41, %c768_42] : memref<1x2048xf32, #tpu.memory_space<vmem>>, vector<1x256xf32>
    tpu.vector_store %arg10[%c0_41, %c768_42], %53 {strides = array<i32>} : memref<1x2048xf32, #tpu.memory_space<vmem>>, vector<1x256xf32>,
    %c0_43 = arith.constant 0 : index
    %c1024 = arith.constant 1024 : index
    %55 = vector.load %arg3[%c0_43, %c1024] : memref<3x2048xbf16, #tpu.memory_space<vmem>>, vector<3x256xbf16>
    %c0_44 = arith.constant 0 : index
    %c1024_45 = arith.constant 1024 : index
    %56 = vector.load %arg4[%c0_44, %c1024_45] : memref<1x2048xf32, #tpu.memory_space<vmem>>, vector<1x256xf32>
    %cst_46 = arith.constant dense<0.000000e+00> : vector<128x256xf32>
    %57 = tpu.matmul %6, %55, %cst_46 {dimension_numbers = #tpu.dot_dimension_numbers<[1], [0], [0], [1], [0, 0, 1, 1], [], []>} : vector<128x3xbf16>, vector<3x256xbf16>, vector<128x256xf32> -> vector<128x256xf32>
    %58 = vector.broadcast %56 : vector<1x256xf32> to vector<128x256xf32>
    %59 = arith.addf %57, %58 : vector<128x256xf32>
    %cst_47 = arith.constant 0.000000e+00 : f32
    %60 = vector.broadcast %cst_47 : f32 to vector<128x256xf32>
    %61 = arith.maximumf %59, %60 : vector<128x256xf32>
    %c0_48 = arith.constant 0 : index
    %c1024_49 = arith.constant 1024 : index
    %62 = vector.load %arg10[%c0_48, %c1024_49] : memref<1x2048xf32, #tpu.memory_space<vmem>>, vector<1x256xf32>
    %cst_50 = arith.constant dense<0.000000e+00> : vector<256xf32>
    %63 = vector.multi_reduction <add>, %61, %cst_50 [0] : vector<128x256xf32> to vector<256xf32>
    %64 = vector.shape_cast %63 : vector<256xf32> to vector<1x256xf32>
    %65 = arith.addf %62, %64 : vector<1x256xf32>
    %c0_51 = arith.constant 0 : index
    %c1024_52 = arith.constant 1024 : index
    %66 = vector.load %arg10[%c0_51, %c1024_52] : memref<1x2048xf32, #tpu.memory_space<vmem>>, vector<1x256xf32>
    tpu.vector_store %arg10[%c0_51, %c1024_52], %65 {strides = array<i32>} : memref<1x2048xf32, #tpu.memory_space<vmem>>, vector<1x256xf32>,
    %c0_53 = arith.constant 0 : index
    %c1280 = arith.constant 1280 : index
    %67 = vector.load %arg3[%c0_53, %c1280] : memref<3x2048xbf16, #tpu.memory_space<vmem>>, vector<3x256xbf16>
    %c0_54 = arith.constant 0 : index
    %c1280_55 = arith.constant 1280 : index
    %68 = vector.load %arg4[%c0_54, %c1280_55] : memref<1x2048xf32, #tpu.memory_space<vmem>>, vector<1x256xf32>
    %cst_56 = arith.constant dense<0.000000e+00> : vector<128x256xf32>
    %69 = tpu.matmul %6, %67, %cst_56 {dimension_numbers = #tpu.dot_dimension_numbers<[1], [0], [0], [1], [0, 0, 1, 1], [], []>} : vector<128x3xbf16>, vector<3x256xbf16>, vector<128x256xf32> -> vector<128x256xf32>
    %70 = vector.broadcast %68 : vector<1x256xf32> to vector<128x256xf32>
    %71 = arith.addf %69, %70 : vector<128x256xf32>
    %cst_57 = arith.constant 0.000000e+00 : f32
    %72 = vector.broadcast %cst_57 : f32 to vector<128x256xf32>
    %73 = arith.maximumf %71, %72 : vector<128x256xf32>
    %c0_58 = arith.constant 0 : index
    %c1280_59 = arith.constant 1280 : index
    %74 = vector.load %arg10[%c0_58, %c1280_59] : memref<1x2048xf32, #tpu.memory_space<vmem>>, vector<1x256xf32>
    %cst_60 = arith.constant dense<0.000000e+00> : vector<256xf32>
    %75 = vector.multi_reduction <add>, %73, %cst_60 [0] : vector<128x256xf32> to vector<256xf32>
    %76 = vector.shape_cast %75 : vector<256xf32> to vector<1x256xf32>
    %77 = arith.addf %74, %76 : vector<1x256xf32>
    %c0_61 = arith.constant 0 : index
    %c1280_62 = arith.constant 1280 : index
    %78 = vector.load %arg10[%c0_61, %c1280_62] : memref<1x2048xf32, #tpu.memory_space<vmem>>, vector<1x256xf32>
    tpu.vector_store %arg10[%c0_61, %c1280_62], %77 {strides = array<i32>} : memref<1x2048xf32, #tpu.memory_space<vmem>>, vector<1x256xf32>,
    %c0_63 = arith.constant 0 : index
    %c1536 = arith.constant 1536 : index
    %79 = vector.load %arg3[%c0_63, %c1536] : memref<3x2048xbf16, #tpu.memory_space<vmem>>, vector<3x256xbf16>
    %c0_64 = arith.constant 0 : index
    %c1536_65 = arith.constant 1536 : index
    %80 = vector.load %arg4[%c0_64, %c1536_65] : memref<1x2048xf32, #tpu.memory_space<vmem>>, vector<1x256xf32>
    %cst_66 = arith.constant dense<0.000000e+00> : vector<128x256xf32>
    %81 = tpu.matmul %6, %79, %cst_66 {dimension_numbers = #tpu.dot_dimension_numbers<[1], [0], [0], [1], [0, 0, 1, 1], [], []>} : vector<128x3xbf16>, vector<3x256xbf16>, vector<128x256xf32> -> vector<128x256xf32>
    %82 = vector.broadcast %80 : vector<1x256xf32> to vector<128x256xf32>
    %83 = arith.addf %81, %82 : vector<128x256xf32>
    %cst_67 = arith.constant 0.000000e+00 : f32
    %84 = vector.broadcast %cst_67 : f32 to vector<128x256xf32>
    %85 = arith.maximumf %83, %84 : vector<128x256xf32>
    %c0_68 = arith.constant 0 : index
    %c1536_69 = arith.constant 1536 : index
    %86 = vector.load %arg10[%c0_68, %c1536_69] : memref<1x2048xf32, #tpu.memory_space<vmem>>, vector<1x256xf32>
    %cst_70 = arith.constant dense<0.000000e+00> : vector<256xf32>
    %87 = vector.multi_reduction <add>, %85, %cst_70 [0] : vector<128x256xf32> to vector<256xf32>
    %88 = vector.shape_cast %87 : vector<256xf32> to vector<1x256xf32>
    %89 = arith.addf %86, %88 : vector<1x256xf32>
    %c0_71 = arith.constant 0 : index
    %c1536_72 = arith.constant 1536 : index
    %90 = vector.load %arg10[%c0_71, %c1536_72] : memref<1x2048xf32, #tpu.memory_space<vmem>>, vector<1x256xf32>
    tpu.vector_store %arg10[%c0_71, %c1536_72], %89 {strides = array<i32>} : memref<1x2048xf32, #tpu.memory_space<vmem>>, vector<1x256xf32>,
    %c0_73 = arith.constant 0 : index
    %c1792 = arith.constant 1792 : index
    %91 = vector.load %arg3[%c0_73, %c1792] : memref<3x2048xbf16, #tpu.memory_space<vmem>>, vector<3x256xbf16>
    %c0_74 = arith.constant 0 : index
    %c1792_75 = arith.constant 1792 : index
    %92 = vector.load %arg4[%c0_74, %c1792_75] : memref<1x2048xf32, #tpu.memory_space<vmem>>, vector<1x256xf32>
    %cst_76 = arith.constant dense<0.000000e+00> : vector<128x256xf32>
    %93 = tpu.matmul %6, %91, %cst_76 {dimension_numbers = #tpu.dot_dimension_numbers<[1], [0], [0], [1], [0, 0, 1, 1], [], []>} : vector<128x3xbf16>, vector<3x256xbf16>, vector<128x256xf32> -> vector<128x256xf32>
    %94 = vector.broadcast %92 : vector<1x256xf32> to vector<128x256xf32>
    %95 = arith.addf %93, %94 : vector<128x256xf32>
    %cst_77 = arith.constant 0.000000e+00 : f32
    %96 = vector.broadcast %cst_77 : f32 to vector<128x256xf32>
    %97 = arith.maximumf %95, %96 : vector<128x256xf32>
    %c0_78 = arith.constant 0 : index
    %c1792_79 = arith.constant 1792 : index
    %98 = vector.load %arg10[%c0_78, %c1792_79] : memref<1x2048xf32, #tpu.memory_space<vmem>>, vector<1x256xf32>
    %cst_80 = arith.constant dense<0.000000e+00> : vector<256xf32>
    %99 = vector.multi_reduction <add>, %97, %cst_80 [0] : vector<128x256xf32> to vector<256xf32>
    %100 = vector.shape_cast %99 : vector<256xf32> to vector<1x256xf32>
    %101 = arith.addf %98, %100 : vector<1x256xf32>
    %c0_81 = arith.constant 0 : index
    %c1792_82 = arith.constant 1792 : index
    %102 = vector.load %arg10[%c0_81, %c1792_82] : memref<1x2048xf32, #tpu.memory_space<vmem>>, vector<1x256xf32>
    tpu.vector_store %arg10[%c0_81, %c1792_82], %101 {strides = array<i32>} : memref<1x2048xf32, #tpu.memory_space<vmem>>, vector<1x256xf32>,
    %c1_i32 = arith.constant 1 : i32
    %103 = arith.cmpi eq, %arg1, %c1_i32 : i32
    %104 = arith.extui %103 : i1 to i32
    %c0_i32_83 = arith.constant 0 : i32
    %105 = arith.cmpi ne, %104, %c0_i32_83 : i32
    scf.if %105 {
      %c0_84 = arith.constant 0 : index
      %c0_85 = arith.constant 0 : index
      %106 = vector.load %arg10[%c0_84, %c0_85] : memref<1x2048xf32, #tpu.memory_space<vmem>>, vector<1x2048xf32>
      %cst_86 = arith.constant 3.906250e-03 : f32
      %107 = vector.broadcast %cst_86 : f32 to vector<1x2048xf32>
      %108 = arith.mulf %106, %107 : vector<1x2048xf32>
      %109 = arith.truncf %108 : vector<1x2048xf32> to vector<1x2048xbf16>
      %c0_87 = arith.constant 0 : index
      %c0_88 = arith.constant 0 : index
      %110 = vector.load %arg5[%c0_87, %c0_88] : memref<2048x512xbf16, #tpu.memory_space<vmem>>, vector<2048x512xbf16>
      %cst_89 = arith.constant dense<0.000000e+00> : vector<1x512xf32>
      %111 = tpu.matmul %109, %110, %cst_89 {dimension_numbers = #tpu.dot_dimension_numbers<[1], [0], [0], [1], [0, 0, 1, 1], [], []>} : vector<1x2048xbf16>, vector<2048x512xbf16>, vector<1x512xf32> -> vector<1x512xf32>
      %c0_90 = arith.constant 0 : index
      %c0_91 = arith.constant 0 : index
      %112 = vector.load %arg6[%c0_90, %c0_91] : memref<1x512xf32, #tpu.memory_space<vmem>>, vector<1x512xf32>
      %113 = arith.addf %111, %112 : vector<1x512xf32>
      %cst_92 = arith.constant 0.000000e+00 : f32
      %114 = vector.broadcast %cst_92 : f32 to vector<1x512xf32>
      %115 = arith.maximumf %113, %114 : vector<1x512xf32>
      %116 = arith.truncf %115 : vector<1x512xf32> to vector<1x512xbf16>
      %c0_93 = arith.constant 0 : index
      %c0_94 = arith.constant 0 : index
      %117 = vector.load %arg7[%c0_93, %c0_94] : memref<512x512xbf16, #tpu.memory_space<vmem>>, vector<512x512xbf16>
      %cst_95 = arith.constant dense<0.000000e+00> : vector<1x512xf32>
      %118 = tpu.matmul %116, %117, %cst_95 {dimension_numbers = #tpu.dot_dimension_numbers<[1], [0], [0], [1], [0, 0, 1, 1], [], []>} : vector<1x512xbf16>, vector<512x512xbf16>, vector<1x512xf32> -> vector<1x512xf32>
      %c0_96 = arith.constant 0 : index
      %c0_97 = arith.constant 0 : index
      %119 = vector.load %arg8[%c0_96, %c0_97] : memref<1x512xf32, #tpu.memory_space<vmem>>, vector<1x512xf32>
      %120 = arith.addf %118, %119 : vector<1x512xf32>
      %c0_98 = arith.constant 0 : index
      %c0_99 = arith.constant 0 : index
      %c0_100 = arith.constant 0 : index
      %121 = vector.load %arg9[%c0_98, %c0_99, %c0_100] : memref<1x1x512xf32, #tpu.memory_space<vmem>>, vector<1x1x512xf32>
      %122 = vector.shape_cast %121 : vector<1x1x512xf32> to vector<1x512xf32>
      %123 = vector.shape_cast %120 : vector<1x512xf32> to vector<1x1x512xf32>
      tpu.vector_store %arg9[%c0_98, %c0_99, %c0_100], %123 {strides = array<i32>} : memref<1x1x512xf32, #tpu.memory_space<vmem>>, vector<1x1x512xf32>,
    } else {
    }
    return
  }
  func.func @transform_0(%arg0: i32, %arg1: i32) -> (i32, i32, i32) {
    %c0_i32 = arith.constant 0 : i32
    %c0_i32_0 = arith.constant 0 : i32
    return %arg0, %c0_i32, %arg1 : i32, i32, i32
  }
  func.func @transform_1(%arg0: i32, %arg1: i32) -> (i32, i32) {
    %c0_i32 = arith.constant 0 : i32
    %c0_i32_0 = arith.constant 0 : i32
    %c0_i32_1 = arith.constant 0 : i32
    return %c0_i32, %c0_i32_0 : i32, i32
  }
  func.func @transform_2(%arg0: i32, %arg1: i32) -> (i32, i32) {
    %c0_i32 = arith.constant 0 : i32
    %c0_i32_0 = arith.constant 0 : i32
    %c0_i32_1 = arith.constant 0 : i32
    return %c0_i32, %c0_i32_0 : i32, i32
  }
  func.func @transform_3(%arg0: i32, %arg1: i32) -> (i32, i32) {
    %c0_i32 = arith.constant 0 : i32
    %c0_i32_0 = arith.constant 0 : i32
    %c0_i32_1 = arith.constant 0 : i32
    return %c0_i32, %c0_i32_0 : i32, i32
  }
  func.func @transform_4(%arg0: i32, %arg1: i32) -> (i32, i32) {
    %c0_i32 = arith.constant 0 : i32
    %c0_i32_0 = arith.constant 0 : i32
    %c0_i32_1 = arith.constant 0 : i32
    return %c0_i32, %c0_i32_0 : i32, i32
  }
  func.func @transform_5(%arg0: i32, %arg1: i32) -> (i32, i32) {
    %c0_i32 = arith.constant 0 : i32
    %c0_i32_0 = arith.constant 0 : i32
    %c0_i32_1 = arith.constant 0 : i32
    return %c0_i32, %c0_i32_0 : i32, i32
  }
  func.func @transform_6(%arg0: i32, %arg1: i32) -> (i32, i32) {
    %c0_i32 = arith.constant 0 : i32
    %c0_i32_0 = arith.constant 0 : i32
    %c0_i32_1 = arith.constant 0 : i32
    return %c0_i32, %c0_i32_0 : i32, i32
  }
  func.func @transform_7(%arg0: i32, %arg1: i32) -> (i32, i32, i32) {
    %c0_i32 = arith.constant 0 : i32
    %c0_i32_0 = arith.constant 0 : i32
    %c0_i32_1 = arith.constant 0 : i32
    return %arg0, %c0_i32, %c0_i32_0 : i32, i32, i32
  }
}

</mosaic_0001>

<bundles_post_ra>
// kernel: image_feature_extractor.1
= control target key start
LH: loop header
LB: loop body
LE: loop exit
PB: predicated region body
PF: predicated region fallthrough
CT: control target
= control target key end

     0   :  { %s9074_s24 = smov 0   ;;  %s9076_s25 = smov 0   ;;  %s11772_s0 = inlined_call_operand.vmem [shape: f32[2,3,256], index: 0, kind: input, shape index: {}]   ;;  %s11773_s1 = inlined_call_operand.vmem [shape: bf16[3,2048], index: 1, kind: input, shape index: {}]   ;;  %s11774_s2 = inlined_call_operand.vmem [shape: f32[1,2048], index: 2, kind: input, shape index: {}]   ;;  %s11775_s3 = inlined_call_operand.vmem [shape: bf16[2048,512], index: 3, kind: input, shape index: {}]   ;;  %s11776_s4 = inlined_call_operand.vmem [shape: f32[1,512], index: 4, kind: input, shape index: {}]   ;;  %s11777_s5 = inlined_call_operand.vmem [shape: bf16[512,512], index: 5, kind: input, shape index: {}]   ;;  %s11778_s6 = inlined_call_operand.vmem [shape: f32[1,512], index: 6, kind: input, shape index: {}]   ;;  %s11779_s7 = inlined_call_operand.vmem [shape: f32[2,1,512], index: 7, kind: output, shape index: {}]  }
   0x1   :  { %s9078_s26 = smov 0   ;;  %s9080_s27 = smov 0  }
   0x2   :  { %s9082_s28 = smov 0  }
   0x3 LB: > { %s26_s29 = sadd.s32 1, %s9020_s26  ;;  %s29_s30 = sadd.s32 1, %s9024_s27  ;;  %s9028_s28 = sphi %s9082_s28, %s17_s28   ;;  %s9024_s27 = sphi %s9080_s27, %s11785_s27   ;;  %s9020_s26 = sphi %s9078_s26, %s11784_s26   ;;  %s9016_s25 = sphi %s9076_s25, %s11783_s25   ;;  %s9012_s24 = sphi %s9074_s24, %s11782_s24  }
   0x4   : > { %p27_p0 = scmp.ge.s32.totalorder %s26_s29, 2  ;;  %p7193_p1 = scmp.ge.s32.totalorder %s9028_s28, 1 }
   0x5   : > { %p254_p2 = scmp.lt.s32.totalorder %s9028_s28, 5 }
   0x6   : > { %s11787_s29 = smov (%p27_p0, %s26_s29), 0  ;;  %s11789_s30 = smov (!%p27_p0, %s29_s30), %s9024_s27 }
   0x7   : > { %p255_p3 = pnand %p7193_p1, %p254_p2  ;;  %p31_p4 = scmp.ge.s32.totalorder %s11789_s30, 2 }
   0x8   : > { %p288_p5 = scmp.lt.s32.totalorder (!%p255_p3), %s9016_s25, 1  ;;  %p290_p6 = scmp.lt.s32.totalorder (!%p255_p3), %s9012_s24, 1 }
   0x9   : > { %s11791_s30 = smov (%p31_p4, %s11789_s30), 0  ;;  %258 = sbr.rel (%p255_p3) target bundleno = 1643 (0x66b), region = 48 }
   0xa   : > { %p7197_p7 = scmp.ne.s32.totalorder (!%p255_p3), %s9012_s24, 0 }
  0x10   : > { %s11793_s25 = smov (!%p288_p5, %s9016_s25), 1  ;;  %304 = sbr.rel (%p7197_p7) target bundleno = 23 (0x17), region = 52 }
  0x11   : > { %s291_s8 = scalar_select %p290_p6, %s9012_s24, 1 }
  0x12   : > { %s7194_s9 = sshll.u32 %s11793_s25, 1  ;;  %s7196_s10 = sshll.u32 %s11793_s25, 2  ;;  %v9030_v0 = vmov (!%p7197_p7), 0.0  }
  0x13   : > { %s293_s11 = sadd.s32 %s7194_s9, %s291_s8  ;;  %s9111_s14 = scalar_lea.vmem %s11779_s7, %s7196_s10  ;;  %305 = vst [vmem:[#allocation2] sm:$0xff] (!%p7197_p7), %v9030_v0  ;;  %306 = vst [vmem:[#allocation2 + $0x8] sm:$0xff] (!%p7197_p7), %v9030_v0 }
  0x14   : > { %s7195_s15 = sshll.u32 %s293_s11, 2 }
  0x15   : > { %s295_s18 = scalar_lea.vmem %s11772_s0, %s7195_s15 }
  0x17 PF: > { %v307_v1 = vld [vmem:[%s295_s18] sm:$0x7]  ;;  %vm395_vm0 = vcmask 1040384   ;;  %vm396_vm1 = vcmask 1041408   ;;  %v9031_v3 = vmov 65535   ;;  %v9032_v16 = vmov 0  }
  0x18   : > { %308 = vxpose.xlu0.b32.start.end [1/1] (short) %v307_v1, 128  ;;  %v7198_v2 = vld.sshfl [vmem:[%s11773_s1] sm:$0x33 pattern:$0x76325410]  ;;  %v397_v4 = vsel %vm395_vm0, 4294967295, %v9031_v3  ;;  %437 = vmatprep.mubr.bf16.mxu0 %v9032_v16  ;;  %vm370_vm2 = vcmask 23552   ;;  %v351_v62 = vlaneseq }
  0x19   : > { %v369_v5 = vcombine.high %v7198_v2, %v7198_v2  ;;  %v9120_v6 = vsel %vm396_vm1, %v397_v4, 0  ;;  %v7207_v7 = vld.sshfl [vmem:[%s11773_s1 + $0x4] sm:$0x33 pattern:$0x76325410]  ;;  %677 = vmatprep.mubr.bf16.mxu1 %v9032_v16  ;;  %p7270_p8 = scmp.ne.s32.totalorder %s9012_s24, 1 }
  0x1a   : > { %v638_v8 = vcombine.high %v7207_v7, %v7207_v7  ;;  %v400_v9 = vand.u32 %v7198_v2, %v9120_v6  ;;  %v640_v11 = vand.u32 %v7207_v7, %v9120_v6  ;;  %v7216_v13 = vld.sshfl [vmem:[%s11773_s1 + $0x8] sm:$0x33 pattern:$0x76325410]  ;;  %v9342_v63 = vshrl.u32 %v351_v62, 7 }
  0x1b   : > { %v403_v10 = vand.u32 %v9120_v6, %v369_v5  ;;  %v874_v14 = vcombine.high %v7216_v13, %v7216_v13  ;;  %v7225_v15 = vld.sshfl [vmem:[%s11773_s1 + $0xc] sm:$0x33 pattern:$0x76325410]  ;;  %v876_v26 = vand.u32 %v7216_v13, %v9120_v6  ;;  %v349_v1 = vld [vmem:[%s11774_s2] sm:$0x3] }
  0x1c   : > { %v643_v12 = vand.u32 %v638_v8, %v9120_v6  ;;  %v1110_v17 = vcombine.high %v7225_v15, %v7225_v15  ;;  %v9142_v20 = vld.sshfl [vmem:[%s11773_s1 + $0x10] sm:$0x33 pattern:$0x76325410]  ;;  %v1112_v27 = vand.u32 %v7225_v15, %v9120_v6  ;;  %v9347_v0 = vsub.s32 0, %v9342_v63 }
  0x1d   : > { %405 = vmatprep.subr.bf16.mxu0 %v403_v10  ;;  %v879_v18 = vand.u32 %v874_v14, %v9120_v6  ;;  %v9147_v21 = vld.sshfl [vmem:[%s11773_s1 + $0x14] sm:$0x33 pattern:$0x76325410]  ;;  %v1346_v23 = vcombine.high %v9142_v20, %v9142_v20  ;;  %v1348_v56 = vand.u32 %v9142_v20, %v9120_v6  ;;  %v618_v2 = vld [vmem:[%s11774_s2 + $0x2] sm:$0x3] }
  0x1e   : > { %645 = vmatprep.subr.bf16.mxu1 %v643_v12  ;;  %406 = vmatpush1.bf16.msra.mxu0 %v400_v9  ;;  %v1115_v19 = vand.u32 %v1110_v17, %v9120_v6  ;;  %v1582_v24 = vcombine.high %v9147_v21, %v9147_v21  ;;  %v7252_v52 = vld.sshfl [vmem:[%s11773_s1 + $0x18] sm:$0x33 pattern:$0x76325410]  ;;  %v1584_v57 = vand.u32 %v9147_v21, %v9120_v6  ;;  %v9356_v3 = vsub.s32 1, %v9342_v63 }
  0x1f   : > { %646 = vmatpush1.bf16.msra.mxu1 %v640_v11  ;;  %881 = vmatprep.subr.bf16.mxu0 %v879_v18  ;;  %v1351_v29 = vand.u32 %v1346_v23, %v9120_v6  ;;  %v7261_v53 = vld.sshfl [vmem:[%s11773_s1 + $0x1c] sm:$0x33 pattern:$0x76325410]  ;;  %v1818_v54 = vcombine.high %v7252_v52, %v7252_v52  ;;  %v1820_v60 = vand.u32 %v7252_v52, %v9120_v6  ;;  %vm9498_vm3 = vcmp.lt.s32.totalorder %v351_v62, 256 }
  0x20   : > { %1117 = vmatprep.subr.bf16.mxu1 %v1115_v19  ;;  %v1587_v30 = vand.u32 %v1582_v24, %v9120_v6  ;;  %v2054_v55 = vcombine.high %v7261_v53, %v7261_v53  ;;  %v2056_v61 = vand.u32 %v7261_v53, %v9120_v6  ;;  %v9363_v4 = vrot.slane %v349_v1, %v9347_v0 }
  0x21   : > { %v1823_v58 = vand.u32 %v1818_v54, %v9120_v6  ;;  %v9366_v5 = vrot.slane %v618_v2, %v9347_v0  ;;  %v9372_v7 = vrot.slane %v618_v2, %v9356_v3  ;;  %vm7116_vm4 = vcmp.lt.s32.totalorder (!%p7270_p8), %v351_v62, 512 }
  0x22   : > { %v2059_v59 = vand.u32 %v2054_v55, %v9120_v6  ;;  %v9369_v6 = vrot.slane %v349_v1, %v9356_v3 }
  0x98   : > { %v324_v22 = vpop.trf.xlu0 }
  0x9c   : > { %v325_v25 = vpop.trf.xlu0 }
  0x9d   : > { %v9155_v28 = vpack.c.bf16 %v325_v25, %v324_v22 }
  0x9f   : > { %7199 = vmatmul.mubr.msk.bf16.vlgmr.msra.gmra.mrb[0].mxu0 %vm370_vm2, %v9155_v28  ;;  %7208 = vmatmul.mubr.msk.bf16.vlgmr.msra.gmra.mrb[0].mxu1 %vm370_vm2, %v9155_v28 }
  0xa0   : > { %882 = vmatpush1.bf16.msra.mxu0 %v876_v26  ;;  %1118 = vmatpush1.bf16.msra.mxu1 %v1112_v27  ;;  %v326_v31 = vpop.trf.xlu0 }
  0xa1   : > { %447 = vmatprep.mubr.bf16.mxu0 %v9032_v16  ;;  %687 = vmatprep.mubr.bf16.mxu1 %v9032_v16 }
  0xa2   : > { %1353 = vmatprep.subr.bf16.mxu0 %v1351_v29  ;;  %1589 = vmatprep.subr.bf16.mxu1 %v1587_v30 }
  0xa4   : > { %v327_v32 = vpop.trf.xlu0 }
  0xa5   : > { %v9165_v33 = vpack.c.bf16 %v327_v32, %v326_v31 }
  0xa7   : > { %7200 = vmatmul.mubr.msk.bf16.gmra.mrb[4].mxu0 %vm370_vm2, %v9165_v33  ;;  %7209 = vmatmul.mubr.msk.bf16.gmra.mrb[4].mxu1 %vm370_vm2, %v9165_v33 }
  0xa8   : > { %v328_v34 = vpop.trf.xlu0  ;;  %457 = vmatprep.mubr.bf16.mxu0 %v9032_v16  ;;  %697 = vmatprep.mubr.bf16.mxu1 %v9032_v16 }
  0xac   : > { %v329_v35 = vpop.trf.xlu0 }
  0xad   : > { %v9173_v36 = vpack.c.bf16 %v329_v35, %v328_v34 }
  0xaf   : > { %7201 = vmatmul.mubr.msk.bf16.gmra.mrb[8].mxu0 %vm370_vm2, %v9173_v36  ;;  %7210 = vmatmul.mubr.msk.bf16.gmra.mrb[8].mxu1 %vm370_vm2, %v9173_v36 }
  0xb0   : > { %v330_v37 = vpop.trf.xlu0  ;;  %467 = vmatprep.mubr.bf16.mxu0 %v9032_v16  ;;  %707 = vmatprep.mubr.bf16.mxu1 %v9032_v16 }
  0xb4   : > { %v331_v38 = vpop.trf.xlu0 }
  0xb5   : > { %v9181_v39 = vpack.c.bf16 %v331_v38, %v330_v37 }
  0xb7   : > { %7202 = vmatmul.mubr.msk.bf16.gmra.mrb[12].mxu0 %vm370_vm2, %v9181_v39  ;;  %7211 = vmatmul.mubr.msk.bf16.gmra.mrb[12].mxu1 %vm370_vm2, %v9181_v39 }
  0xb8   : > { %v332_v40 = vpop.trf.xlu0  ;;  %477 = vmatprep.mubr.bf16.mxu0 %v9032_v16  ;;  %717 = vmatprep.mubr.bf16.mxu1 %v9032_v16 }
  0xbc   : > { %v333_v41 = vpop.trf.xlu0 }
  0xbd   : > { %v9189_v42 = vpack.c.bf16 %v333_v41, %v332_v40 }
  0xbf   : > { %7203 = vmatmul.mubr.msk.bf16.gmra.mrb[16].mxu0 %vm370_vm2, %v9189_v42  ;;  %7212 = vmatmul.mubr.msk.bf16.gmra.mrb[16].mxu1 %vm370_vm2, %v9189_v42 }
  0xc0   : > { %v334_v43 = vpop.trf.xlu0  ;;  %487 = vmatprep.mubr.bf16.mxu0 %v9032_v16  ;;  %727 = vmatprep.mubr.bf16.mxu1 %v9032_v16 }
  0xc4   : > { %v335_v44 = vpop.trf.xlu0 }
  0xc5   : > { %v9197_v45 = vpack.c.bf16 %v335_v44, %v334_v43 }
  0xc7   : > { %7204 = vmatmul.mubr.msk.bf16.gmra.mrb[20].mxu0 %vm370_vm2, %v9197_v45  ;;  %7213 = vmatmul.mubr.msk.bf16.gmra.mrb[20].mxu1 %vm370_vm2, %v9197_v45 }
  0xc8   : > { %v336_v46 = vpop.trf.xlu0  ;;  %497 = vmatprep.mubr.bf16.mxu0 %v9032_v16  ;;  %737 = vmatprep.mubr.bf16.mxu1 %v9032_v16 }
  0xcc   : > { %v337_v47 = vpop.trf.xlu0 }
  0xcd   : > { %v9205_v48 = vpack.c.bf16 %v337_v47, %v336_v46 }
  0xcf   : > { %7205 = vmatmul.mubr.msk.bf16.gmra.mrb[24].mxu0 %vm370_vm2, %v9205_v48  ;;  %7214 = vmatmul.mubr.msk.bf16.gmra.mrb[24].mxu1 %vm370_vm2, %v9205_v48 }
  0xd0   : > { %v338_v49 = vpop.trf.xlu0  ;;  %507 = vmatprep.mubr.bf16.mxu0 %v9032_v16  ;;  %747 = vmatprep.mubr.bf16.mxu1 %v9032_v16 }
  0xd4   : > { %v339_v50 = vpop.trf.xlu0 }
  0xd5   : > { %v9213_v51 = vpack.c.bf16 %v339_v50, %v338_v49 }
  0xd7   : > { %7206 = vmatmul.mubr.msk.bf16.gmra.mrb[28].mxu0 %vm370_vm2, %v9213_v51  ;;  %7215 = vmatmul.mubr.msk.bf16.gmra.mrb[28].mxu1 %vm370_vm2, %v9213_v51 }
  0xd8   : > { %913 = vmatprep.mubr.bf16.mxu0 %v9032_v16  ;;  %1149 = vmatprep.mubr.bf16.mxu1 %v9032_v16 }
  0xdf   : > { %7217 = vmatmul.mubr.msk.bf16.vlgmr.msra.gmra.mrb[32].mxu0 %vm370_vm2, %v9155_v28  ;;  %7226 = vmatmul.mubr.msk.bf16.vlgmr.msra.gmra.mrb[32].mxu1 %vm370_vm2, %v9155_v28 }
  0xe0   : > { %1354 = vmatpush1.bf16.msra.mxu0 %v1348_v56  ;;  %1590 = vmatpush1.bf16.msra.mxu1 %v1584_v57 }
  0xe1   : > { %923 = vmatprep.mubr.bf16.mxu0 %v9032_v16  ;;  %1159 = vmatprep.mubr.bf16.mxu1 %v9032_v16 }
  0xe2   : > { %1825 = vmatprep.subr.bf16.mxu0 %v1823_v58  ;;  %2061 = vmatprep.subr.bf16.mxu1 %v2059_v59 }
  0xe7   : > { %7218 = vmatmul.mubr.msk.bf16.gmra.mrb[36].mxu0 %vm370_vm2, %v9165_v33  ;;  %7227 = vmatmul.mubr.msk.bf16.gmra.mrb[36].mxu1 %vm370_vm2, %v9165_v33 }
  0xe8   : > { %933 = vmatprep.mubr.bf16.mxu0 %v9032_v16  ;;  %1169 = vmatprep.mubr.bf16.mxu1 %v9032_v16 }
  0xef   : > { %7219 = vmatmul.mubr.msk.bf16.gmra.mrb[40].mxu0 %vm370_vm2, %v9173_v36  ;;  %7228 = vmatmul.mubr.msk.bf16.gmra.mrb[40].mxu1 %vm370_vm2, %v9173_v36 }
  0xf0   : > { %943 = vmatprep.mubr.bf16.mxu0 %v9032_v16  ;;  %1179 = vmatprep.mubr.bf16.mxu1 %v9032_v16 }
  0xf7   : > { %7220 = vmatmul.mubr.msk.bf16.gmra.mrb[44].mxu0 %vm370_vm2, %v9181_v39  ;;  %7229 = vmatmul.mubr.msk.bf16.gmra.mrb[44].mxu1 %vm370_vm2, %v9181_v39 }
  0xf8   : > { %953 = vmatprep.mubr.bf16.mxu0 %v9032_v16  ;;  %1189 = vmatprep.mubr.bf16.mxu1 %v9032_v16 }
  0xff   : > { %7221 = vmatmul.mubr.msk.bf16.gmra.mrb[48].mxu0 %vm370_vm2, %v9189_v42  ;;  %7230 = vmatmul.mubr.msk.bf16.gmra.mrb[48].mxu1 %vm370_vm2, %v9189_v42 }
 0x100   : > { %963 = vmatprep.mubr.bf16.mxu0 %v9032_v16  ;;  %1199 = vmatprep.mubr.bf16.mxu1 %v9032_v16 }
 0x107   : > { %7222 = vmatmul.mubr.msk.bf16.gmra.mrb[52].mxu0 %vm370_vm2, %v9197_v45  ;;  %7231 = vmatmul.mubr.msk.bf16.gmra.mrb[52].mxu1 %vm370_vm2, %v9197_v45 }
 0x108   : > { %973 = vmatprep.mubr.bf16.mxu0 %v9032_v16  ;;  %1209 = vmatprep.mubr.bf16.mxu1 %v9032_v16 }
 0x10f   : > { %7223 = vmatmul.mubr.msk.bf16.gmra.mrb[56].mxu0 %vm370_vm2, %v9205_v48  ;;  %7232 = vmatmul.mubr.msk.bf16.gmra.mrb[56].mxu1 %vm370_vm2, %v9205_v48 }
 0x110   : > { %983 = vmatprep.mubr.bf16.mxu0 %v9032_v16  ;;  %1219 = vmatprep.mubr.bf16.mxu1 %v9032_v16 }
 0x117   : > { %7224 = vmatmul.mubr.msk.bf16.gmra.mrb[60].mxu0 %vm370_vm2, %v9213_v51  ;;  %7233 = vmatmul.mubr.msk.bf16.gmra.mrb[60].mxu1 %vm370_vm2, %v9213_v51 }
 0x118   : > { %1385 = vmatprep.mubr.bf16.mxu0 %v9032_v16  ;;  %1621 = vmatprep.mubr.bf16.mxu1 %v9032_v16 }
 0x11f   : > { %7235 = vmatmul.mubr.msk.bf16.vlgmr.msra.gmra.mrb[64].mxu0 %vm370_vm2, %v9155_v28  ;;  %7244 = vmatmul.mubr.msk.bf16.vlgmr.msra.gmra.mrb[64].mxu1 %vm370_vm2, %v9155_v28 }
 0x120   : > { %1826 = vmatpush1.bf16.msra.mxu0 %v1820_v60  ;;  %2062 = vmatpush1.bf16.msra.mxu1 %v2056_v61 }
 0x121   : > { %1395 = vmatprep.mubr.bf16.mxu0 %v9032_v16  ;;  %1631 = vmatprep.mubr.bf16.mxu1 %v9032_v16 }
 0x127   : > { %7236 = vmatmul.mubr.msk.bf16.gmra.mrb[68].mxu0 %vm370_vm2, %v9165_v33  ;;  %7245 = vmatmul.mubr.msk.bf16.gmra.mrb[68].mxu1 %vm370_vm2, %v9165_v33 }
 0x128   : > { %1405 = vmatprep.mubr.bf16.mxu0 %v9032_v16  ;;  %1641 = vmatprep.mubr.bf16.mxu1 %v9032_v16 }
 0x12f   : > { %7237 = vmatmul.mubr.msk.bf16.gmra.mrb[72].mxu0 %vm370_vm2, %v9173_v36  ;;  %7246 = vmatmul.mubr.msk.bf16.gmra.mrb[72].mxu1 %vm370_vm2, %v9173_v36 }
 0x130   : > { %1415 = vmatprep.mubr.bf16.mxu0 %v9032_v16  ;;  %1651 = vmatprep.mubr.bf16.mxu1 %v9032_v16 }
 0x137   : > { %7238 = vmatmul.mubr.msk.bf16.gmra.mrb[76].mxu0 %vm370_vm2, %v9181_v39  ;;  %7247 = vmatmul.mubr.msk.bf16.gmra.mrb[76].mxu1 %vm370_vm2, %v9181_v39 }
 0x138   : > { %1425 = vmatprep.mubr.bf16.mxu0 %v9032_v16  ;;  %1661 = vmatprep.mubr.bf16.mxu1 %v9032_v16 }
 0x13f   : > { %7239 = vmatmul.mubr.msk.bf16.gmra.mrb[80].mxu0 %vm370_vm2, %v9189_v42  ;;  %7248 = vmatmul.mubr.msk.bf16.gmra.mrb[80].mxu1 %vm370_vm2, %v9189_v42 }
 0x140   : > { %1435 = vmatprep.mubr.bf16.mxu0 %v9032_v16  ;;  %1671 = vmatprep.mubr.bf16.mxu1 %v9032_v16 }
 0x147   : > { %7240 = vmatmul.mubr.msk.bf16.gmra.mrb[84].mxu0 %vm370_vm2, %v9197_v45  ;;  %7249 = vmatmul.mubr.msk.bf16.gmra.mrb[84].mxu1 %vm370_vm2, %v9197_v45 }
 0x148   : > { %1445 = vmatprep.mubr.bf16.mxu0 %v9032_v16  ;;  %1681 = vmatprep.mubr.bf16.mxu1 %v9032_v16 }
 0x14f   : > { %7241 = vmatmul.mubr.msk.bf16.gmra.mrb[88].mxu0 %vm370_vm2, %v9205_v48  ;;  %7250 = vmatmul.mubr.msk.bf16.gmra.mrb[88].mxu1 %vm370_vm2, %v9205_v48 }
 0x150   : > { %1455 = vmatprep.mubr.bf16.mxu0 %v9032_v16  ;;  %1691 = vmatprep.mubr.bf16.mxu1 %v9032_v16 }
 0x157   : > { %7242 = vmatmul.mubr.msk.bf16.gmra.mrb[92].mxu0 %vm370_vm2, %v9213_v51  ;;  %7251 = vmatmul.mubr.msk.bf16.gmra.mrb[92].mxu1 %vm370_vm2, %v9213_v51 }
 0x158   : > { %1857 = vmatprep.mubr.bf16.mxu0 %v9032_v16  ;;  %2093 = vmatprep.mubr.bf16.mxu1 %v9032_v16 }
 0x15f   : > { %7253 = vmatmul.mubr.msk.bf16.vlgmr.msra.gmra.mrb[96].mxu0 %vm370_vm2, %v9155_v28  ;;  %7262 = vmatmul.mubr.msk.bf16.vlgmr.msra.gmra.mrb[96].mxu1 %vm370_vm2, %v9155_v28 }
 0x160   : > { %1867 = vmatprep.mubr.bf16.mxu0 %v9032_v16  ;;  %2103 = vmatprep.mubr.bf16.mxu1 %v9032_v16 }
 0x167   : > { %7254 = vmatmul.mubr.msk.bf16.gmra.mrb[100].mxu0 %vm370_vm2, %v9165_v33  ;;  %7263 = vmatmul.mubr.msk.bf16.gmra.mrb[100].mxu1 %vm370_vm2, %v9165_v33 }
 0x168   : > { %1877 = vmatprep.mubr.bf16.mxu0 %v9032_v16  ;;  %2113 = vmatprep.mubr.bf16.mxu1 %v9032_v16 }
 0x16f   : > { %7255 = vmatmul.mubr.msk.bf16.gmra.mrb[104].mxu0 %vm370_vm2, %v9173_v36  ;;  %7264 = vmatmul.mubr.msk.bf16.gmra.mrb[104].mxu1 %vm370_vm2, %v9173_v36 }
 0x170   : > { %1887 = vmatprep.mubr.bf16.mxu0 %v9032_v16  ;;  %2123 = vmatprep.mubr.bf16.mxu1 %v9032_v16 }
 0x172   : > { %v439_v8 = vpop.f32.mrb[0].mxu0  ;;  %v679_v9 = vpop.f32.mrb[0].mxu1 }
 0x173   : > { %v440_v10 = vadd.f32 %v439_v8, %v9363_v4  ;;  %v680_v11 = vadd.f32 %v679_v9, %v9366_v5  ;;  %v441_v12 = vpop.f32.mrb[1].mxu0  ;;  %v681_v13 = vpop.f32.mrb[1].mxu1 }
 0x174   : > { %v442_v14 = vadd.f32 %v441_v12, %v9369_v6  ;;  %v682_v15 = vadd.f32 %v681_v13, %v9372_v7  ;;  %v443_v17 = vpop.f32.mrb[2].mxu0  ;;  %v683_v18 = vpop.f32.mrb[2].mxu1 }
 0x175   : > { %v444_v19 = vadd.f32 %v443_v17, %v9363_v4  ;;  %v684_v20 = vadd.f32 %v683_v18, %v9366_v5  ;;  %v445_v21 = vpop.f32.mrb[3].mxu0  ;;  %v685_v22 = vpop.f32.mrb[3].mxu1  ;;  %v518_v25 = vmax.f32 %v440_v10, 0.0  ;;  %v758_v26 = vmax.f32 %v680_v11, 0.0 }
 0x176   : > { %v446_v23 = vadd.f32 %v445_v21, %v9369_v6  ;;  %v686_v24 = vadd.f32 %v685_v22, %v9372_v7  ;;  %v519_v29 = vmax.f32 %v442_v14, 0.0  ;;  %v759_v30 = vmax.f32 %v682_v15, 0.0 }
 0x177   : > { %v520_v27 = vmax.f32 %v444_v19, 0.0  ;;  %v760_v28 = vmax.f32 %v684_v20, 0.0  ;;  %7256 = vmatmul.mubr.msk.bf16.gmra.mrb[108].mxu0 %vm370_vm2, %v9181_v39  ;;  %7265 = vmatmul.mubr.msk.bf16.gmra.mrb[108].mxu1 %vm370_vm2, %v9181_v39 }
 0x178   : > { %v521_v31 = vmax.f32 %v446_v23, 0.0  ;;  %v761_v32 = vmax.f32 %v686_v24, 0.0  ;;  %1897 = vmatprep.mubr.bf16.mxu0 %v9032_v16  ;;  %2133 = vmatprep.mubr.bf16.mxu1 %v9032_v16 }
 0x179   : > { %v551_v33 = vadd.f32 %v520_v27, %v518_v25  ;;  %v791_v34 = vadd.f32 %v760_v28, %v758_v26 }
 0x17a   : > { %v572_v35 = vadd.f32 %v521_v31, %v519_v29  ;;  %v812_v36 = vadd.f32 %v761_v32, %v759_v30  ;;  %v449_v37 = vpop.f32.mrb[4].mxu0  ;;  %v689_v38 = vpop.f32.mrb[4].mxu1 }
 0x17b   : > { %v450_v40 = vadd.f32 %v449_v37, %v9363_v4  ;;  %v690_v41 = vadd.f32 %v689_v38, %v9366_v5  ;;  %v451_v43 = vpop.f32.mrb[5].mxu0  ;;  %v691_v39 = vpop.f32.mrb[5].mxu1 }
 0x17c   : > { %v452_v44 = vadd.f32 %v451_v43, %v9369_v6  ;;  %v692_v46 = vadd.f32 %v691_v39, %v9372_v7  ;;  %v453_v47 = vpop.f32.mrb[6].mxu0  ;;  %v693_v49 = vpop.f32.mrb[6].mxu1 }
 0x17d   : > { %v522_v50 = vmax.f32 %v450_v40, 0.0  ;;  %v762_v52 = vmax.f32 %v690_v41, 0.0  ;;  %v454_v53 = vadd.f32 %v453_v47, %v9363_v4  ;;  %v694_v54 = vadd.f32 %v693_v49, %v9366_v5  ;;  %v455_v55 = vpop.f32.mrb[7].mxu0  ;;  %v695_v56 = vpop.f32.mrb[7].mxu1 }
 0x17e   : > { %v523_v57 = vmax.f32 %v452_v44, 0.0  ;;  %v763_v58 = vmax.f32 %v692_v46, 0.0  ;;  %v456_v59 = vadd.f32 %v455_v55, %v9369_v6  ;;  %v696_v60 = vadd.f32 %v695_v56, %v9372_v7 }
 0x17f   : > { %v552_v61 = vadd.f32 %v551_v33, %v522_v50  ;;  %v792_v1 = vadd.f32 %v791_v34, %v762_v52  ;;  %v524_v2 = vmax.f32 %v454_v53, 0.0  ;;  %v764_v8 = vmax.f32 %v694_v54, 0.0  ;;  %7257 = vmatmul.mubr.msk.bf16.gmra.mrb[112].mxu0 %vm370_vm2, %v9189_v42  ;;  %7266 = vmatmul.mubr.msk.bf16.gmra.mrb[112].mxu1 %vm370_vm2, %v9189_v42 }
 0x180   : > { %v573_v9 = vadd.f32 %v572_v35, %v523_v57  ;;  %v813_v10 = vadd.f32 %v812_v36, %v763_v58  ;;  %v525_v11 = vmax.f32 %v456_v59, 0.0  ;;  %v765_v12 = vmax.f32 %v696_v60, 0.0  ;;  %1907 = vmatprep.mubr.bf16.mxu0 %v9032_v16  ;;  %2143 = vmatprep.mubr.bf16.mxu1 %v9032_v16 }
 0x181   : > { %v553_v13 = vadd.f32 %v552_v61, %v524_v2  ;;  %v793_v14 = vadd.f32 %v792_v1, %v764_v8 }
 0x182   : > { %v574_v15 = vadd.f32 %v573_v9, %v525_v11  ;;  %v814_v17 = vadd.f32 %v813_v10, %v765_v12  ;;  %v459_v18 = vpop.f32.mrb[8].mxu0  ;;  %v699_v19 = vpop.f32.mrb[8].mxu1 }
 0x183   : > { %v460_v20 = vadd.f32 %v459_v18, %v9363_v4  ;;  %v700_v21 = vadd.f32 %v699_v19, %v9366_v5  ;;  %v461_v22 = vpop.f32.mrb[9].mxu0  ;;  %v701_v42 = vpop.f32.mrb[9].mxu1 }
 0x184   : > { %v462_v23 = vadd.f32 %v461_v22, %v9369_v6  ;;  %v702_v24 = vadd.f32 %v701_v42, %v9372_v7  ;;  %v463_v25 = vpop.f32.mrb[10].mxu0  ;;  %v703_v26 = vpop.f32.mrb[10].mxu1 }
 0x185   : > { %v526_v27 = vmax.f32 %v460_v20, 0.0  ;;  %v766_v28 = vmax.f32 %v700_v21, 0.0  ;;  %v464_v29 = vadd.f32 %v463_v25, %v9363_v4  ;;  %v704_v30 = vadd.f32 %v703_v26, %v9366_v5  ;;  %v465_v31 = vpop.f32.mrb[11].mxu0  ;;  %v705_v32 = vpop.f32.mrb[11].mxu1 }
 0x186   : > { %v527_v33 = vmax.f32 %v462_v23, 0.0  ;;  %v767_v34 = vmax.f32 %v702_v24, 0.0  ;;  %v466_v35 = vadd.f32 %v465_v31, %v9369_v6  ;;  %v706_v36 = vadd.f32 %v705_v32, %v9372_v7 }
 0x187   : > { %v554_v37 = vadd.f32 %v553_v13, %v526_v27  ;;  %v794_v38 = vadd.f32 %v793_v14, %v766_v28  ;;  %v528_v40 = vmax.f32 %v464_v29, 0.0  ;;  %v768_v41 = vmax.f32 %v704_v30, 0.0  ;;  %7258 = vmatmul.mubr.msk.bf16.gmra.mrb[116].mxu0 %vm370_vm2, %v9197_v45  ;;  %7267 = vmatmul.mubr.msk.bf16.gmra.mrb[116].mxu1 %vm370_vm2, %v9197_v45 }
 0x188   : > { %v575_v43 = vadd.f32 %v574_v15, %v527_v33  ;;  %v815_v39 = vadd.f32 %v814_v17, %v767_v34  ;;  %v529_v44 = vmax.f32 %v466_v35, 0.0  ;;  %v769_v46 = vmax.f32 %v706_v36, 0.0  ;;  %1917 = vmatprep.mubr.bf16.mxu0 %v9032_v16  ;;  %2153 = vmatprep.mubr.bf16.mxu1 %v9032_v16 }
 0x189   : > { %v555_v47 = vadd.f32 %v554_v37, %v528_v40  ;;  %v795_v49 = vadd.f32 %v794_v38, %v768_v41 }
 0x18a   : > { %v576_v50 = vadd.f32 %v575_v43, %v529_v44  ;;  %v816_v52 = vadd.f32 %v815_v39, %v769_v46  ;;  %v469_v53 = vpop.f32.mrb[12].mxu0  ;;  %v709_v54 = vpop.f32.mrb[12].mxu1 }
 0x18b   : > { %v470_v55 = vadd.f32 %v469_v53, %v9363_v4  ;;  %v710_v56 = vadd.f32 %v709_v54, %v9366_v5  ;;  %v471_v57 = vpop.f32.mrb[13].mxu0  ;;  %v711_v45 = vpop.f32.mrb[13].mxu1 }
 0x18c   : > { %v472_v58 = vadd.f32 %v471_v57, %v9369_v6  ;;  %v712_v59 = vadd.f32 %v711_v45, %v9372_v7  ;;  %v473_v60 = vpop.f32.mrb[14].mxu0  ;;  %v713_v61 = vpop.f32.mrb[14].mxu1 }
 0x18d   : > { %v530_v1 = vmax.f32 %v470_v55, 0.0  ;;  %v770_v2 = vmax.f32 %v710_v56, 0.0  ;;  %v474_v8 = vadd.f32 %v473_v60, %v9363_v4  ;;  %v714_v9 = vadd.f32 %v713_v61, %v9366_v5  ;;  %v475_v10 = vpop.f32.mrb[15].mxu0  ;;  %v715_v11 = vpop.f32.mrb[15].mxu1 }
 0x18e   : > { %v531_v12 = vmax.f32 %v472_v58, 0.0  ;;  %v771_v13 = vmax.f32 %v712_v59, 0.0  ;;  %v476_v14 = vadd.f32 %v475_v10, %v9369_v6  ;;  %v716_v15 = vadd.f32 %v715_v11, %v9372_v7 }
 0x18f   : > { %v556_v17 = vadd.f32 %v555_v47, %v530_v1  ;;  %v796_v18 = vadd.f32 %v795_v49, %v770_v2  ;;  %v532_v19 = vmax.f32 %v474_v8, 0.0  ;;  %v772_v20 = vmax.f32 %v714_v9, 0.0  ;;  %7259 = vmatmul.mubr.msk.bf16.gmra.mrb[120].mxu0 %vm370_vm2, %v9205_v48  ;;  %7268 = vmatmul.mubr.msk.bf16.gmra.mrb[120].mxu1 %vm370_vm2, %v9205_v48 }
 0x190   : > { %v577_v21 = vadd.f32 %v576_v50, %v531_v12  ;;  %v817_v22 = vadd.f32 %v816_v52, %v771_v13  ;;  %v533_v42 = vmax.f32 %v476_v14, 0.0  ;;  %v773_v23 = vmax.f32 %v716_v15, 0.0  ;;  %1927 = vmatprep.mubr.bf16.mxu0 %v9032_v16  ;;  %2163 = vmatprep.mubr.bf16.mxu1 %v9032_v16 }
 0x191   : > { %v557_v24 = vadd.f32 %v556_v17, %v532_v19  ;;  %v797_v25 = vadd.f32 %v796_v18, %v772_v20 }
 0x192   : > { %v578_v26 = vadd.f32 %v577_v21, %v533_v42  ;;  %v818_v27 = vadd.f32 %v817_v22, %v773_v23  ;;  %v479_v28 = vpop.f32.mrb[16].mxu0  ;;  %v719_v29 = vpop.f32.mrb[16].mxu1 }
 0x193   : > { %v480_v30 = vadd.f32 %v479_v28, %v9363_v4  ;;  %v720_v31 = vadd.f32 %v719_v29, %v9366_v5  ;;  %v481_v32 = vpop.f32.mrb[17].mxu0  ;;  %v721_v48 = vpop.f32.mrb[17].mxu1 }
 0x194   : > { %v482_v33 = vadd.f32 %v481_v32, %v9369_v6  ;;  %v722_v34 = vadd.f32 %v721_v48, %v9372_v7  ;;  %v483_v35 = vpop.f32.mrb[18].mxu0  ;;  %v723_v36 = vpop.f32.mrb[18].mxu1 }
 0x195   : > { %v534_v37 = vmax.f32 %v480_v30, 0.0  ;;  %v774_v16 = vmax.f32 %v720_v31, 0.0  ;;  %v484_v38 = vadd.f32 %v483_v35, %v9363_v4  ;;  %v724_v40 = vadd.f32 %v723_v36, %v9366_v5  ;;  %v485_v41 = vpop.f32.mrb[19].mxu0  ;;  %v725_v43 = vpop.f32.mrb[19].mxu1 }
 0x196   : > { %v535_v39 = vmax.f32 %v482_v33, 0.0  ;;  %v775_v44 = vmax.f32 %v722_v34, 0.0  ;;  %v486_v46 = vadd.f32 %v485_v41, %v9369_v6  ;;  %v726_v47 = vadd.f32 %v725_v43, %v9372_v7 }
 0x197   : > { %v558_v49 = vadd.f32 %v557_v24, %v534_v37  ;;  %v798_v50 = vadd.f32 %v797_v25, %v774_v16  ;;  %v536_v52 = vmax.f32 %v484_v38, 0.0  ;;  %v776_v53 = vmax.f32 %v724_v40, 0.0  ;;  %7260 = vmatmul.mubr.msk.bf16.gmra.mrb[124].mxu0 %vm370_vm2, %v9213_v51  ;;  %7269 = vmatmul.mubr.msk.bf16.gmra.mrb[124].mxu1 %vm370_vm2, %v9213_v51 }
 0x198   : > { %v579_v54 = vadd.f32 %v578_v26, %v535_v39  ;;  %v819_v55 = vadd.f32 %v818_v27, %v775_v44  ;;  %v537_v56 = vmax.f32 %v486_v46, 0.0  ;;  %v777_v57 = vmax.f32 %v726_v47, 0.0 }
 0x199   : > { %v559_v45 = vadd.f32 %v558_v49, %v536_v52  ;;  %v799_v58 = vadd.f32 %v798_v50, %v776_v53  ;;  %v9033_v46 = vmov 1966171168  }
 0x19a   : > { %v580_v59 = vadd.f32 %v579_v54, %v537_v56  ;;  %v820_v60 = vadd.f32 %v819_v55, %v777_v57  ;;  %v489_v61 = vpop.f32.mrb[20].mxu0  ;;  %v729_v1 = vpop.f32.mrb[20].mxu1  ;;  %v597_v47 = vunpack.c.l.s4 %v9033_v46 }
 0x19b   : > { %v490_v2 = vadd.f32 %v489_v61, %v9363_v4  ;;  %v730_v8 = vadd.f32 %v729_v1, %v9366_v5  ;;  %v491_v9 = vpop.f32.mrb[21].mxu0  ;;  %v731_v10 = vpop.f32.mrb[21].mxu1 }
 0x19c   : > { %v492_v11 = vadd.f32 %v491_v9, %v9369_v6  ;;  %v732_v51 = vadd.f32 %v731_v10, %v9372_v7  ;;  %v493_v12 = vpop.f32.mrb[22].mxu0  ;;  %v733_v13 = vpop.f32.mrb[22].mxu1 }
 0x19d   : > { %v538_v14 = vmax.f32 %v490_v2, 0.0  ;;  %v778_v15 = vmax.f32 %v730_v8, 0.0  ;;  %v494_v17 = vadd.f32 %v493_v12, %v9363_v4  ;;  %v734_v18 = vadd.f32 %v733_v13, %v9366_v5  ;;  %v495_v19 = vpop.f32.mrb[23].mxu0  ;;  %v735_v20 = vpop.f32.mrb[23].mxu1  ;;  %v854_v2 = vld [vmem:[%s11774_s2 + $0x4] sm:$0x3] }
 0x19e   : > { %v539_v21 = vmax.f32 %v492_v11, 0.0  ;;  %v779_v22 = vmax.f32 %v732_v51, 0.0  ;;  %v496_v42 = vadd.f32 %v495_v19, %v9369_v6  ;;  %v736_v23 = vadd.f32 %v735_v20, %v9372_v7  ;;  %v1090_v51 = vld [vmem:[%s11774_s2 + $0x6] sm:$0x3] }
 0x19f   : > { %v560_v24 = vadd.f32 %v559_v45, %v538_v14  ;;  %v800_v25 = vadd.f32 %v799_v58, %v778_v15  ;;  %v540_v26 = vmax.f32 %v494_v17, 0.0  ;;  %v780_v27 = vmax.f32 %v734_v18, 0.0 }
 0x1a0   : > { %v581_v28 = vadd.f32 %v580_v59, %v539_v21  ;;  %v821_v29 = vadd.f32 %v820_v60, %v779_v22  ;;  %v541_v30 = vmax.f32 %v496_v42, 0.0  ;;  %v781_v31 = vmax.f32 %v736_v23, 0.0 }
 0x1a1   : > { %v561_v32 = vadd.f32 %v560_v24, %v540_v26  ;;  %v801_v48 = vadd.f32 %v800_v25, %v780_v27  ;;  %v9467_v19 = vrot.slane %v854_v2, %v9347_v0  ;;  %v9472_v23 = vrot.slane %v1090_v51, %v9347_v0 }
 0x1a2   : > { %v582_v33 = vadd.f32 %v581_v28, %v541_v30  ;;  %v822_v34 = vadd.f32 %v821_v29, %v781_v31  ;;  %v499_v35 = vpop.f32.mrb[24].mxu0  ;;  %v739_v36 = vpop.f32.mrb[24].mxu1  ;;  %v9475_v24 = vrot.slane %v854_v2, %v9356_v3  ;;  %v598_v29 = vunpack.c.0.s8 %v597_v47 }
 0x1a3   : > { %v500_v37 = vadd.f32 %v499_v35, %v9363_v4  ;;  %v740_v16 = vadd.f32 %v739_v36, %v9366_v5  ;;  %v501_v38 = vpop.f32.mrb[25].mxu0  ;;  %v741_v40 = vpop.f32.mrb[25].mxu1  ;;  %v9480_v30 = vrot.slane %v1090_v51, %v9356_v3 }
 0x1a4   : > { %v502_v41 = vadd.f32 %v501_v38, %v9369_v6  ;;  %v742_v43 = vadd.f32 %v741_v40, %v9372_v7  ;;  %v503_v39 = vpop.f32.mrb[26].mxu0  ;;  %v743_v44 = vpop.f32.mrb[26].mxu1 }
 0x1a5   : > { %v542_v49 = vmax.f32 %v500_v37, 0.0  ;;  %v782_v50 = vmax.f32 %v740_v16, 0.0  ;;  %v504_v52 = vadd.f32 %v503_v39, %v9363_v4  ;;  %v744_v53 = vadd.f32 %v743_v44, %v9366_v5  ;;  %v505_v54 = vpop.f32.mrb[27].mxu0  ;;  %v745_v55 = vpop.f32.mrb[27].mxu1 }
 0x1a6   : > { %v543_v56 = vmax.f32 %v502_v41, 0.0  ;;  %v783_v57 = vmax.f32 %v742_v43, 0.0  ;;  %v506_v45 = vadd.f32 %v505_v54, %v9369_v6  ;;  %v746_v58 = vadd.f32 %v745_v55, %v9372_v7 }
 0x1a7   : > { %v562_v59 = vadd.f32 %v561_v32, %v542_v49  ;;  %v802_v60 = vadd.f32 %v801_v48, %v782_v50  ;;  %v544_v61 = vmax.f32 %v504_v52, 0.0  ;;  %v784_v1 = vmax.f32 %v744_v53, 0.0 }
 0x1a8   : > { %v583_v8 = vadd.f32 %v582_v33, %v543_v56  ;;  %v823_v9 = vadd.f32 %v822_v34, %v783_v57  ;;  %v545_v10 = vmax.f32 %v506_v45, 0.0  ;;  %v785_v11 = vmax.f32 %v746_v58, 0.0 }
 0x1a9   : > { %v563_v12 = vadd.f32 %v562_v59, %v544_v61  ;;  %v803_v13 = vadd.f32 %v802_v60, %v784_v1 }
 0x1aa   : > { %v584_v14 = vadd.f32 %v583_v8, %v545_v10  ;;  %v824_v15 = vadd.f32 %v823_v9, %v785_v11  ;;  %v509_v17 = vpop.f32.mrb[28].mxu0  ;;  %v749_v18 = vpop.f32.mrb[28].mxu1 }
 0x1ab   : > { %v510_v20 = vadd.f32 %v509_v17, %v9363_v4  ;;  %v750_v21 = vadd.f32 %v749_v18, %v9366_v5  ;;  %v511_v22 = vpop.f32.mrb[29].mxu0  ;;  %v751_v42 = vpop.f32.mrb[29].mxu1 }
 0x1ac   : > { %v512_v25 = vadd.f32 %v511_v22, %v9369_v6  ;;  %v752_v26 = vadd.f32 %v751_v42, %v9372_v7  ;;  %v513_v27 = vpop.f32.mrb[30].mxu0  ;;  %v753_v28 = vpop.f32.mrb[30].mxu1 }
 0x1ad   : > { %v546_v31 = vmax.f32 %v510_v20, 0.0  ;;  %v786_v32 = vmax.f32 %v750_v21, 0.0  ;;  %v514_v48 = vadd.f32 %v513_v27, %v9363_v4  ;;  %v754_v33 = vadd.f32 %v753_v28, %v9366_v5  ;;  %v515_v34 = vpop.f32.mrb[31].mxu0  ;;  %v755_v35 = vpop.f32.mrb[31].mxu1 }
 0x1ae   : > { %v547_v36 = vmax.f32 %v512_v25, 0.0  ;;  %v787_v37 = vmax.f32 %v752_v26, 0.0  ;;  %v516_v16 = vadd.f32 %v515_v34, %v9369_v6  ;;  %v756_v38 = vadd.f32 %v755_v35, %v9372_v7 }
 0x1af   : > { %v564_v40 = vadd.f32 %v563_v12, %v546_v31  ;;  %v804_v41 = vadd.f32 %v803_v13, %v786_v32  ;;  %v548_v43 = vmax.f32 %v514_v48, 0.0  ;;  %v788_v39 = vmax.f32 %v754_v33, 0.0 }
 0x1b0   : > { %v585_v44 = vadd.f32 %v584_v14, %v547_v36  ;;  %v825_v46 = vadd.f32 %v824_v15, %v787_v37  ;;  %v549_v47 = vmax.f32 %v516_v16, 0.0  ;;  %v789_v49 = vmax.f32 %v756_v38, 0.0 }
 0x1b1   : > { %v565_v50 = vadd.f32 %v564_v40, %v548_v43  ;;  %v805_v4 = vadd.f32 %v804_v41, %v788_v39  ;;  %v9487_v5 = vsub.s32 %v598_v29, %v9342_v63 }
 0x1b2   : > { %v586_v52 = vadd.f32 %v585_v44, %v549_v47  ;;  %v826_v53 = vadd.f32 %v825_v46, %v789_v49  ;;  %v915_v54 = vpop.f32.mrb[32].mxu0  ;;  %v1151_v55 = vpop.f32.mrb[32].mxu1 }
 0x1b3   : > { %v566_v6 = vrot.slane %v565_v50, 4  ;;  %v806_v56 = vrot.slane %v805_v4, 4  ;;  %v916_v7 = vadd.f32 %v915_v54, %v9467_v19  ;;  %v1152_v57 = vadd.f32 %v1151_v55, %v9472_v23  ;;  %v917_v45 = vpop.f32.mrb[33].mxu0  ;;  %v1153_v58 = vpop.f32.mrb[33].mxu1  ;;  %v8035_v55 = vld [vmem:[%s11775_s3 + $0x8] ss:$16 sps:$4 sm:$0xff] (!%p7270_p8)  }
 0x1b4   : > { %v587_v59 = vrot.slane %v586_v52, 4  ;;  %v827_v60 = vrot.slane %v826_v53, 4  ;;  %v918_v61 = vadd.f32 %v917_v45, %v9475_v24  ;;  %v1154_v1 = vadd.f32 %v1153_v58, %v9480_v30  ;;  %v919_v2 = vpop.f32.mrb[34].mxu0  ;;  %v1155_v8 = vpop.f32.mrb[34].mxu1 }
 0x1b5   : > { %v567_v9 = vadd.f32 %v566_v6, %v565_v50  ;;  %v807_v10 = vadd.f32 %v806_v56, %v805_v4  ;;  %v994_v11 = vmax.f32 %v916_v7, 0.0  ;;  %v1230_v51 = vmax.f32 %v1152_v57, 0.0  ;;  %v921_v12 = vpop.f32.mrb[35].mxu0  ;;  %v1157_v13 = vpop.f32.mrb[35].mxu1 }
 0x1b6   : > { %v588_v14 = vadd.f32 %v587_v59, %v586_v52  ;;  %v828_v15 = vadd.f32 %v827_v60, %v826_v53  ;;  %v995_v17 = vmax.f32 %v918_v61, 0.0  ;;  %v1231_v18 = vmax.f32 %v1154_v1, 0.0 }
 0x1b7   : > { %v568_v20 = vrot.slane %v567_v9, 2  ;;  %v808_v21 = vrot.slane %v807_v10, 2  ;;  %v920_v22 = vadd.f32 %v919_v2, %v9467_v19  ;;  %v1156_v42 = vadd.f32 %v1155_v8, %v9472_v23 }
 0x1b8   : > { %v589_v25 = vrot.slane %v588_v14, 2  ;;  %v829_v26 = vrot.slane %v828_v15, 2  ;;  %v922_v27 = vadd.f32 %v921_v12, %v9475_v24  ;;  %v1158_v28 = vadd.f32 %v1157_v13, %v9480_v30 }
 0x1b9   : > { %v569_v29 = vadd.f32 %v568_v20, %v567_v9  ;;  %v809_v31 = vadd.f32 %v808_v21, %v807_v10  ;;  %v996_v32 = vmax.f32 %v920_v22, 0.0  ;;  %v1232_v48 = vmax.f32 %v1156_v42, 0.0 }
 0x1ba   : > { %v590_v33 = vadd.f32 %v589_v25, %v588_v14  ;;  %v830_v34 = vadd.f32 %v829_v26, %v828_v15  ;;  %v997_v35 = vmax.f32 %v922_v27, 0.0  ;;  %v1233_v36 = vmax.f32 %v1158_v28, 0.0  ;;  %v925_v37 = vpop.f32.mrb[36].mxu0  ;;  %v1161_v16 = vpop.f32.mrb[36].mxu1  ;;  %v550_v25 = vld [vmem:[#allocation2] sm:$0x3] }
 0x1bb   : > { %v570_v38 = vrot.slane %v569_v29, 1  ;;  %v810_v40 = vrot.slane %v809_v31, 1  ;;  %v1027_v41 = vadd.f32 %v996_v32, %v994_v11  ;;  %v1263_v43 = vadd.f32 %v1232_v48, %v1230_v51  ;;  %v927_v39 = vpop.f32.mrb[37].mxu0  ;;  %v1163_v44 = vpop.f32.mrb[37].mxu1  ;;  %v790_v26 = vld [vmem:[#allocation2 + $0x2] sm:$0x3] }
 0x1bc   : > { %v591_v46 = vrot.slane %v590_v33, 1  ;;  %v831_v47 = vrot.slane %v830_v34, 1  ;;  %v1048_v49 = vadd.f32 %v997_v35, %v995_v17  ;;  %v1284_v50 = vadd.f32 %v1233_v36, %v1231_v18  ;;  %v929_v4 = vpop.f32.mrb[38].mxu0  ;;  %v1165_v52 = vpop.f32.mrb[38].mxu1 }
 0x1bd   : > { %v571_v53 = vadd.f32 %v570_v38, %v569_v29  ;;  %v811_v54 = vadd.f32 %v810_v40, %v809_v31  ;;  %v926_v6 = vadd.f32 %v925_v37, %v9467_v19  ;;  %v1162_v56 = vadd.f32 %v1161_v16, %v9472_v23  ;;  %v931_v7 = vpop.f32.mrb[39].mxu0  ;;  %v1167_v57 = vpop.f32.mrb[39].mxu1 }
 0x1be   : > { %v592_v45 = vadd.f32 %v591_v46, %v590_v33  ;;  %v832_v58 = vadd.f32 %v831_v47, %v830_v34  ;;  %v928_v59 = vadd.f32 %v927_v39, %v9475_v24  ;;  %v1164_v60 = vadd.f32 %v1163_v44, %v9480_v30 }
 0x1bf   : > { %v998_v61 = vmax.f32 %v926_v6, 0.0  ;;  %v1234_v1 = vmax.f32 %v1162_v56, 0.0  ;;  %v930_v2 = vadd.f32 %v929_v4, %v9467_v19  ;;  %v1166_v8 = vadd.f32 %v1165_v52, %v9472_v23 }
 0x1c0   : > { %v595_v9 = vcombine.low %v571_v53, %v592_v45  ;;  %v835_v10 = vcombine.low %v811_v54, %v832_v58  ;;  %v999_v11 = vmax.f32 %v928_v59, 0.0  ;;  %v1235_v51 = vmax.f32 %v1164_v60, 0.0 }
 0x1c1   : > { %v1028_v12 = vadd.f32 %v1027_v41, %v998_v61  ;;  %v1264_v13 = vadd.f32 %v1263_v43, %v1234_v1  ;;  %v1000_v14 = vmax.f32 %v930_v2, 0.0  ;;  %v1236_v15 = vmax.f32 %v1166_v8, 0.0 }
 0x1c2   : > { %v602_v17 = vrot.slane %v595_v9, %v9487_v5  ;;  %v842_v18 = vrot.slane %v835_v10, %v9487_v5  ;;  %v1049_v20 = vadd.f32 %v1048_v49, %v999_v11  ;;  %v1285_v21 = vadd.f32 %v1284_v50, %v1235_v51  ;;  %v935_v22 = vpop.f32.mrb[40].mxu0  ;;  %v1171_v42 = vpop.f32.mrb[40].mxu1 }
 0x1c3   : > { %v1029_v27 = vadd.f32 %v1028_v12, %v1000_v14  ;;  %v1265_v28 = vadd.f32 %v1264_v13, %v1236_v15  ;;  %v932_v29 = vadd.f32 %v931_v7, %v9475_v24  ;;  %v1168_v31 = vadd.f32 %v1167_v57, %v9480_v30  ;;  %v937_v32 = vpop.f32.mrb[41].mxu0  ;;  %v1173_v48 = vpop.f32.mrb[41].mxu1 }
 0x1c4   : > { %v609_v33 = vrot.slane %v602_v17, %v9487_v5  ;;  %v849_v34 = vrot.slane %v842_v18, %v9487_v5  ;;  %v936_v35 = vadd.f32 %v935_v22, %v9467_v19  ;;  %v1172_v36 = vadd.f32 %v1171_v42, %v9472_v23  ;;  %v939_v37 = vpop.f32.mrb[42].mxu0  ;;  %v1175_v16 = vpop.f32.mrb[42].mxu1 }
 0x1c5   : > { %v1001_v38 = vmax.f32 %v932_v29, 0.0  ;;  %v1237_v40 = vmax.f32 %v1168_v31, 0.0  ;;  %v938_v41 = vadd.f32 %v937_v32, %v9475_v24  ;;  %v1174_v43 = vadd.f32 %v1173_v48, %v9480_v30  ;;  %v941_v39 = vpop.f32.mrb[43].mxu0  ;;  %v1177_v44 = vpop.f32.mrb[43].mxu1 }
 0x1c6   : > { %v611_v46 = vadd.f32 %v609_v33, %v550_v25  ;;  %v851_v47 = vadd.f32 %v849_v34, %v790_v26  ;;  %v1002_v49 = vmax.f32 %v936_v35, 0.0  ;;  %v1238_v50 = vmax.f32 %v1172_v36, 0.0 }
 0x1c7   : > { %v1050_v4 = vadd.f32 %v1049_v20, %v1001_v38  ;;  %v1286_v52 = vadd.f32 %v1285_v21, %v1237_v40  ;;  %v1003_v53 = vmax.f32 %v938_v41, 0.0  ;;  %v1239_v54 = vmax.f32 %v1174_v43, 0.0 }
 0x1c8   : > { %616 = vst.msk [vmem:[#allocation2] sm:$0x3] %vm9498_vm3, %v611_v46  ;;  %852 = vst.msk [vmem:[#allocation2 + $0x2] sm:$0x3] %vm9498_vm3, %v851_v47  ;;  %v1030_v6 = vadd.f32 %v1029_v27, %v1002_v49  ;;  %v1266_v56 = vadd.f32 %v1265_v28, %v1238_v50  ;;  %v940_v7 = vadd.f32 %v939_v37, %v9467_v19 }
 0x1c9   : > { %v1176_v57 = vadd.f32 %v1175_v16, %v9472_v23  ;;  %v1051_v45 = vadd.f32 %v1050_v4, %v1003_v53  ;;  %v1287_v58 = vadd.f32 %v1286_v52, %v1239_v54  ;;  %v942_v59 = vadd.f32 %v941_v39, %v9475_v24 }
 0x1ca   : > { %v1178_v60 = vadd.f32 %v1177_v44, %v9480_v30  ;;  %v1004_v61 = vmax.f32 %v940_v7, 0.0  ;;  %v945_v2 = vpop.f32.mrb[44].mxu0  ;;  %v1181_v8 = vpop.f32.mrb[44].mxu1 }
 0x1cb   : > { %v1240_v1 = vmax.f32 %v1176_v57, 0.0  ;;  %v1005_v9 = vmax.f32 %v942_v59, 0.0  ;;  %v946_v11 = vadd.f32 %v945_v2, %v9467_v19  ;;  %v1182_v51 = vadd.f32 %v1181_v8, %v9472_v23  ;;  %v947_v12 = vpop.f32.mrb[45].mxu0  ;;  %v1183_v13 = vpop.f32.mrb[45].mxu1 }
 0x1cc   : > { %v1241_v10 = vmax.f32 %v1178_v60, 0.0  ;;  %v1031_v14 = vadd.f32 %v1030_v6, %v1004_v61  ;;  %v948_v17 = vadd.f32 %v947_v12, %v9475_v24  ;;  %v1184_v18 = vadd.f32 %v1183_v13, %v9480_v30  ;;  %v949_v20 = vpop.f32.mrb[46].mxu0  ;;  %v1185_v21 = vpop.f32.mrb[46].mxu1 }
 0x1cd   : > { %v1267_v15 = vadd.f32 %v1266_v56, %v1240_v1  ;;  %v1052_v22 = vadd.f32 %v1051_v45, %v1005_v9  ;;  %v1006_v25 = vmax.f32 %v946_v11, 0.0  ;;  %v1242_v26 = vmax.f32 %v1182_v51, 0.0  ;;  %v951_v27 = vpop.f32.mrb[47].mxu0  ;;  %v1187_v28 = vpop.f32.mrb[47].mxu1 }
 0x1ce   : > { %v1288_v42 = vadd.f32 %v1287_v58, %v1241_v10  ;;  %v1007_v29 = vmax.f32 %v948_v17, 0.0  ;;  %v1243_v31 = vmax.f32 %v1184_v18, 0.0  ;;  %v950_v32 = vadd.f32 %v949_v20, %v9467_v19 }
 0x1cf   : > { %v1186_v48 = vadd.f32 %v1185_v21, %v9472_v23  ;;  %v1032_v33 = vadd.f32 %v1031_v14, %v1006_v25  ;;  %v1268_v34 = vadd.f32 %v1267_v15, %v1242_v26  ;;  %v952_v35 = vadd.f32 %v951_v27, %v9475_v24 }
 0x1d0   : > { %v1188_v36 = vadd.f32 %v1187_v28, %v9480_v30  ;;  %v1053_v37 = vadd.f32 %v1052_v22, %v1007_v29  ;;  %v1289_v16 = vadd.f32 %v1288_v42, %v1243_v31  ;;  %v1008_v38 = vmax.f32 %v950_v32, 0.0 }
 0x1d1   : > { %v1244_v40 = vmax.f32 %v1186_v48, 0.0  ;;  %v1009_v41 = vmax.f32 %v952_v35, 0.0 }
 0x1d2   : > { %v1245_v43 = vmax.f32 %v1188_v36, 0.0  ;;  %v1033_v39 = vadd.f32 %v1032_v33, %v1008_v38  ;;  %v955_v46 = vpop.f32.mrb[48].mxu0  ;;  %v1191_v47 = vpop.f32.mrb[48].mxu1 }
 0x1d3   : > { %v1269_v44 = vadd.f32 %v1268_v34, %v1244_v40  ;;  %v1054_v49 = vadd.f32 %v1053_v37, %v1009_v41  ;;  %v956_v4 = vadd.f32 %v955_v46, %v9467_v19  ;;  %v1192_v52 = vadd.f32 %v1191_v47, %v9472_v23  ;;  %v957_v53 = vpop.f32.mrb[49].mxu0  ;;  %v1193_v54 = vpop.f32.mrb[49].mxu1 }
 0x1d4   : > { %v1290_v50 = vadd.f32 %v1289_v16, %v1245_v43  ;;  %v958_v6 = vadd.f32 %v957_v53, %v9475_v24  ;;  %v1194_v56 = vadd.f32 %v1193_v54, %v9480_v30  ;;  %v959_v7 = vpop.f32.mrb[50].mxu0  ;;  %v1195_v57 = vpop.f32.mrb[50].mxu1 }
 0x1d5   : > { %v1010_v45 = vmax.f32 %v956_v4, 0.0  ;;  %v1246_v58 = vmax.f32 %v1192_v52, 0.0  ;;  %v960_v59 = vadd.f32 %v959_v7, %v9467_v19  ;;  %v1196_v60 = vadd.f32 %v1195_v57, %v9472_v23  ;;  %v961_v61 = vpop.f32.mrb[51].mxu0  ;;  %v1197_v1 = vpop.f32.mrb[51].mxu1 }
 0x1d6   : > { %v1011_v2 = vmax.f32 %v958_v6, 0.0  ;;  %v1247_v8 = vmax.f32 %v1194_v56, 0.0  ;;  %v962_v9 = vadd.f32 %v961_v61, %v9475_v24  ;;  %v1198_v10 = vadd.f32 %v1197_v1, %v9480_v30 }
 0x1d7   : > { %v1034_v11 = vadd.f32 %v1033_v39, %v1010_v45  ;;  %v1270_v51 = vadd.f32 %v1269_v44, %v1246_v58  ;;  %v1012_v12 = vmax.f32 %v960_v59, 0.0  ;;  %v1248_v13 = vmax.f32 %v1196_v60, 0.0 }
 0x1d8   : > { %v1055_v14 = vadd.f32 %v1054_v49, %v1011_v2  ;;  %v1291_v15 = vadd.f32 %v1290_v50, %v1247_v8  ;;  %v1013_v17 = vmax.f32 %v962_v9, 0.0  ;;  %v1249_v18 = vmax.f32 %v1198_v10, 0.0 }
 0x1d9   : > { %v1035_v20 = vadd.f32 %v1034_v11, %v1012_v12  ;;  %v1271_v21 = vadd.f32 %v1270_v51, %v1248_v13 }
 0x1da   : > { %v1056_v22 = vadd.f32 %v1055_v14, %v1013_v17  ;;  %v1292_v42 = vadd.f32 %v1291_v15, %v1249_v18  ;;  %v965_v25 = vpop.f32.mrb[52].mxu0  ;;  %v1201_v26 = vpop.f32.mrb[52].mxu1 }
 0x1db   : > { %v966_v27 = vadd.f32 %v965_v25, %v9467_v19  ;;  %v1202_v28 = vadd.f32 %v1201_v26, %v9472_v23  ;;  %v967_v29 = vpop.f32.mrb[53].mxu0  ;;  %v1203_v31 = vpop.f32.mrb[53].mxu1 }
 0x1dc   : > { %v968_v32 = vadd.f32 %v967_v29, %v9475_v24  ;;  %v1204_v48 = vadd.f32 %v1203_v31, %v9480_v30  ;;  %v969_v33 = vpop.f32.mrb[54].mxu0  ;;  %v1205_v34 = vpop.f32.mrb[54].mxu1 }
 0x1dd   : > { %v1014_v35 = vmax.f32 %v966_v27, 0.0  ;;  %v1250_v36 = vmax.f32 %v1202_v28, 0.0  ;;  %v970_v37 = vadd.f32 %v969_v33, %v9467_v19  ;;  %v1206_v16 = vadd.f32 %v1205_v34, %v9472_v23  ;;  %v971_v38 = vpop.f32.mrb[55].mxu0  ;;  %v1207_v40 = vpop.f32.mrb[55].mxu1 }
 0x1de   : > { %v1015_v41 = vmax.f32 %v968_v32, 0.0  ;;  %v1251_v43 = vmax.f32 %v1204_v48, 0.0  ;;  %v972_v39 = vadd.f32 %v971_v38, %v9475_v24  ;;  %v1208_v44 = vadd.f32 %v1207_v40, %v9480_v30  ;;  %v1326_v32 = vld [vmem:[%s11774_s2 + $0x8] sm:$0x3]  ;;  %v1562_v48 = vld [vmem:[%s11774_s2 + $0xa] sm:$0x3] }
 0x1df   : > { %v1036_v46 = vadd.f32 %v1035_v20, %v1014_v35  ;;  %v1272_v47 = vadd.f32 %v1271_v21, %v1250_v36  ;;  %v1016_v49 = vmax.f32 %v970_v37, 0.0  ;;  %v1252_v50 = vmax.f32 %v1206_v16, 0.0 }
 0x1e0   : > { %v1057_v4 = vadd.f32 %v1056_v22, %v1015_v41  ;;  %v1293_v52 = vadd.f32 %v1292_v42, %v1251_v43  ;;  %v1017_v53 = vmax.f32 %v972_v39, 0.0  ;;  %v1253_v54 = vmax.f32 %v1208_v44, 0.0 }
 0x1e1   : > { %v1037_v6 = vadd.f32 %v1036_v46, %v1016_v49  ;;  %v1273_v56 = vadd.f32 %v1272_v47, %v1252_v50  ;;  %v9567_v39 = vrot.slane %v1326_v32, %v9347_v0  ;;  %v9570_v44 = vrot.slane %v1562_v48, %v9347_v0 }
 0x1e2   : > { %v1058_v7 = vadd.f32 %v1057_v4, %v1017_v53  ;;  %v1294_v57 = vadd.f32 %v1293_v52, %v1253_v54  ;;  %v975_v45 = vpop.f32.mrb[56].mxu0  ;;  %v1211_v58 = vpop.f32.mrb[56].mxu1  ;;  %v9575_v4 = vrot.slane %v1326_v32, %v9356_v3  ;;  %v9578_v52 = vrot.slane %v1562_v48, %v9356_v3 }
 0x1e3   : > { %v976_v59 = vadd.f32 %v975_v45, %v9467_v19  ;;  %v1212_v60 = vadd.f32 %v1211_v58, %v9472_v23  ;;  %v977_v61 = vpop.f32.mrb[57].mxu0  ;;  %v1213_v1 = vpop.f32.mrb[57].mxu1 }
 0x1e4   : > { %v978_v2 = vadd.f32 %v977_v61, %v9475_v24  ;;  %v1214_v8 = vadd.f32 %v1213_v1, %v9480_v30  ;;  %v979_v9 = vpop.f32.mrb[58].mxu0  ;;  %v1215_v10 = vpop.f32.mrb[58].mxu1 }
 0x1e5   : > { %v1018_v11 = vmax.f32 %v976_v59, 0.0  ;;  %v1254_v51 = vmax.f32 %v1212_v60, 0.0  ;;  %v980_v12 = vadd.f32 %v979_v9, %v9467_v19  ;;  %v1216_v13 = vadd.f32 %v1215_v10, %v9472_v23  ;;  %v981_v14 = vpop.f32.mrb[59].mxu0  ;;  %v1217_v15 = vpop.f32.mrb[59].mxu1 }
 0x1e6   : > { %v1019_v17 = vmax.f32 %v978_v2, 0.0  ;;  %v1255_v18 = vmax.f32 %v1214_v8, 0.0  ;;  %v982_v20 = vadd.f32 %v981_v14, %v9475_v24  ;;  %v1218_v21 = vadd.f32 %v1217_v15, %v9480_v30 }
 0x1e7   : > { %v1038_v22 = vadd.f32 %v1037_v6, %v1018_v11  ;;  %v1274_v42 = vadd.f32 %v1273_v56, %v1254_v51  ;;  %v1020_v25 = vmax.f32 %v980_v12, 0.0  ;;  %v1256_v26 = vmax.f32 %v1216_v13, 0.0 }
 0x1e8   : > { %v1059_v27 = vadd.f32 %v1058_v7, %v1019_v17  ;;  %v1295_v28 = vadd.f32 %v1294_v57, %v1255_v18  ;;  %v1021_v29 = vmax.f32 %v982_v20, 0.0  ;;  %v1257_v31 = vmax.f32 %v1218_v21, 0.0 }
 0x1e9   : > { %v1039_v33 = vadd.f32 %v1038_v22, %v1020_v25  ;;  %v1275_v34 = vadd.f32 %v1274_v42, %v1256_v26 }
 0x1ea   : > { %v1060_v35 = vadd.f32 %v1059_v27, %v1021_v29  ;;  %v1296_v36 = vadd.f32 %v1295_v28, %v1257_v31  ;;  %v985_v37 = vpop.f32.mrb[60].mxu0  ;;  %v1221_v16 = vpop.f32.mrb[60].mxu1 }
 0x1eb   : > { %v986_v38 = vadd.f32 %v985_v37, %v9467_v19  ;;  %v1222_v40 = vadd.f32 %v1221_v16, %v9472_v23  ;;  %v987_v41 = vpop.f32.mrb[61].mxu0  ;;  %v1223_v43 = vpop.f32.mrb[61].mxu1 }
 0x1ec   : > { %v988_v46 = vadd.f32 %v987_v41, %v9475_v24  ;;  %v1224_v47 = vadd.f32 %v1223_v43, %v9480_v30  ;;  %v989_v49 = vpop.f32.mrb[62].mxu0  ;;  %v1225_v50 = vpop.f32.mrb[62].mxu1 }
 0x1ed   : > { %v1022_v53 = vmax.f32 %v986_v38, 0.0  ;;  %v1258_v54 = vmax.f32 %v1222_v40, 0.0  ;;  %v990_v6 = vadd.f32 %v989_v49, %v9467_v19  ;;  %v1226_v56 = vadd.f32 %v1225_v50, %v9472_v23  ;;  %v991_v7 = vpop.f32.mrb[63].mxu0  ;;  %v1227_v57 = vpop.f32.mrb[63].mxu1 }
 0x1ee   : > { %v1023_v45 = vmax.f32 %v988_v46, 0.0  ;;  %v1259_v58 = vmax.f32 %v1224_v47, 0.0  ;;  %v992_v59 = vadd.f32 %v991_v7, %v9475_v24  ;;  %v1228_v60 = vadd.f32 %v1227_v57, %v9480_v30 }
 0x1ef   : > { %v1040_v61 = vadd.f32 %v1039_v33, %v1022_v53  ;;  %v1276_v1 = vadd.f32 %v1275_v34, %v1258_v54  ;;  %v1024_v2 = vmax.f32 %v990_v6, 0.0  ;;  %v1260_v8 = vmax.f32 %v1226_v56, 0.0 }
 0x1f0   : > { %v1061_v9 = vadd.f32 %v1060_v35, %v1023_v45  ;;  %v1297_v10 = vadd.f32 %v1296_v36, %v1259_v58  ;;  %v1025_v11 = vmax.f32 %v992_v59, 0.0  ;;  %v1261_v51 = vmax.f32 %v1228_v60, 0.0 }
 0x1f1   : > { %v1041_v12 = vadd.f32 %v1040_v61, %v1024_v2  ;;  %v1277_v19 = vadd.f32 %v1276_v1, %v1260_v8 }
 0x1f2   : > { %v1062_v13 = vadd.f32 %v1061_v9, %v1025_v11  ;;  %v1298_v23 = vadd.f32 %v1297_v10, %v1261_v51  ;;  %v1387_v14 = vpop.f32.mrb[64].mxu0  ;;  %v1623_v15 = vpop.f32.mrb[64].mxu1 }
 0x1f3   : > { %v1042_v17 = vrot.slane %v1041_v12, 4  ;;  %v1278_v18 = vrot.slane %v1277_v19, 4  ;;  %v1388_v24 = vadd.f32 %v1387_v14, %v9567_v39  ;;  %v1624_v30 = vadd.f32 %v1623_v15, %v9570_v44  ;;  %v1389_v20 = vpop.f32.mrb[65].mxu0  ;;  %v1625_v21 = vpop.f32.mrb[65].mxu1 }
 0x1f4   : > { %v1063_v22 = vrot.slane %v1062_v13, 4  ;;  %v1299_v42 = vrot.slane %v1298_v23, 4  ;;  %v1390_v25 = vadd.f32 %v1389_v20, %v9575_v4  ;;  %v1626_v26 = vadd.f32 %v1625_v21, %v9578_v52  ;;  %v1391_v27 = vpop.f32.mrb[66].mxu0  ;;  %v1627_v28 = vpop.f32.mrb[66].mxu1 }
 0x1f5   : > { %v1043_v29 = vadd.f32 %v1042_v17, %v1041_v12  ;;  %v1279_v31 = vadd.f32 %v1278_v18, %v1277_v19  ;;  %v1466_v32 = vmax.f32 %v1388_v24, 0.0  ;;  %v1702_v48 = vmax.f32 %v1624_v30, 0.0  ;;  %v1393_v33 = vpop.f32.mrb[67].mxu0  ;;  %v1629_v34 = vpop.f32.mrb[67].mxu1 }
 0x1f6   : > { %v1064_v35 = vadd.f32 %v1063_v22, %v1062_v13  ;;  %v1300_v36 = vadd.f32 %v1299_v42, %v1298_v23  ;;  %v1467_v37 = vmax.f32 %v1390_v25, 0.0  ;;  %v1703_v16 = vmax.f32 %v1626_v26, 0.0 }
 0x1f7   : > { %v1044_v38 = vrot.slane %v1043_v29, 2  ;;  %v1280_v40 = vrot.slane %v1279_v31, 2  ;;  %v1392_v41 = vadd.f32 %v1391_v27, %v9567_v39  ;;  %v1628_v43 = vadd.f32 %v1627_v28, %v9570_v44 }
 0x1f8   : > { %v1065_v46 = vrot.slane %v1064_v35, 2  ;;  %v1301_v47 = vrot.slane %v1300_v36, 2  ;;  %v1394_v49 = vadd.f32 %v1393_v33, %v9575_v4  ;;  %v1630_v50 = vadd.f32 %v1629_v34, %v9578_v52 }
 0x1f9   : > { %v1045_v53 = vadd.f32 %v1044_v38, %v1043_v29  ;;  %v1281_v54 = vadd.f32 %v1280_v40, %v1279_v31  ;;  %v1468_v6 = vmax.f32 %v1392_v41, 0.0  ;;  %v1704_v56 = vmax.f32 %v1628_v43, 0.0 }
 0x1fa   : > { %v1066_v7 = vadd.f32 %v1065_v46, %v1064_v35  ;;  %v1302_v57 = vadd.f32 %v1301_v47, %v1300_v36  ;;  %v1469_v45 = vmax.f32 %v1394_v49, 0.0  ;;  %v1705_v58 = vmax.f32 %v1630_v50, 0.0  ;;  %v1397_v59 = vpop.f32.mrb[68].mxu0  ;;  %v1633_v60 = vpop.f32.mrb[68].mxu1  ;;  %v1026_v46 = vld [vmem:[#allocation2 + $0x4] sm:$0x3] }
 0x1fb   : > { %v1046_v61 = vrot.slane %v1045_v53, 1  ;;  %v1282_v1 = vrot.slane %v1281_v54, 1  ;;  %v1499_v2 = vadd.f32 %v1468_v6, %v1466_v32  ;;  %v1735_v8 = vadd.f32 %v1704_v56, %v1702_v48  ;;  %v1399_v9 = vpop.f32.mrb[69].mxu0  ;;  %v1635_v10 = vpop.f32.mrb[69].mxu1  ;;  %v1262_v47 = vld [vmem:[#allocation2 + $0x6] sm:$0x3] }
 0x1fc   : > { %v1067_v11 = vrot.slane %v1066_v7, 1  ;;  %v1303_v51 = vrot.slane %v1302_v57, 1  ;;  %v1520_v12 = vadd.f32 %v1469_v45, %v1467_v37  ;;  %v1756_v19 = vadd.f32 %v1705_v58, %v1703_v16  ;;  %v1401_v13 = vpop.f32.mrb[70].mxu0  ;;  %v1637_v23 = vpop.f32.mrb[70].mxu1 }
 0x1fd   : > { %v1047_v14 = vadd.f32 %v1046_v61, %v1045_v53  ;;  %v1283_v15 = vadd.f32 %v1282_v1, %v1281_v54  ;;  %v1398_v17 = vadd.f32 %v1397_v59, %v9567_v39  ;;  %v1634_v18 = vadd.f32 %v1633_v60, %v9570_v44  ;;  %v1403_v24 = vpop.f32.mrb[71].mxu0  ;;  %v1639_v30 = vpop.f32.mrb[71].mxu1 }
 0x1fe   : > { %v1068_v20 = vadd.f32 %v1067_v11, %v1066_v7  ;;  %v1304_v21 = vadd.f32 %v1303_v51, %v1302_v57  ;;  %v1400_v22 = vadd.f32 %v1399_v9, %v9575_v4  ;;  %v1636_v42 = vadd.f32 %v1635_v10, %v9578_v52 }
 0x1ff   : > { %v1470_v25 = vmax.f32 %v1398_v17, 0.0  ;;  %v1706_v26 = vmax.f32 %v1634_v18, 0.0  ;;  %v1402_v27 = vadd.f32 %v1401_v13, %v9567_v39  ;;  %v1638_v28 = vadd.f32 %v1637_v23, %v9570_v44 }
 0x200   : > { %v1071_v29 = vcombine.low %v1047_v14, %v1068_v20  ;;  %v1307_v31 = vcombine.low %v1283_v15, %v1304_v21  ;;  %v1471_v32 = vmax.f32 %v1400_v22, 0.0  ;;  %v1707_v48 = vmax.f32 %v1636_v42, 0.0 }
 0x201   : > { %v1500_v33 = vadd.f32 %v1499_v2, %v1470_v25  ;;  %v1736_v34 = vadd.f32 %v1735_v8, %v1706_v26  ;;  %v1472_v35 = vmax.f32 %v1402_v27, 0.0  ;;  %v1708_v36 = vmax.f32 %v1638_v28, 0.0 }
 0x202   : > { %v1078_v37 = vrot.slane %v1071_v29, %v9487_v5  ;;  %v1314_v16 = vrot.slane %v1307_v31, %v9487_v5  ;;  %v1521_v38 = vadd.f32 %v1520_v12, %v1471_v32  ;;  %v1757_v40 = vadd.f32 %v1756_v19, %v1707_v48  ;;  %v1407_v41 = vpop.f32.mrb[72].mxu0  ;;  %v1643_v43 = vpop.f32.mrb[72].mxu1 }
 0x203   : > { %v1501_v49 = vadd.f32 %v1500_v33, %v1472_v35  ;;  %v1737_v50 = vadd.f32 %v1736_v34, %v1708_v36  ;;  %v1404_v53 = vadd.f32 %v1403_v24, %v9575_v4  ;;  %v1640_v54 = vadd.f32 %v1639_v30, %v9578_v52  ;;  %v1409_v6 = vpop.f32.mrb[73].mxu0  ;;  %v1645_v56 = vpop.f32.mrb[73].mxu1 }
 0x204   : > { %v1085_v7 = vrot.slane %v1078_v37, %v9487_v5  ;;  %v1321_v57 = vrot.slane %v1314_v16, %v9487_v5  ;;  %v1408_v45 = vadd.f32 %v1407_v41, %v9567_v39  ;;  %v1644_v58 = vadd.f32 %v1643_v43, %v9570_v44  ;;  %v1411_v59 = vpop.f32.mrb[74].mxu0  ;;  %v1647_v60 = vpop.f32.mrb[74].mxu1 }
 0x205   : > { %v1473_v61 = vmax.f32 %v1404_v53, 0.0  ;;  %v1709_v1 = vmax.f32 %v1640_v54, 0.0  ;;  %v1410_v2 = vadd.f32 %v1409_v6, %v9575_v4  ;;  %v1646_v8 = vadd.f32 %v1645_v56, %v9578_v52  ;;  %v1413_v9 = vpop.f32.mrb[75].mxu0  ;;  %v1649_v10 = vpop.f32.mrb[75].mxu1 }
 0x206   : > { %v1087_v11 = vadd.f32 %v1085_v7, %v1026_v46  ;;  %v1323_v51 = vadd.f32 %v1321_v57, %v1262_v47  ;;  %v1474_v12 = vmax.f32 %v1408_v45, 0.0  ;;  %v1710_v19 = vmax.f32 %v1644_v58, 0.0 }
 0x207   : > { %v1522_v13 = vadd.f32 %v1521_v38, %v1473_v61  ;;  %v1758_v23 = vadd.f32 %v1757_v40, %v1709_v1  ;;  %v1475_v14 = vmax.f32 %v1410_v2, 0.0  ;;  %v1711_v15 = vmax.f32 %v1646_v8, 0.0 }
 0x208   : > { %1088 = vst.msk [vmem:[#allocation2 + $0x4] sm:$0x3] %vm9498_vm3, %v1087_v11  ;;  %1324 = vst.msk [vmem:[#allocation2 + $0x6] sm:$0x3] %vm9498_vm3, %v1323_v51  ;;  %v1502_v17 = vadd.f32 %v1501_v49, %v1474_v12  ;;  %v1738_v18 = vadd.f32 %v1737_v50, %v1710_v19  ;;  %v1412_v24 = vadd.f32 %v1411_v59, %v9567_v39 }
 0x209   : > { %v1648_v30 = vadd.f32 %v1647_v60, %v9570_v44  ;;  %v1523_v20 = vadd.f32 %v1522_v13, %v1475_v14  ;;  %v1759_v21 = vadd.f32 %v1758_v23, %v1711_v15  ;;  %v1414_v22 = vadd.f32 %v1413_v9, %v9575_v4 }
 0x20a   : > { %v1650_v42 = vadd.f32 %v1649_v10, %v9578_v52  ;;  %v1476_v25 = vmax.f32 %v1412_v24, 0.0  ;;  %v1417_v27 = vpop.f32.mrb[76].mxu0  ;;  %v1653_v28 = vpop.f32.mrb[76].mxu1 }
 0x20b   : > { %v1712_v26 = vmax.f32 %v1648_v30, 0.0  ;;  %v1477_v29 = vmax.f32 %v1414_v22, 0.0  ;;  %v1418_v32 = vadd.f32 %v1417_v27, %v9567_v39  ;;  %v1654_v48 = vadd.f32 %v1653_v28, %v9570_v44  ;;  %v1419_v33 = vpop.f32.mrb[77].mxu0  ;;  %v1655_v34 = vpop.f32.mrb[77].mxu1 }
 0x20c   : > { %v1713_v31 = vmax.f32 %v1650_v42, 0.0  ;;  %v1503_v35 = vadd.f32 %v1502_v17, %v1476_v25  ;;  %v1420_v37 = vadd.f32 %v1419_v33, %v9575_v4  ;;  %v1656_v16 = vadd.f32 %v1655_v34, %v9578_v52  ;;  %v1421_v38 = vpop.f32.mrb[78].mxu0  ;;  %v1657_v40 = vpop.f32.mrb[78].mxu1 }
 0x20d   : > { %v1739_v36 = vadd.f32 %v1738_v18, %v1712_v26  ;;  %v1524_v41 = vadd.f32 %v1523_v20, %v1477_v29  ;;  %v1478_v46 = vmax.f32 %v1418_v32, 0.0  ;;  %v1714_v47 = vmax.f32 %v1654_v48, 0.0  ;;  %v1423_v49 = vpop.f32.mrb[79].mxu0  ;;  %v1659_v50 = vpop.f32.mrb[79].mxu1 }
 0x20e   : > { %v1760_v43 = vadd.f32 %v1759_v21, %v1713_v31  ;;  %v1479_v53 = vmax.f32 %v1420_v37, 0.0  ;;  %v1715_v54 = vmax.f32 %v1656_v16, 0.0  ;;  %v1422_v6 = vadd.f32 %v1421_v38, %v9567_v39 }
 0x20f   : > { %v1658_v56 = vadd.f32 %v1657_v40, %v9570_v44  ;;  %v1504_v7 = vadd.f32 %v1503_v35, %v1478_v46  ;;  %v1740_v57 = vadd.f32 %v1739_v36, %v1714_v47  ;;  %v1424_v45 = vadd.f32 %v1423_v49, %v9575_v4 }
 0x210   : > { %v1660_v58 = vadd.f32 %v1659_v50, %v9578_v52  ;;  %v1525_v59 = vadd.f32 %v1524_v41, %v1479_v53  ;;  %v1761_v60 = vadd.f32 %v1760_v43, %v1715_v54  ;;  %v1480_v61 = vmax.f32 %v1422_v6, 0.0 }
 0x211   : > { %v1716_v1 = vmax.f32 %v1658_v56, 0.0  ;;  %v1481_v2 = vmax.f32 %v1424_v45, 0.0 }
 0x212   : > { %v1717_v8 = vmax.f32 %v1660_v58, 0.0  ;;  %v1505_v9 = vadd.f32 %v1504_v7, %v1480_v61  ;;  %v1427_v11 = vpop.f32.mrb[80].mxu0  ;;  %v1663_v51 = vpop.f32.mrb[80].mxu1 }
 0x213   : > { %v1741_v10 = vadd.f32 %v1740_v57, %v1716_v1  ;;  %v1526_v12 = vadd.f32 %v1525_v59, %v1481_v2  ;;  %v1428_v13 = vadd.f32 %v1427_v11, %v9567_v39  ;;  %v1664_v23 = vadd.f32 %v1663_v51, %v9570_v44  ;;  %v1429_v14 = vpop.f32.mrb[81].mxu0  ;;  %v1665_v15 = vpop.f32.mrb[81].mxu1 }
 0x214   : > { %v1762_v19 = vadd.f32 %v1761_v60, %v1717_v8  ;;  %v1430_v17 = vadd.f32 %v1429_v14, %v9575_v4  ;;  %v1666_v18 = vadd.f32 %v1665_v15, %v9578_v52  ;;  %v1431_v24 = vpop.f32.mrb[82].mxu0  ;;  %v1667_v30 = vpop.f32.mrb[82].mxu1 }
 0x215   : > { %v1482_v20 = vmax.f32 %v1428_v13, 0.0  ;;  %v1718_v21 = vmax.f32 %v1664_v23, 0.0  ;;  %v1432_v22 = vadd.f32 %v1431_v24, %v9567_v39  ;;  %v1668_v42 = vadd.f32 %v1667_v30, %v9570_v44  ;;  %v1433_v25 = vpop.f32.mrb[83].mxu0  ;;  %v1669_v26 = vpop.f32.mrb[83].mxu1 }
 0x216   : > { %v1483_v27 = vmax.f32 %v1430_v17, 0.0  ;;  %v1719_v28 = vmax.f32 %v1666_v18, 0.0  ;;  %v1434_v29 = vadd.f32 %v1433_v25, %v9575_v4  ;;  %v1670_v31 = vadd.f32 %v1669_v26, %v9578_v52 }
 0x217   : > { %v1506_v32 = vadd.f32 %v1505_v9, %v1482_v20  ;;  %v1742_v48 = vadd.f32 %v1741_v10, %v1718_v21  ;;  %v1484_v33 = vmax.f32 %v1432_v22, 0.0  ;;  %v1720_v34 = vmax.f32 %v1668_v42, 0.0 }
 0x218   : > { %v1527_v35 = vadd.f32 %v1526_v12, %v1483_v27  ;;  %v1763_v36 = vadd.f32 %v1762_v19, %v1719_v28  ;;  %v1485_v37 = vmax.f32 %v1434_v29, 0.0  ;;  %v1721_v16 = vmax.f32 %v1670_v31, 0.0 }
 0x219   : > { %v1507_v38 = vadd.f32 %v1506_v32, %v1484_v33  ;;  %v1743_v40 = vadd.f32 %v1742_v48, %v1720_v34 }
 0x21a   : > { %v1528_v41 = vadd.f32 %v1527_v35, %v1485_v37  ;;  %v1764_v43 = vadd.f32 %v1763_v36, %v1721_v16  ;;  %v1437_v46 = vpop.f32.mrb[84].mxu0  ;;  %v1673_v47 = vpop.f32.mrb[84].mxu1 }
 0x21b   : > { %v1438_v49 = vadd.f32 %v1437_v46, %v9567_v39  ;;  %v1674_v50 = vadd.f32 %v1673_v47, %v9570_v44  ;;  %v1439_v53 = vpop.f32.mrb[85].mxu0  ;;  %v1675_v54 = vpop.f32.mrb[85].mxu1 }
 0x21c   : > { %v1440_v6 = vadd.f32 %v1439_v53, %v9575_v4  ;;  %v1676_v56 = vadd.f32 %v1675_v54, %v9578_v52  ;;  %v1441_v7 = vpop.f32.mrb[86].mxu0  ;;  %v1677_v57 = vpop.f32.mrb[86].mxu1 }
 0x21d   : > { %v1486_v45 = vmax.f32 %v1438_v49, 0.0  ;;  %v1722_v58 = vmax.f32 %v1674_v50, 0.0  ;;  %v1442_v59 = vadd.f32 %v1441_v7, %v9567_v39  ;;  %v1678_v60 = vadd.f32 %v1677_v57, %v9570_v44  ;;  %v1443_v61 = vpop.f32.mrb[87].mxu0  ;;  %v1679_v1 = vpop.f32.mrb[87].mxu1 }
 0x21e   : > { %v1487_v2 = vmax.f32 %v1440_v6, 0.0  ;;  %v1723_v8 = vmax.f32 %v1676_v56, 0.0  ;;  %v1444_v9 = vadd.f32 %v1443_v61, %v9575_v4  ;;  %v1680_v10 = vadd.f32 %v1679_v1, %v9578_v52  ;;  %v1798_v6 = vld [vmem:[%s11774_s2 + $0xc] sm:$0x3]  ;;  %v2034_v56 = vld [vmem:[%s11774_s2 + $0xe] sm:$0x3] }
 0x21f   : > { %v1508_v11 = vadd.f32 %v1507_v38, %v1486_v45  ;;  %v1744_v51 = vadd.f32 %v1743_v40, %v1722_v58  ;;  %v1488_v12 = vmax.f32 %v1442_v59, 0.0  ;;  %v1724_v19 = vmax.f32 %v1678_v60, 0.0 }
 0x220   : > { %v1529_v13 = vadd.f32 %v1528_v41, %v1487_v2  ;;  %v1765_v23 = vadd.f32 %v1764_v43, %v1723_v8  ;;  %v1489_v14 = vmax.f32 %v1444_v9, 0.0  ;;  %v1725_v15 = vmax.f32 %v1680_v10, 0.0 }
 0x221   : > { %v1509_v17 = vadd.f32 %v1508_v11, %v1488_v12  ;;  %v1745_v18 = vadd.f32 %v1744_v51, %v1724_v19  ;;  %v9657_v9 = vrot.slane %v1798_v6, %v9347_v0  ;;  %v9660_v10 = vrot.slane %v2034_v56, %v9347_v0 }
 0x222   : > { %v1530_v24 = vadd.f32 %v1529_v13, %v1489_v14  ;;  %v1766_v30 = vadd.f32 %v1765_v23, %v1725_v15  ;;  %v1447_v20 = vpop.f32.mrb[88].mxu0  ;;  %v1683_v21 = vpop.f32.mrb[88].mxu1  ;;  %v9665_v13 = vrot.slane %v1798_v6, %v9356_v3  ;;  %v9668_v23 = vrot.slane %v2034_v56, %v9356_v3 }
 0x223   : > { %v1448_v22 = vadd.f32 %v1447_v20, %v9567_v39  ;;  %v1684_v42 = vadd.f32 %v1683_v21, %v9570_v44  ;;  %v1449_v25 = vpop.f32.mrb[89].mxu0  ;;  %v1685_v26 = vpop.f32.mrb[89].mxu1 }
 0x224   : > { %v1450_v27 = vadd.f32 %v1449_v25, %v9575_v4  ;;  %v1686_v28 = vadd.f32 %v1685_v26, %v9578_v52  ;;  %v1451_v29 = vpop.f32.mrb[90].mxu0  ;;  %v1687_v31 = vpop.f32.mrb[90].mxu1 }
 0x225   : > { %v1490_v32 = vmax.f32 %v1448_v22, 0.0  ;;  %v1726_v48 = vmax.f32 %v1684_v42, 0.0  ;;  %v1452_v33 = vadd.f32 %v1451_v29, %v9567_v39  ;;  %v1688_v34 = vadd.f32 %v1687_v31, %v9570_v44  ;;  %v1453_v35 = vpop.f32.mrb[91].mxu0  ;;  %v1689_v36 = vpop.f32.mrb[91].mxu1 }
 0x226   : > { %v1491_v37 = vmax.f32 %v1450_v27, 0.0  ;;  %v1727_v16 = vmax.f32 %v1686_v28, 0.0  ;;  %v1454_v38 = vadd.f32 %v1453_v35, %v9575_v4  ;;  %v1690_v40 = vadd.f32 %v1689_v36, %v9578_v52 }
 0x227   : > { %v1510_v41 = vadd.f32 %v1509_v17, %v1490_v32  ;;  %v1746_v43 = vadd.f32 %v1745_v18, %v1726_v48  ;;  %v1492_v46 = vmax.f32 %v1452_v33, 0.0  ;;  %v1728_v47 = vmax.f32 %v1688_v34, 0.0 }
 0x228   : > { %v1531_v49 = vadd.f32 %v1530_v24, %v1491_v37  ;;  %v1767_v50 = vadd.f32 %v1766_v30, %v1727_v16  ;;  %v1493_v53 = vmax.f32 %v1454_v38, 0.0  ;;  %v1729_v54 = vmax.f32 %v1690_v40, 0.0 }
 0x229   : > { %v1511_v7 = vadd.f32 %v1510_v41, %v1492_v46  ;;  %v1747_v57 = vadd.f32 %v1746_v43, %v1728_v47 }
 0x22a   : > { %v1532_v45 = vadd.f32 %v1531_v49, %v1493_v53  ;;  %v1768_v58 = vadd.f32 %v1767_v50, %v1729_v54  ;;  %v1457_v59 = vpop.f32.mrb[92].mxu0  ;;  %v1693_v60 = vpop.f32.mrb[92].mxu1 }
 0x22b   : > { %v1458_v61 = vadd.f32 %v1457_v59, %v9567_v39  ;;  %v1694_v1 = vadd.f32 %v1693_v60, %v9570_v44  ;;  %v1459_v2 = vpop.f32.mrb[93].mxu0  ;;  %v1695_v8 = vpop.f32.mrb[93].mxu1 }
 0x22c   : > { %v1460_v11 = vadd.f32 %v1459_v2, %v9575_v4  ;;  %v1696_v51 = vadd.f32 %v1695_v8, %v9578_v52  ;;  %v1461_v12 = vpop.f32.mrb[94].mxu0  ;;  %v1697_v19 = vpop.f32.mrb[94].mxu1 }
 0x22d   : > { %v1494_v14 = vmax.f32 %v1458_v61, 0.0  ;;  %v1730_v15 = vmax.f32 %v1694_v1, 0.0  ;;  %v1462_v17 = vadd.f32 %v1461_v12, %v9567_v39  ;;  %v1698_v18 = vadd.f32 %v1697_v19, %v9570_v44  ;;  %v1463_v24 = vpop.f32.mrb[95].mxu0  ;;  %v1699_v30 = vpop.f32.mrb[95].mxu1 }
 0x22e   : > { %v1495_v20 = vmax.f32 %v1460_v11, 0.0  ;;  %v1731_v21 = vmax.f32 %v1696_v51, 0.0  ;;  %v1464_v22 = vadd.f32 %v1463_v24, %v9575_v4  ;;  %v1700_v42 = vadd.f32 %v1699_v30, %v9578_v52 }
 0x22f   : > { %v1512_v25 = vadd.f32 %v1511_v7, %v1494_v14  ;;  %v1748_v26 = vadd.f32 %v1747_v57, %v1730_v15  ;;  %v1496_v27 = vmax.f32 %v1462_v17, 0.0  ;;  %v1732_v28 = vmax.f32 %v1698_v18, 0.0 }
 0x230   : > { %v1533_v29 = vadd.f32 %v1532_v45, %v1495_v20  ;;  %v1769_v31 = vadd.f32 %v1768_v58, %v1731_v21  ;;  %v1497_v32 = vmax.f32 %v1464_v22, 0.0  ;;  %v1733_v48 = vmax.f32 %v1700_v42, 0.0 }
 0x231   : > { %v1513_v33 = vadd.f32 %v1512_v25, %v1496_v27  ;;  %v1749_v39 = vadd.f32 %v1748_v26, %v1732_v28 }
 0x232   : > { %v1534_v34 = vadd.f32 %v1533_v29, %v1497_v32  ;;  %v1770_v44 = vadd.f32 %v1769_v31, %v1733_v48  ;;  %v1859_v35 = vpop.f32.mrb[96].mxu0  ;;  %v2095_v36 = vpop.f32.mrb[96].mxu1 }
 0x233   : > { %v1514_v37 = vrot.slane %v1513_v33, 4  ;;  %v1750_v16 = vrot.slane %v1749_v39, 4  ;;  %v1860_v4 = vadd.f32 %v1859_v35, %v9657_v9  ;;  %v2096_v52 = vadd.f32 %v2095_v36, %v9660_v10  ;;  %v1861_v38 = vpop.f32.mrb[97].mxu0  ;;  %v2097_v40 = vpop.f32.mrb[97].mxu1 }
 0x234   : > { %v1535_v41 = vrot.slane %v1534_v34, 4  ;;  %v1771_v43 = vrot.slane %v1770_v44, 4  ;;  %v1862_v46 = vadd.f32 %v1861_v38, %v9665_v13  ;;  %v2098_v47 = vadd.f32 %v2097_v40, %v9668_v23  ;;  %v1863_v49 = vpop.f32.mrb[98].mxu0  ;;  %v2099_v50 = vpop.f32.mrb[98].mxu1 }
 0x235   : > { %v1515_v53 = vadd.f32 %v1514_v37, %v1513_v33  ;;  %v1751_v54 = vadd.f32 %v1750_v16, %v1749_v39  ;;  %v1938_v6 = vmax.f32 %v1860_v4, 0.0  ;;  %v2174_v56 = vmax.f32 %v2096_v52, 0.0  ;;  %v1865_v7 = vpop.f32.mrb[99].mxu0  ;;  %v2101_v57 = vpop.f32.mrb[99].mxu1 }
 0x236   : > { %v1536_v45 = vadd.f32 %v1535_v41, %v1534_v34  ;;  %v1772_v58 = vadd.f32 %v1771_v43, %v1770_v44  ;;  %v1939_v59 = vmax.f32 %v1862_v46, 0.0  ;;  %v2175_v60 = vmax.f32 %v2098_v47, 0.0 }
 0x237   : > { %v1516_v61 = vrot.slane %v1515_v53, 2  ;;  %v1752_v1 = vrot.slane %v1751_v54, 2  ;;  %v1864_v2 = vadd.f32 %v1863_v49, %v9657_v9  ;;  %v2100_v8 = vadd.f32 %v2099_v50, %v9660_v10 }
 0x238   : > { %v1537_v11 = vrot.slane %v1536_v45, 2  ;;  %v1773_v51 = vrot.slane %v1772_v58, 2  ;;  %v1866_v12 = vadd.f32 %v1865_v7, %v9665_v13  ;;  %v2102_v19 = vadd.f32 %v2101_v57, %v9668_v23 }
 0x239   : > { %v1517_v14 = vadd.f32 %v1516_v61, %v1515_v53  ;;  %v1753_v15 = vadd.f32 %v1752_v1, %v1751_v54  ;;  %v1940_v17 = vmax.f32 %v1864_v2, 0.0  ;;  %v2176_v18 = vmax.f32 %v2100_v8, 0.0 }
 0x23a   : > { %v1538_v24 = vadd.f32 %v1537_v11, %v1536_v45  ;;  %v1774_v30 = vadd.f32 %v1773_v51, %v1772_v58  ;;  %v1941_v20 = vmax.f32 %v1866_v12, 0.0  ;;  %v2177_v21 = vmax.f32 %v2102_v19, 0.0  ;;  %v1869_v22 = vpop.f32.mrb[100].mxu0  ;;  %v2105_v42 = vpop.f32.mrb[100].mxu1  ;;  %v1498_v11 = vld [vmem:[#allocation2 + $0x8] sm:$0x3] }
 0x23b   : > { %v1518_v25 = vrot.slane %v1517_v14, 1  ;;  %v1754_v26 = vrot.slane %v1753_v15, 1  ;;  %v1971_v27 = vadd.f32 %v1940_v17, %v1938_v6  ;;  %v2207_v28 = vadd.f32 %v2176_v18, %v2174_v56  ;;  %v1871_v29 = vpop.f32.mrb[101].mxu0  ;;  %v2107_v31 = vpop.f32.mrb[101].mxu1  ;;  %v1734_v51 = vld [vmem:[#allocation2 + $0xa] sm:$0x3] }
 0x23c   : > { %v1539_v32 = vrot.slane %v1538_v24, 1  ;;  %v1775_v48 = vrot.slane %v1774_v30, 1  ;;  %v1992_v33 = vadd.f32 %v1941_v20, %v1939_v59  ;;  %v2228_v39 = vadd.f32 %v2177_v21, %v2175_v60  ;;  %v1873_v34 = vpop.f32.mrb[102].mxu0  ;;  %v2109_v44 = vpop.f32.mrb[102].mxu1 }
 0x23d   : > { %v1519_v35 = vadd.f32 %v1518_v25, %v1517_v14  ;;  %v1755_v36 = vadd.f32 %v1754_v26, %v1753_v15  ;;  %v1870_v37 = vadd.f32 %v1869_v22, %v9657_v9  ;;  %v2106_v16 = vadd.f32 %v2105_v42, %v9660_v10  ;;  %v1875_v4 = vpop.f32.mrb[103].mxu0  ;;  %v2111_v52 = vpop.f32.mrb[103].mxu1 }
 0x23e   : > { %v1540_v38 = vadd.f32 %v1539_v32, %v1538_v24  ;;  %v1776_v40 = vadd.f32 %v1775_v48, %v1774_v30  ;;  %v1872_v41 = vadd.f32 %v1871_v29, %v9665_v13  ;;  %v2108_v43 = vadd.f32 %v2107_v31, %v9668_v23 }
 0x23f   : > { %v1942_v46 = vmax.f32 %v1870_v37, 0.0  ;;  %v2178_v47 = vmax.f32 %v2106_v16, 0.0  ;;  %v1874_v49 = vadd.f32 %v1873_v34, %v9657_v9  ;;  %v2110_v50 = vadd.f32 %v2109_v44, %v9660_v10 }
 0x240   : > { %v1543_v53 = vcombine.low %v1519_v35, %v1540_v38  ;;  %v1779_v54 = vcombine.low %v1755_v36, %v1776_v40  ;;  %v1943_v6 = vmax.f32 %v1872_v41, 0.0  ;;  %v2179_v56 = vmax.f32 %v2108_v43, 0.0 }
 0x241   : > { %v1972_v7 = vadd.f32 %v1971_v27, %v1942_v46  ;;  %v2208_v57 = vadd.f32 %v2207_v28, %v2178_v47  ;;  %v1944_v45 = vmax.f32 %v1874_v49, 0.0  ;;  %v2180_v58 = vmax.f32 %v2110_v50, 0.0 }
 0x242   : > { %v1550_v59 = vrot.slane %v1543_v53, %v9487_v5  ;;  %v1786_v60 = vrot.slane %v1779_v54, %v9487_v5  ;;  %v1993_v61 = vadd.f32 %v1992_v33, %v1943_v6  ;;  %v2229_v1 = vadd.f32 %v2228_v39, %v2179_v56  ;;  %v1879_v2 = vpop.f32.mrb[104].mxu0  ;;  %v2115_v8 = vpop.f32.mrb[104].mxu1 }
 0x243   : > { %v1973_v12 = vadd.f32 %v1972_v7, %v1944_v45  ;;  %v2209_v19 = vadd.f32 %v2208_v57, %v2180_v58  ;;  %v1876_v14 = vadd.f32 %v1875_v4, %v9665_v13  ;;  %v2112_v15 = vadd.f32 %v2111_v52, %v9668_v23  ;;  %v1881_v17 = vpop.f32.mrb[105].mxu0  ;;  %v2117_v18 = vpop.f32.mrb[105].mxu1 }
 0x244   : > { %v1557_v24 = vrot.slane %v1550_v59, %v9487_v5  ;;  %v1793_v30 = vrot.slane %v1786_v60, %v9487_v5  ;;  %v1880_v20 = vadd.f32 %v1879_v2, %v9657_v9  ;;  %v2116_v21 = vadd.f32 %v2115_v8, %v9660_v10  ;;  %v1883_v22 = vpop.f32.mrb[106].mxu0  ;;  %v2119_v42 = vpop.f32.mrb[106].mxu1 }
 0x245   : > { %v1945_v25 = vmax.f32 %v1876_v14, 0.0  ;;  %v2181_v26 = vmax.f32 %v2112_v15, 0.0  ;;  %v1882_v27 = vadd.f32 %v1881_v17, %v9665_v13  ;;  %v2118_v28 = vadd.f32 %v2117_v18, %v9668_v23  ;;  %v1885_v29 = vpop.f32.mrb[107].mxu0  ;;  %v2121_v31 = vpop.f32.mrb[107].mxu1 }
 0x246   : > { %v1559_v32 = vadd.f32 %v1557_v24, %v1498_v11  ;;  %v1795_v48 = vadd.f32 %v1793_v30, %v1734_v51  ;;  %v1946_v33 = vmax.f32 %v1880_v20, 0.0  ;;  %v2182_v39 = vmax.f32 %v2116_v21, 0.0 }
 0x247   : > { %v1994_v34 = vadd.f32 %v1993_v61, %v1945_v25  ;;  %v2230_v44 = vadd.f32 %v2229_v1, %v2181_v26  ;;  %v1947_v35 = vmax.f32 %v1882_v27, 0.0  ;;  %v2183_v36 = vmax.f32 %v2118_v28, 0.0 }
 0x248   : > { %1560 = vst.msk [vmem:[#allocation2 + $0x8] sm:$0x3] %vm9498_vm3, %v1559_v32  ;;  %1796 = vst.msk [vmem:[#allocation2 + $0xa] sm:$0x3] %vm9498_vm3, %v1795_v48  ;;  %v1974_v37 = vadd.f32 %v1973_v12, %v1946_v33  ;;  %v2210_v16 = vadd.f32 %v2209_v19, %v2182_v39  ;;  %v1884_v4 = vadd.f32 %v1883_v22, %v9657_v9 }
 0x249   : > { %v2120_v52 = vadd.f32 %v2119_v42, %v9660_v10  ;;  %v1995_v38 = vadd.f32 %v1994_v34, %v1947_v35  ;;  %v2231_v40 = vadd.f32 %v2230_v44, %v2183_v36  ;;  %v1886_v41 = vadd.f32 %v1885_v29, %v9665_v13 }
 0x24a   : > { %v2122_v43 = vadd.f32 %v2121_v31, %v9668_v23  ;;  %v1948_v46 = vmax.f32 %v1884_v4, 0.0  ;;  %v1889_v49 = vpop.f32.mrb[108].mxu0  ;;  %v2125_v50 = vpop.f32.mrb[108].mxu1 }
 0x24b   : > { %v2184_v47 = vmax.f32 %v2120_v52, 0.0  ;;  %v1949_v53 = vmax.f32 %v1886_v41, 0.0  ;;  %v1890_v6 = vadd.f32 %v1889_v49, %v9657_v9  ;;  %v2126_v56 = vadd.f32 %v2125_v50, %v9660_v10  ;;  %v1891_v7 = vpop.f32.mrb[109].mxu0  ;;  %v2127_v57 = vpop.f32.mrb[109].mxu1 }
 0x24c   : > { %v2185_v54 = vmax.f32 %v2122_v43, 0.0  ;;  %v1975_v45 = vadd.f32 %v1974_v37, %v1948_v46  ;;  %v1892_v59 = vadd.f32 %v1891_v7, %v9665_v13  ;;  %v2128_v60 = vadd.f32 %v2127_v57, %v9668_v23  ;;  %v1893_v61 = vpop.f32.mrb[110].mxu0  ;;  %v2129_v1 = vpop.f32.mrb[110].mxu1 }
 0x24d   : > { %v2211_v58 = vadd.f32 %v2210_v16, %v2184_v47  ;;  %v1996_v2 = vadd.f32 %v1995_v38, %v1949_v53  ;;  %v1950_v11 = vmax.f32 %v1890_v6, 0.0  ;;  %v2186_v51 = vmax.f32 %v2126_v56, 0.0  ;;  %v1895_v12 = vpop.f32.mrb[111].mxu0  ;;  %v2131_v19 = vpop.f32.mrb[111].mxu1 }
 0x24e   : > { %v2232_v8 = vadd.f32 %v2231_v40, %v2185_v54  ;;  %v1951_v14 = vmax.f32 %v1892_v59, 0.0  ;;  %v2187_v15 = vmax.f32 %v2128_v60, 0.0  ;;  %v1894_v17 = vadd.f32 %v1893_v61, %v9657_v9 }
 0x24f   : > { %v2130_v18 = vadd.f32 %v2129_v1, %v9660_v10  ;;  %v1976_v24 = vadd.f32 %v1975_v45, %v1950_v11  ;;  %v2212_v30 = vadd.f32 %v2211_v58, %v2186_v51  ;;  %v1896_v20 = vadd.f32 %v1895_v12, %v9665_v13 }
 0x250   : > { %v2132_v21 = vadd.f32 %v2131_v19, %v9668_v23  ;;  %v1997_v22 = vadd.f32 %v1996_v2, %v1951_v14  ;;  %v2233_v42 = vadd.f32 %v2232_v8, %v2187_v15  ;;  %v1952_v25 = vmax.f32 %v1894_v17, 0.0 }
 0x251   : > { %v2188_v26 = vmax.f32 %v2130_v18, 0.0  ;;  %v1953_v27 = vmax.f32 %v1896_v20, 0.0 }
 0x252   : > { %v2189_v28 = vmax.f32 %v2132_v21, 0.0  ;;  %v1977_v29 = vadd.f32 %v1976_v24, %v1952_v25  ;;  %v1899_v32 = vpop.f32.mrb[112].mxu0  ;;  %v2135_v48 = vpop.f32.mrb[112].mxu1 }
 0x253   : > { %v2213_v31 = vadd.f32 %v2212_v30, %v2188_v26  ;;  %v1998_v33 = vadd.f32 %v1997_v22, %v1953_v27  ;;  %v1900_v34 = vadd.f32 %v1899_v32, %v9657_v9  ;;  %v2136_v44 = vadd.f32 %v2135_v48, %v9660_v10  ;;  %v1901_v35 = vpop.f32.mrb[113].mxu0  ;;  %v2137_v36 = vpop.f32.mrb[113].mxu1 }
 0x254   : > { %v2234_v39 = vadd.f32 %v2233_v42, %v2189_v28  ;;  %v1902_v37 = vadd.f32 %v1901_v35, %v9665_v13  ;;  %v2138_v16 = vadd.f32 %v2137_v36, %v9668_v23  ;;  %v1903_v4 = vpop.f32.mrb[114].mxu0  ;;  %v2139_v52 = vpop.f32.mrb[114].mxu1 }
 0x255   : > { %v1954_v38 = vmax.f32 %v1900_v34, 0.0  ;;  %v2190_v40 = vmax.f32 %v2136_v44, 0.0  ;;  %v1904_v41 = vadd.f32 %v1903_v4, %v9657_v9  ;;  %v2140_v43 = vadd.f32 %v2139_v52, %v9660_v10  ;;  %v1905_v46 = vpop.f32.mrb[115].mxu0  ;;  %v2141_v47 = vpop.f32.mrb[115].mxu1 }
 0x256   : > { %v1955_v49 = vmax.f32 %v1902_v37, 0.0  ;;  %v2191_v50 = vmax.f32 %v2138_v16, 0.0  ;;  %v1906_v53 = vadd.f32 %v1905_v46, %v9665_v13  ;;  %v2142_v54 = vadd.f32 %v2141_v47, %v9668_v23 }
 0x257   : > { %v1978_v6 = vadd.f32 %v1977_v29, %v1954_v38  ;;  %v2214_v56 = vadd.f32 %v2213_v31, %v2190_v40  ;;  %v1956_v7 = vmax.f32 %v1904_v41, 0.0  ;;  %v2192_v57 = vmax.f32 %v2140_v43, 0.0 }
 0x258   : > { %v1999_v45 = vadd.f32 %v1998_v33, %v1955_v49  ;;  %v2235_v58 = vadd.f32 %v2234_v39, %v2191_v50  ;;  %v1957_v59 = vmax.f32 %v1906_v53, 0.0  ;;  %v2193_v60 = vmax.f32 %v2142_v54, 0.0 }
 0x259   : > { %v1979_v61 = vadd.f32 %v1978_v6, %v1956_v7  ;;  %v2215_v1 = vadd.f32 %v2214_v56, %v2192_v57 }
 0x25a   : > { %v2000_v2 = vadd.f32 %v1999_v45, %v1957_v59  ;;  %v2236_v8 = vadd.f32 %v2235_v58, %v2193_v60  ;;  %v1909_v11 = vpop.f32.mrb[116].mxu0  ;;  %v2145_v51 = vpop.f32.mrb[116].mxu1 }
 0x25b   : > { %v1910_v12 = vadd.f32 %v1909_v11, %v9657_v9  ;;  %v2146_v19 = vadd.f32 %v2145_v51, %v9660_v10  ;;  %v1911_v14 = vpop.f32.mrb[117].mxu0  ;;  %v2147_v15 = vpop.f32.mrb[117].mxu1 }
 0x25c   : > { %v1912_v17 = vadd.f32 %v1911_v14, %v9665_v13  ;;  %v2148_v18 = vadd.f32 %v2147_v15, %v9668_v23  ;;  %v1913_v24 = vpop.f32.mrb[118].mxu0  ;;  %v2149_v30 = vpop.f32.mrb[118].mxu1 }
 0x25d   : > { %v1958_v20 = vmax.f32 %v1910_v12, 0.0  ;;  %v2194_v21 = vmax.f32 %v2146_v19, 0.0  ;;  %v1914_v22 = vadd.f32 %v1913_v24, %v9657_v9  ;;  %v2150_v42 = vadd.f32 %v2149_v30, %v9660_v10  ;;  %v1915_v25 = vpop.f32.mrb[119].mxu0  ;;  %v2151_v26 = vpop.f32.mrb[119].mxu1 }
 0x25e   : > { %v1959_v27 = vmax.f32 %v1912_v17, 0.0  ;;  %v2195_v28 = vmax.f32 %v2148_v18, 0.0  ;;  %v1916_v29 = vadd.f32 %v1915_v25, %v9665_v13  ;;  %v2152_v31 = vadd.f32 %v2151_v26, %v9668_v23 }
 0x25f   : > { %v1980_v32 = vadd.f32 %v1979_v61, %v1958_v20  ;;  %v2216_v48 = vadd.f32 %v2215_v1, %v2194_v21  ;;  %v1960_v33 = vmax.f32 %v1914_v22, 0.0  ;;  %v2196_v39 = vmax.f32 %v2150_v42, 0.0 }
 0x260   : > { %v2001_v34 = vadd.f32 %v2000_v2, %v1959_v27  ;;  %v2237_v44 = vadd.f32 %v2236_v8, %v2195_v28  ;;  %v1961_v35 = vmax.f32 %v1916_v29, 0.0  ;;  %v2197_v36 = vmax.f32 %v2152_v31, 0.0 }
 0x261   : > { %v1981_v37 = vadd.f32 %v1980_v32, %v1960_v33  ;;  %v2217_v16 = vadd.f32 %v2216_v48, %v2196_v39 }
 0x262   : > { %v2002_v4 = vadd.f32 %v2001_v34, %v1961_v35  ;;  %v2238_v52 = vadd.f32 %v2237_v44, %v2197_v36  ;;  %v1919_v38 = vpop.f32.mrb[120].mxu0  ;;  %v2155_v40 = vpop.f32.mrb[120].mxu1 }
 0x263   : > { %v1920_v41 = vadd.f32 %v1919_v38, %v9657_v9  ;;  %v2156_v43 = vadd.f32 %v2155_v40, %v9660_v10  ;;  %v1921_v46 = vpop.f32.mrb[121].mxu0  ;;  %v2157_v47 = vpop.f32.mrb[121].mxu1 }
 0x264   : > { %v1922_v49 = vadd.f32 %v1921_v46, %v9665_v13  ;;  %v2158_v50 = vadd.f32 %v2157_v47, %v9668_v23  ;;  %v1923_v53 = vpop.f32.mrb[122].mxu0  ;;  %v2159_v54 = vpop.f32.mrb[122].mxu1 }
 0x265   : > { %v1962_v6 = vmax.f32 %v1920_v41, 0.0  ;;  %v2198_v56 = vmax.f32 %v2156_v43, 0.0  ;;  %v1924_v7 = vadd.f32 %v1923_v53, %v9657_v9  ;;  %v2160_v57 = vadd.f32 %v2159_v54, %v9660_v10  ;;  %v1925_v45 = vpop.f32.mrb[123].mxu0  ;;  %v2161_v58 = vpop.f32.mrb[123].mxu1 }
 0x266   : > { %v1963_v59 = vmax.f32 %v1922_v49, 0.0  ;;  %v2199_v60 = vmax.f32 %v2158_v50, 0.0  ;;  %v1926_v61 = vadd.f32 %v1925_v45, %v9665_v13  ;;  %v2162_v1 = vadd.f32 %v2161_v58, %v9668_v23 }
 0x267   : > { %v1982_v2 = vadd.f32 %v1981_v37, %v1962_v6  ;;  %v2218_v8 = vadd.f32 %v2217_v16, %v2198_v56  ;;  %v1964_v11 = vmax.f32 %v1924_v7, 0.0  ;;  %v2200_v51 = vmax.f32 %v2160_v57, 0.0 }
 0x268   : > { %v2003_v12 = vadd.f32 %v2002_v4, %v1963_v59  ;;  %v2239_v19 = vadd.f32 %v2238_v52, %v2199_v60  ;;  %v1965_v14 = vmax.f32 %v1926_v61, 0.0  ;;  %v2201_v15 = vmax.f32 %v2162_v1, 0.0 }
 0x269   : > { %v1983_v17 = vadd.f32 %v1982_v2, %v1964_v11  ;;  %v2219_v18 = vadd.f32 %v2218_v8, %v2200_v51 }
 0x26a   : > { %v2004_v24 = vadd.f32 %v2003_v12, %v1965_v14  ;;  %v2240_v30 = vadd.f32 %v2239_v19, %v2201_v15  ;;  %v1929_v20 = vpop.f32.mrb[124].mxu0  ;;  %v2165_v21 = vpop.f32.mrb[124].mxu1 }
 0x26b   : > { %v1930_v22 = vadd.f32 %v1929_v20, %v9657_v9  ;;  %v2166_v42 = vadd.f32 %v2165_v21, %v9660_v10  ;;  %v1931_v25 = vpop.f32.mrb[125].mxu0  ;;  %v2167_v26 = vpop.f32.mrb[125].mxu1 }
 0x26c   : > { %v1932_v27 = vadd.f32 %v1931_v25, %v9665_v13  ;;  %v2168_v28 = vadd.f32 %v2167_v26, %v9668_v23  ;;  %v1933_v29 = vpop.f32.mrb[126].mxu0  ;;  %v2169_v31 = vpop.f32.mrb[126].mxu1 }
 0x26d   : > { %v1966_v32 = vmax.f32 %v1930_v22, 0.0  ;;  %v2202_v48 = vmax.f32 %v2166_v42, 0.0  ;;  %v1934_v33 = vadd.f32 %v1933_v29, %v9657_v9  ;;  %v2170_v39 = vadd.f32 %v2169_v31, %v9660_v10  ;;  %v1935_v34 = vpop.f32.mrb[127].mxu0  ;;  %v2171_v44 = vpop.f32.mrb[127].mxu1  ;;  %v1970_v22 = vld [vmem:[#allocation2 + $0xc] sm:$0x3] }
 0x26e   : > { %v1967_v35 = vmax.f32 %v1932_v27, 0.0  ;;  %v2203_v36 = vmax.f32 %v2168_v28, 0.0  ;;  %v1936_v37 = vadd.f32 %v1935_v34, %v9665_v13  ;;  %v2172_v16 = vadd.f32 %v2171_v44, %v9668_v23  ;;  %v2206_v42 = vld [vmem:[#allocation2 + $0xe] sm:$0x3]  ;;  %v8030_v29 = vld [vmem:[%s11775_s3 + $0x4] ss:$16 sps:$4 sm:$0xff] (!%p7270_p8)  }
 0x26f   : > { %v1984_v4 = vadd.f32 %v1983_v17, %v1966_v32  ;;  %v2220_v52 = vadd.f32 %v2219_v18, %v2202_v48  ;;  %v1968_v38 = vmax.f32 %v1934_v33, 0.0  ;;  %v2204_v40 = vmax.f32 %v2170_v39, 0.0  ;;  %v8032_v31 = vld [vmem:[%s11775_s3 + $0xc] ss:$16 sps:$4 sm:$0xff] (!%p7270_p8)   ;;  %5469 = vmatprep.subr.bf16.mxu0 (!%p7270_p8), %v8030_v29  ;;  %v8034_v32 = vld [vmem:[%s11775_s3] ss:$16 sps:$4 sm:$0xff] (!%p7270_p8)  }
 0x270   : > { %v2005_v41 = vadd.f32 %v2004_v24, %v1967_v35  ;;  %v2241_v43 = vadd.f32 %v2240_v30, %v2203_v36  ;;  %v1969_v46 = vmax.f32 %v1936_v37, 0.0  ;;  %v2205_v47 = vmax.f32 %v2172_v16, 0.0  ;;  %5797 = vmatprep.subr.bf16.mxu1 (!%p7270_p8), %v8032_v31  ;;  %v8036_v48 = vld [vmem:[%s11775_s3 + $0x24] ss:$16 sps:$4 sm:$0xff] (!%p7270_p8)   ;;  %5470 = vmatpush1.bf16.msra.mxu0 (!%p7270_p8), %v8034_v32  ;;  %v8038_v33 = vld [vmem:[%s11775_s3 + $0x2c] ss:$16 sps:$4 sm:$0xff] (!%p7270_p8)  }
 0x271   : > { %v1985_v49 = vadd.f32 %v1984_v4, %v1968_v38  ;;  %v2221_v9 = vadd.f32 %v2220_v52, %v2204_v40  ;;  %5798 = vmatpush1.bf16.msra.mxu1 (!%p7270_p8), %v8035_v55  ;;  %v8040_v39 = vld [vmem:[%s11775_s3 + $0x20] ss:$16 sps:$4 sm:$0xff] (!%p7270_p8)   ;;  %5471 = vmatprep.subr.bf16.mxu0 (!%p7270_p8), %v8036_v48  ;;  %v8041_v34 = vld [vmem:[%s11775_s3 + $0x28] ss:$16 sps:$4 sm:$0xff] (!%p7270_p8)   ;;  %v8042_v44 = vld [vmem:[%s11775_s3 + $0x44] ss:$16 sps:$4 sm:$0xff] (!%p7270_p8)  }
 0x272   : > { %v2006_v50 = vadd.f32 %v2005_v41, %v1969_v46  ;;  %v2242_v10 = vadd.f32 %v2241_v43, %v2205_v47  ;;  %5799 = vmatprep.subr.bf16.mxu1 (!%p7270_p8), %v8038_v33  ;;  %v8044_v35 = vld [vmem:[%s11775_s3 + $0x4c] ss:$16 sps:$4 sm:$0xff] (!%p7270_p8)   ;;  %v8046_v36 = vld [vmem:[%s11775_s3 + $0x40] ss:$16 sps:$4 sm:$0xff] (!%p7270_p8)   ;;  %v8047_v37 = vld [vmem:[%s11775_s3 + $0x48] ss:$16 sps:$4 sm:$0xff] (!%p7270_p8)  }
 0x273   : > { %v1986_v53 = vrot.slane %v1985_v49, 4  ;;  %v2222_v54 = vrot.slane %v2221_v9, 4  ;;  %v8048_v16 = vld [vmem:[%s11775_s3 + $0x64] ss:$16 sps:$4 sm:$0xff] (!%p7270_p8)   ;;  %v8050_v4 = vld [vmem:[%s11775_s3 + $0x6c] ss:$16 sps:$4 sm:$0xff] (!%p7270_p8)  }
 0x274   : > { %v2007_v6 = vrot.slane %v2006_v50, 4  ;;  %v2243_v56 = vrot.slane %v2242_v10, 4  ;;  %5472 = vmatpush1.bf16.msra.mxu0 (!%p7270_p8), %v8040_v39  ;;  %v8052_v52 = vld [vmem:[%s11775_s3 + $0x60] ss:$16 sps:$4 sm:$0xff] (!%p7270_p8)   ;;  %v8053_v38 = vld [vmem:[%s11775_s3 + $0x68] ss:$16 sps:$4 sm:$0xff] (!%p7270_p8)  }
 0x275   : > { %v1987_v7 = vadd.f32 %v1986_v53, %v1985_v49  ;;  %v2223_v13 = vadd.f32 %v2222_v54, %v2221_v9  ;;  %5800 = vmatpush1.bf16.msra.mxu1 (!%p7270_p8), %v8041_v34  ;;  %5473 = vmatprep.subr.bf16.mxu0 (!%p7270_p8), %v8042_v44  ;;  %v8054_v40 = vld [vmem:[%s11775_s3 + $0x84] ss:$16 sps:$4 sm:$0xff] (!%p7270_p8)   ;;  %v8056_v41 = vld [vmem:[%s11775_s3 + $0x8c] ss:$16 sps:$4 sm:$0xff] (!%p7270_p8)   ;;  %v8058_v43 = vld [vmem:[%s11775_s3 + $0x80] ss:$16 sps:$4 sm:$0xff] (!%p7270_p8)  }
 0x276   : > { %v2008_v57 = vadd.f32 %v2007_v6, %v2006_v50  ;;  %v2244_v23 = vadd.f32 %v2243_v56, %v2242_v10  ;;  %5801 = vmatprep.subr.bf16.mxu1 (!%p7270_p8), %v8044_v35  ;;  %v8059_v46 = vld [vmem:[%s11775_s3 + $0x88] ss:$16 sps:$4 sm:$0xff] (!%p7270_p8)   ;;  %v8060_v47 = vld [vmem:[%s11775_s3 + $0xa4] ss:$16 sps:$4 sm:$0xff] (!%p7270_p8)   ;;  %v8062_v49 = vld [vmem:[%s11775_s3 + $0xac] ss:$16 sps:$4 sm:$0xff] (!%p7270_p8)  }
 0x277   : > { %v1988_v45 = vrot.slane %v1987_v7, 2  ;;  %v2224_v58 = vrot.slane %v2223_v13, 2  ;;  %v8064_v9 = vld [vmem:[%s11775_s3 + $0xa0] ss:$16 sps:$4 sm:$0xff] (!%p7270_p8)   ;;  %v8065_v50 = vld [vmem:[%s11775_s3 + $0xa8] ss:$16 sps:$4 sm:$0xff] (!%p7270_p8)  }
 0x278   : > { %v2009_v59 = vrot.slane %v2008_v57, 2  ;;  %v2245_v60 = vrot.slane %v2244_v23, 2  ;;  %5474 = vmatpush1.bf16.msra.mxu0 (!%p7270_p8), %v8046_v36  ;;  %v8066_v10 = vld [vmem:[%s11775_s3 + $0xc4] ss:$16 sps:$4 sm:$0xff] (!%p7270_p8)   ;;  %v8068_v53 = vld [vmem:[%s11775_s3 + $0xcc] ss:$16 sps:$4 sm:$0xff] (!%p7270_p8)  }
 0x279   : > { %v1989_v61 = vadd.f32 %v1988_v45, %v1987_v7  ;;  %v2225_v1 = vadd.f32 %v2224_v58, %v2223_v13  ;;  %5802 = vmatpush1.bf16.msra.mxu1 (!%p7270_p8), %v8047_v37  ;;  %5475 = vmatprep.subr.bf16.mxu0 (!%p7270_p8), %v8048_v16  ;;  %v8070_v54 = vld [vmem:[%s11775_s3 + $0xc0] ss:$16 sps:$4 sm:$0xff] (!%p7270_p8)   ;;  %v8071_v6 = vld [vmem:[%s11775_s3 + $0xc8] ss:$16 sps:$4 sm:$0xff] (!%p7270_p8)   ;;  %v8072_v56 = vld [vmem:[%s11775_s3 + $0xe4] ss:$16 sps:$4 sm:$0xff] (!%p7270_p8)  }
 0x27a   : > { %v2010_v2 = vadd.f32 %v2009_v59, %v2008_v57  ;;  %v2246_v8 = vadd.f32 %v2245_v60, %v2244_v23  ;;  %5803 = vmatprep.subr.bf16.mxu1 (!%p7270_p8), %v8050_v4  ;;  %v8074_v7 = vld [vmem:[%s11775_s3 + $0xec] ss:$16 sps:$4 sm:$0xff] (!%p7270_p8)   ;;  %v8076_v13 = vld [vmem:[%s11775_s3 + $0xe0] ss:$16 sps:$4 sm:$0xff] (!%p7270_p8)   ;;  %v8077_v57 = vld [vmem:[%s11775_s3 + $0xe8] ss:$16 sps:$4 sm:$0xff] (!%p7270_p8)  }
 0x27b   : > { %v1990_v11 = vrot.slane %v1989_v61, 1  ;;  %v2226_v51 = vrot.slane %v2225_v1, 1  ;;  %v8078_v23 = vld [vmem:[%s11775_s3 + $0x104] ss:$16 sps:$4 sm:$0xff] (!%p7270_p8)   ;;  %v8080_v45 = vld [vmem:[%s11775_s3 + $0x10c] ss:$16 sps:$4 sm:$0xff] (!%p7270_p8)  }
 0x27c   : > { %v2011_v12 = vrot.slane %v2010_v2, 1  ;;  %v2247_v19 = vrot.slane %v2246_v8, 1  ;;  %5476 = vmatpush1.bf16.msra.mxu0 (!%p7270_p8), %v8052_v52  ;;  %v8082_v58 = vld [vmem:[%s11775_s3 + $0x100] ss:$16 sps:$4 sm:$0xff] (!%p7270_p8)   ;;  %v8083_v59 = vld [vmem:[%s11775_s3 + $0x108] ss:$16 sps:$4 sm:$0xff] (!%p7270_p8)  }
 0x27d   : > { %v1991_v14 = vadd.f32 %v1990_v11, %v1989_v61  ;;  %v2227_v15 = vadd.f32 %v2226_v51, %v2225_v1  ;;  %5804 = vmatpush1.bf16.msra.mxu1 (!%p7270_p8), %v8053_v38  ;;  %5477 = vmatprep.subr.bf16.mxu0 (!%p7270_p8), %v8054_v40  ;;  %v8084_v60 = vld [vmem:[%s11775_s3 + $0x124] ss:$16 sps:$4 sm:$0xff] (!%p7270_p8)   ;;  %v8086_v61 = vld [vmem:[%s11775_s3 + $0x12c] ss:$16 sps:$4 sm:$0xff] (!%p7270_p8)   ;;  %v8088_v1 = vld [vmem:[%s11775_s3 + $0x120] ss:$16 sps:$4 sm:$0xff] (!%p7270_p8)  }
 0x27e   : > { %v2012_v17 = vadd.f32 %v2011_v12, %v2010_v2  ;;  %v2248_v18 = vadd.f32 %v2247_v19, %v2246_v8  ;;  %5805 = vmatprep.subr.bf16.mxu1 (!%p7270_p8), %v8056_v41  ;;  %v8089_v2 = vld [vmem:[%s11775_s3 + $0x128] ss:$16 sps:$4 sm:$0xff] (!%p7270_p8)   ;;  %v8090_v8 = vld [vmem:[%s11775_s3 + $0x144] ss:$16 sps:$4 sm:$0xff] (!%p7270_p8)   ;;  %v8092_v11 = vld [vmem:[%s11775_s3 + $0x14c] ss:$16 sps:$4 sm:$0xff] (!%p7270_p8)  }
 0x27f   : > { %v8094_v51 = vld [vmem:[%s11775_s3 + $0x140] ss:$16 sps:$4 sm:$0xff] (!%p7270_p8)   ;;  %v8095_v12 = vld [vmem:[%s11775_s3 + $0x148] ss:$16 sps:$4 sm:$0xff] (!%p7270_p8)   ;;  %v8096_v19 = vld [vmem:[%s11775_s3 + $0x164] ss:$16 sps:$4 sm:$0xff] (!%p7270_p8)  }
 0x280   : > { %v2015_v24 = vcombine.low %v1991_v14, %v2012_v17  ;;  %v2251_v30 = vcombine.low %v2227_v15, %v2248_v18  ;;  %5478 = vmatpush1.bf16.msra.mxu0 (!%p7270_p8), %v8058_v43  ;;  %v8098_v14 = vld [vmem:[%s11775_s3 + $0x16c] ss:$16 sps:$4 sm:$0xff] (!%p7270_p8)   ;;  %v2273_v15 = vld [vmem:[#allocation2] sm:$0xff] (!%p7270_p8)  ;;  %v8113_v29 = vld [vmem:[%s11775_s3 + $0x1a8] ss:$16 sps:$4 sm:$0xff] (!%p7270_p8)   ;;  %v9946_v34 = vsub.s32 (!%p7270_p8), 3, %v9342_v63 }
 0x281   : > { %5806 = vmatpush1.bf16.msra.mxu1 (!%p7270_p8), %v8059_v46  ;;  %5479 = vmatprep.subr.bf16.mxu0 (!%p7270_p8), %v8060_v47  ;;  %v8100_v17 = vld [vmem:[%s11775_s3 + $0x160] ss:$16 sps:$4 sm:$0xff] (!%p7270_p8)   ;;  %v9896_v18 = vmul.f32 (!%p7270_p8), 0.00390625, %v2273_v15  ;;  %v8114_v31 = vld [vmem:[%s11775_s3 + $0x1c4] ss:$16 sps:$4 sm:$0xff] (!%p7270_p8)  }
 0x282   : > { %v2022_v20 = vrot.slane %v2015_v24, %v9487_v5  ;;  %v2258_v21 = vrot.slane %v2251_v30, %v9487_v5  ;;  %2272 = sbr.rel (%p7270_p8) target bundleno = 1643 (0x66b), region = 56  ;;  %5807 = vmatprep.subr.bf16.mxu1 (!%p7270_p8), %v8062_v49  ;;  %v8101_v24 = vld [vmem:[%s11775_s3 + $0x168] ss:$16 sps:$4 sm:$0xff] (!%p7270_p8)   ;;  %v8102_v30 = vld [vmem:[%s11775_s3 + $0x184] ss:$16 sps:$4 sm:$0xff] (!%p7270_p8)  }
 0x283   : > { %v8116_v32 = vld [vmem:[%s11775_s3 + $0x1cc] ss:$16 sps:$4 sm:$0xff] (!%p7270_p8)   ;;  %v8118_v55 = vld [vmem:[%s11775_s3 + $0x1c0] ss:$16 sps:$4 sm:$0xff] (!%p7270_p8)   ;;  %v8119_v48 = vld [vmem:[%s11775_s3 + $0x1c8] ss:$16 sps:$4 sm:$0xff] (!%p7270_p8)   ;;  %v2282_v35 = vrot.slane (!%p7270_p8), %v9896_v18, %v9347_v0  ;;  %v2294_v4 = vrot.slane (!%p7270_p8), %v9896_v18, %v9946_v34 }
 0x284   : > { %v2029_v25 = vrot.slane %v2022_v20, %v9487_v5  ;;  %v2265_v26 = vrot.slane %v2258_v21, %v9487_v5  ;;  %5480 = vmatpush1.bf16.msra.mxu0 (!%p7270_p8), %v8064_v9  ;;  %v8104_v20 = vld [vmem:[%s11775_s3 + $0x18c] ss:$16 sps:$4 sm:$0xff] (!%p7270_p8)   ;;  %v2286_v21 = vrot.slane (!%p7270_p8), %v9896_v18, %v9356_v3  ;;  %v8120_v33 = vld [vmem:[%s11775_s3 + $0x1e4] ss:$16 sps:$4 sm:$0xff] (!%p7270_p8)   ;;  %v8124_v44 = vld [vmem:[%s11775_s3 + $0x1e0] ss:$16 sps:$4 sm:$0xff] (!%p7270_p8)  }
 0x285   : > { %5808 = vmatpush1.bf16.msra.mxu1 (!%p7270_p8), %v8065_v50  ;;  %5481 = vmatprep.subr.bf16.mxu0 (!%p7270_p8), %v8066_v10  ;;  %v8122_v39 = vld [vmem:[%s11775_s3 + $0x1ec] ss:$16 sps:$4 sm:$0xff] (!%p7270_p8)   ;;  %v8125_v36 = vld [vmem:[%s11775_s3 + $0x1e8] ss:$16 sps:$4 sm:$0xff] (!%p7270_p8)   ;;  %v8128_v37 = vld [vmem:[%s11775_s3 + $0x204] ss:$16 sps:$4 sm:$0xff] (!%p7270_p8)   ;;  %v2359_v38 = vpack.c.bf16 (!%p7270_p8), %v2282_v35, %v2282_v35  ;;  %v2362_v46 = vpack.c.bf16 (!%p7270_p8), %v2294_v4, %v2294_v4 }
 0x286   : > { %v2031_v27 = vadd.f32 %v2029_v25, %v1970_v22  ;;  %v2267_v28 = vadd.f32 %v2265_v26, %v2206_v42  ;;  %5809 = vmatprep.subr.bf16.mxu1 (!%p7270_p8), %v8068_v53  ;;  %v8106_v22 = vld [vmem:[%s11775_s3 + $0x180] ss:$16 sps:$4 sm:$0xff] (!%p7270_p8)   ;;  %v2360_v42 = vpack.c.bf16 (!%p7270_p8), %v2286_v21, %v2286_v21  ;;  %v8107_v25 = vld [vmem:[%s11775_s3 + $0x188] ss:$16 sps:$4 sm:$0xff] (!%p7270_p8)   ;;  %v8108_v26 = vld [vmem:[%s11775_s3 + $0x1a4] ss:$16 sps:$4 sm:$0xff] (!%p7270_p8)  }
 0x287   : > { %v8131_v16 = vld [vmem:[%s11775_s3 + $0x20c] ss:$16 sps:$4 sm:$0xff] (!%p7270_p8)   ;;  %v8126_v52 = vld [vmem:[%s11775_s3 + $0x200] ss:$16 sps:$4 sm:$0xff] (!%p7270_p8)   ;;  %v8129_v40 = vld [vmem:[%s11775_s3 + $0x208] ss:$16 sps:$4 sm:$0xff] (!%p7270_p8)  }
 0x288   : > { %2032 = vst.msk [vmem:[#allocation2 + $0xc] sm:$0x3] %vm9498_vm3, %v2031_v27  ;;  %2268 = vst.msk [vmem:[#allocation2 + $0xe] sm:$0x3] %vm9498_vm3, %v2267_v28  ;;  %5482 = vmatpush1.bf16.msra.mxu0 (!%p7270_p8), %v8070_v54  ;;  %v8110_v27 = vld [vmem:[%s11775_s3 + $0x1ac] ss:$16 sps:$4 sm:$0xff] (!%p7270_p8)   ;;  %5501 = vmatprep.mubr.bf16.mxu0 (!%p7270_p8), %v2360_v42 }
 0x289   : > { %5810 = vmatpush1.bf16.msra.mxu1 %v8071_v6  ;;  %5483 = vmatprep.subr.bf16.mxu0 %v8072_v56  ;;  %v8112_v28 = vld [vmem:[%s11775_s3 + $0x1a0] ss:$16 sps:$4 sm:$0xff]   ;;  %v8134_v41 = vld [vmem:[%s11775_s3 + $0x224] ss:$16 sps:$4 sm:$0xff]   ;;  %v8137_v43 = vld [vmem:[%s11775_s3 + $0x22c] ss:$16 sps:$4 sm:$0xff]  }
 0x28a   : > { %5811 = vmatprep.subr.bf16.mxu1 %v8074_v7  ;;  %5829 = vmatprep.mubr.bf16.mxu1 %v2360_v42  ;;  %v8132_v47 = vld [vmem:[%s11775_s3 + $0x220] ss:$16 sps:$4 sm:$0xff]   ;;  %v8135_v49 = vld [vmem:[%s11775_s3 + $0x228] ss:$16 sps:$4 sm:$0xff]   ;;  %v8140_v9 = vld [vmem:[%s11775_s3 + $0x244] ss:$16 sps:$4 sm:$0xff]  }
 0x28b   : > { %v8143_v50 = vld [vmem:[%s11775_s3 + $0x24c] ss:$16 sps:$4 sm:$0xff]   ;;  %v8138_v10 = vld [vmem:[%s11775_s3 + $0x240] ss:$16 sps:$4 sm:$0xff]   ;;  %v8141_v53 = vld [vmem:[%s11775_s3 + $0x248] ss:$16 sps:$4 sm:$0xff]  }
 0x28c   : > { %5484 = vmatpush1.bf16.msra.mxu0 %v8076_v13  ;;  %v8146_v54 = vld [vmem:[%s11775_s3 + $0x264] ss:$16 sps:$4 sm:$0xff]   ;;  %v8149_v6 = vld [vmem:[%s11775_s3 + $0x26c] ss:$16 sps:$4 sm:$0xff]   ;;  %v8144_v56 = vld [vmem:[%s11775_s3 + $0x260] ss:$16 sps:$4 sm:$0xff]  }
 0x28d   : > { %5812 = vmatpush1.bf16.msra.mxu1 %v8077_v57  ;;  %5485 = vmatprep.subr.bf16.mxu0 %v8078_v23  ;;  %v8147_v7 = vld [vmem:[%s11775_s3 + $0x268] ss:$16 sps:$4 sm:$0xff]   ;;  %v8152_v13 = vld [vmem:[%s11775_s3 + $0x284] ss:$16 sps:$4 sm:$0xff]   ;;  %v8155_v57 = vld [vmem:[%s11775_s3 + $0x28c] ss:$16 sps:$4 sm:$0xff]  }
 0x28e   : > { %5813 = vmatprep.subr.bf16.mxu1 %v8080_v45  ;;  %v8150_v23 = vld [vmem:[%s11775_s3 + $0x280] ss:$16 sps:$4 sm:$0xff]   ;;  %v8153_v45 = vld [vmem:[%s11775_s3 + $0x288] ss:$16 sps:$4 sm:$0xff]   ;;  %v8176_v15 = vld [vmem:[%s11775_s3 + $0x304] ss:$16 sps:$4 sm:$0xff]  }
 0x28f   : > { %v8185_v21 = vld [vmem:[%s11775_s3 + $0x32c] ss:$16 sps:$4 sm:$0xff]   ;;  %v8183_v42 = vld [vmem:[%s11775_s3 + $0x328] ss:$16 sps:$4 sm:$0xff]   ;;  %v8206_v35 = vld [vmem:[%s11775_s3 + $0x3a4] ss:$16 sps:$4 sm:$0xff]  }
 0x290   : > { %5486 = vmatpush1.bf16.msra.mxu0 %v8082_v58  ;;  %v8158_v58 = vld [vmem:[%s11775_s3 + $0x2a4] ss:$16 sps:$4 sm:$0xff]  }
 0x291   : > { %5814 = vmatpush1.bf16.msra.mxu1 %v8083_v59  ;;  %5487 = vmatprep.subr.bf16.mxu0 %v8084_v60  ;;  %v8161_v59 = vld [vmem:[%s11775_s3 + $0x2ac] ss:$16 sps:$4 sm:$0xff]   ;;  %v8156_v60 = vld [vmem:[%s11775_s3 + $0x2a0] ss:$16 sps:$4 sm:$0xff]   ;;  %v8212_v4 = vld [vmem:[%s11775_s3 + $0x3c4] ss:$16 sps:$4 sm:$0xff]  }
 0x292   : > { %5815 = vmatprep.subr.bf16.mxu1 %v8086_v61  ;;  %v8159_v61 = vld [vmem:[%s11775_s3 + $0x2a8] ss:$16 sps:$4 sm:$0xff]  }
 0x294   : > { %5488 = vmatpush1.bf16.msra.mxu0 %v8088_v1  ;;  %v8164_v1 = vld [vmem:[%s11775_s3 + $0x2c4] ss:$16 sps:$4 sm:$0xff]  }
 0x295   : > { %5816 = vmatpush1.bf16.msra.mxu1 %v8089_v2  ;;  %5489 = vmatprep.subr.bf16.mxu0 %v8090_v8  ;;  %v8167_v2 = vld [vmem:[%s11775_s3 + $0x2cc] ss:$16 sps:$4 sm:$0xff]   ;;  %v8162_v8 = vld [vmem:[%s11775_s3 + $0x2c0] ss:$16 sps:$4 sm:$0xff]  }
 0x296   : > { %5817 = vmatprep.subr.bf16.mxu1 %v8092_v11  ;;  %v8165_v11 = vld [vmem:[%s11775_s3 + $0x2c8] ss:$16 sps:$4 sm:$0xff]  }
 0x298   : > { %5490 = vmatpush1.bf16.msra.mxu0 %v8094_v51  ;;  %v8170_v51 = vld [vmem:[%s11775_s3 + $0x2e4] ss:$16 sps:$4 sm:$0xff]  }
 0x299   : > { %5818 = vmatpush1.bf16.msra.mxu1 %v8095_v12  ;;  %5491 = vmatprep.subr.bf16.mxu0 %v8096_v19  ;;  %v8173_v12 = vld [vmem:[%s11775_s3 + $0x2ec] ss:$16 sps:$4 sm:$0xff]   ;;  %v8168_v19 = vld [vmem:[%s11775_s3 + $0x2e0] ss:$16 sps:$4 sm:$0xff]  }
 0x29a   : > { %5819 = vmatprep.subr.bf16.mxu1 %v8098_v14  ;;  %v8171_v14 = vld [vmem:[%s11775_s3 + $0x2e8] ss:$16 sps:$4 sm:$0xff]  }
 0x29c   : > { %5492 = vmatpush1.bf16.msra.mxu0 %v8100_v17  ;;  %v8179_v17 = vld [vmem:[%s11775_s3 + $0x30c] ss:$16 sps:$4 sm:$0xff]  }
 0x29d   : > { %5820 = vmatpush1.bf16.msra.mxu1 %v8101_v24  ;;  %5493 = vmatprep.subr.bf16.mxu0 %v8102_v30  ;;  %v8174_v24 = vld [vmem:[%s11775_s3 + $0x300] ss:$16 sps:$4 sm:$0xff]   ;;  %v8177_v30 = vld [vmem:[%s11775_s3 + $0x308] ss:$16 sps:$4 sm:$0xff]  }
 0x29e   : > { %5821 = vmatprep.subr.bf16.mxu1 %v8104_v20  ;;  %v8182_v20 = vld [vmem:[%s11775_s3 + $0x324] ss:$16 sps:$4 sm:$0xff]  }
 0x2a0   : > { %5494 = vmatpush1.bf16.msra.mxu0 %v8106_v22  ;;  %v8180_v22 = vld [vmem:[%s11775_s3 + $0x320] ss:$16 sps:$4 sm:$0xff]  }
 0x2a1   : > { %5822 = vmatpush1.bf16.msra.mxu1 %v8107_v25  ;;  %5495 = vmatprep.subr.bf16.mxu0 %v8108_v26  ;;  %v8188_v25 = vld [vmem:[%s11775_s3 + $0x344] ss:$16 sps:$4 sm:$0xff]   ;;  %v8191_v26 = vld [vmem:[%s11775_s3 + $0x34c] ss:$16 sps:$4 sm:$0xff]  }
 0x2a2   : > { %5823 = vmatprep.subr.bf16.mxu1 %v8110_v27  ;;  %v8186_v27 = vld [vmem:[%s11775_s3 + $0x340] ss:$16 sps:$4 sm:$0xff]  }
 0x2a4   : > { %5496 = vmatpush1.bf16.msra.mxu0 %v8112_v28  ;;  %v8189_v28 = vld [vmem:[%s11775_s3 + $0x348] ss:$16 sps:$4 sm:$0xff]  }
 0x2a5   : > { %5824 = vmatpush1.bf16.msra.mxu1 %v8113_v29  ;;  %5497 = vmatprep.subr.bf16.mxu0 %v8114_v31  ;;  %v8194_v29 = vld [vmem:[%s11775_s3 + $0x364] ss:$16 sps:$4 sm:$0xff]   ;;  %v8197_v31 = vld [vmem:[%s11775_s3 + $0x36c] ss:$16 sps:$4 sm:$0xff]  }
 0x2a6   : > { %5825 = vmatprep.subr.bf16.mxu1 %v8116_v32  ;;  %v8192_v32 = vld [vmem:[%s11775_s3 + $0x360] ss:$16 sps:$4 sm:$0xff]  }
 0x2a8   : > { %5498 = vmatpush1.bf16.msra.mxu0 %v8118_v55  ;;  %v8195_v55 = vld [vmem:[%s11775_s3 + $0x368] ss:$16 sps:$4 sm:$0xff]  }
 0x2a9   : > { %5826 = vmatpush1.bf16.msra.mxu1 %v8119_v48  ;;  %5499 = vmatprep.subr.bf16.mxu0 %v8120_v33  ;;  %v8200_v48 = vld [vmem:[%s11775_s3 + $0x384] ss:$16 sps:$4 sm:$0xff]   ;;  %v8203_v33 = vld [vmem:[%s11775_s3 + $0x38c] ss:$16 sps:$4 sm:$0xff]  }
 0x2aa   : > { %5827 = vmatprep.subr.bf16.mxu1 %v8122_v39  ;;  %v8198_v39 = vld [vmem:[%s11775_s3 + $0x380] ss:$16 sps:$4 sm:$0xff]  }
 0x2ac   : > { %5500 = vmatpush1.bf16.msra.mxu0 %v8124_v44  ;;  %v8201_v44 = vld [vmem:[%s11775_s3 + $0x388] ss:$16 sps:$4 sm:$0xff]  }
 0x2ad   : > { %5828 = vmatpush1.bf16.msra.mxu1 %v8125_v36  ;;  %5510 = vmatprep.subr.bf16.mxu0 %v8128_v37  ;;  %v8209_v36 = vld [vmem:[%s11775_s3 + $0x3ac] ss:$16 sps:$4 sm:$0xff]   ;;  %v8204_v37 = vld [vmem:[%s11775_s3 + $0x3a0] ss:$16 sps:$4 sm:$0xff]  }
 0x2ae   : > { %5838 = vmatprep.subr.bf16.mxu1 %v8131_v16  ;;  %v8207_v16 = vld [vmem:[%s11775_s3 + $0x3a8] ss:$16 sps:$4 sm:$0xff]  }
 0x2af   : > { %5502 = vmatmul.mubr.bf16.vlgmr.msra.gmra.mrb[0].mxu0 %v2359_v38 }
 0x2b0   : > { %5830 = vmatmul.mubr.bf16.vlgmr.msra.gmra.mrb[0].mxu1 %v2359_v38  ;;  %5511 = vmatpush1.bf16.msra.mxu0 %v8126_v52  ;;  %v8215_v52 = vld [vmem:[%s11775_s3 + $0x3cc] ss:$16 sps:$4 sm:$0xff]   ;;  %v8210_v38 = vld [vmem:[%s11775_s3 + $0x3c0] ss:$16 sps:$4 sm:$0xff]  }
 0x2b1   : > { %5839 = vmatpush1.bf16.msra.mxu1 %v8129_v40  ;;  %5512 = vmatprep.subr.bf16.mxu0 %v8134_v41  ;;  %v10136_v40 = vsub.s32 2, %v9342_v63  ;;  %v8213_v41 = vld [vmem:[%s11775_s3 + $0x3c8] ss:$16 sps:$4 sm:$0xff]  }
 0x2b2   : > { %5840 = vmatprep.subr.bf16.mxu1 %v8137_v43  ;;  %5542 = vmatprep.mubr.bf16.mxu0 %v2362_v46  ;;  %v8218_v43 = vld [vmem:[%s11775_s3 + $0x3e4] ss:$16 sps:$4 sm:$0xff]  }
 0x2b3   : > { %5870 = vmatprep.mubr.bf16.mxu1 %v2362_v46  ;;  %v8221_v46 = vld [vmem:[%s11775_s3 + $0x3ec] ss:$16 sps:$4 sm:$0xff]  }
 0x2b4   : > { %5513 = vmatpush1.bf16.msra.mxu0 %v8132_v47  ;;  %v2301_v47 = vsub.s32 5, %v9342_v63 }
 0x2b5   : > { %5841 = vmatpush1.bf16.msra.mxu1 %v8135_v49  ;;  %5514 = vmatprep.subr.bf16.mxu0 %v8140_v9  ;;  %v8216_v49 = vld [vmem:[%s11775_s3 + $0x3e0] ss:$16 sps:$4 sm:$0xff]   ;;  %v2290_v9 = vrot.slane %v9896_v18, %v10136_v40 }
 0x2b6   : > { %5842 = vmatprep.subr.bf16.mxu1 %v8143_v50  ;;  %v8219_v50 = vld [vmem:[%s11775_s3 + $0x3e8] ss:$16 sps:$4 sm:$0xff]  }
 0x2b8   : > { %5515 = vmatpush1.bf16.msra.mxu0 %v8138_v10  ;;  %v8224_v10 = vld [vmem:[%s11775_s3 + $0x404] ss:$16 sps:$4 sm:$0xff]  }
 0x2b9   : > { %5843 = vmatpush1.bf16.msra.mxu1 %v8141_v53  ;;  %5516 = vmatprep.subr.bf16.mxu0 %v8146_v54  ;;  %v8227_v53 = vld [vmem:[%s11775_s3 + $0x40c] ss:$16 sps:$4 sm:$0xff]   ;;  %v2302_v54 = vrot.slane %v9896_v18, %v2301_v47 }
 0x2ba   : > { %5844 = vmatprep.subr.bf16.mxu1 %v8149_v6  ;;  %v8222_v6 = vld [vmem:[%s11775_s3 + $0x400] ss:$16 sps:$4 sm:$0xff]  }
 0x2bc   : > { %5517 = vmatpush1.bf16.msra.mxu0 %v8144_v56  ;;  %v2361_v56 = vpack.c.bf16 %v2290_v9, %v2290_v9  ;;  %v8294_v9 = vld [vmem:[%s11775_s3 + $0x580] ss:$16 sps:$4 sm:$0xff]  }
 0x2bd   : > { %5845 = vmatpush1.bf16.msra.mxu1 %v8147_v7  ;;  %5518 = vmatprep.subr.bf16.mxu0 %v8152_v13  ;;  %v8225_v7 = vld [vmem:[%s11775_s3 + $0x408] ss:$16 sps:$4 sm:$0xff]   ;;  %v8230_v13 = vld [vmem:[%s11775_s3 + $0x424] ss:$16 sps:$4 sm:$0xff]  }
 0x2be   : > { %5846 = vmatprep.subr.bf16.mxu1 %v8155_v57  ;;  %v8233_v57 = vld [vmem:[%s11775_s3 + $0x42c] ss:$16 sps:$4 sm:$0xff]  }
 0x2c0   : > { %5519 = vmatpush1.bf16.msra.mxu0 %v8150_v23  ;;  %v2364_v23 = vpack.c.bf16 %v2302_v54, %v2302_v54  ;;  %v8300_v54 = vld [vmem:[%s11775_s3 + $0x5a0] ss:$16 sps:$4 sm:$0xff]  }
 0x2c1   : > { %5847 = vmatpush1.bf16.msra.mxu1 %v8153_v45  ;;  %5520 = vmatprep.subr.bf16.mxu0 %v8158_v58  ;;  %v8228_v45 = vld [vmem:[%s11775_s3 + $0x420] ss:$16 sps:$4 sm:$0xff]   ;;  %v8231_v58 = vld [vmem:[%s11775_s3 + $0x428] ss:$16 sps:$4 sm:$0xff]  }
 0x2c2   : > { %5848 = vmatprep.subr.bf16.mxu1 %v8161_v59  ;;  %v8236_v59 = vld [vmem:[%s11775_s3 + $0x444] ss:$16 sps:$4 sm:$0xff]  }
 0x2c4   : > { %5521 = vmatpush1.bf16.msra.mxu0 %v8156_v60  ;;  %v8239_v60 = vld [vmem:[%s11775_s3 + $0x44c] ss:$16 sps:$4 sm:$0xff]  }
 0x2c5   : > { %5849 = vmatpush1.bf16.msra.mxu1 %v8159_v61  ;;  %5522 = vmatprep.subr.bf16.mxu0 %v8164_v1  ;;  %v8234_v61 = vld [vmem:[%s11775_s3 + $0x440] ss:$16 sps:$4 sm:$0xff]   ;;  %v8237_v1 = vld [vmem:[%s11775_s3 + $0x448] ss:$16 sps:$4 sm:$0xff]  }
 0x2c6   : > { %5850 = vmatprep.subr.bf16.mxu1 %v8167_v2  ;;  %v8242_v2 = vld [vmem:[%s11775_s3 + $0x464] ss:$16 sps:$4 sm:$0xff]  }
 0x2c8   : > { %5523 = vmatpush1.bf16.msra.mxu0 %v8162_v8  ;;  %v8245_v8 = vld [vmem:[%s11775_s3 + $0x46c] ss:$16 sps:$4 sm:$0xff]  }
 0x2c9   : > { %5851 = vmatpush1.bf16.msra.mxu1 %v8165_v11  ;;  %5524 = vmatprep.subr.bf16.mxu0 %v8170_v51  ;;  %v8240_v11 = vld [vmem:[%s11775_s3 + $0x460] ss:$16 sps:$4 sm:$0xff]   ;;  %v8243_v51 = vld [vmem:[%s11775_s3 + $0x468] ss:$16 sps:$4 sm:$0xff]  }
 0x2ca   : > { %5852 = vmatprep.subr.bf16.mxu1 %v8173_v12  ;;  %v8248_v12 = vld [vmem:[%s11775_s3 + $0x484] ss:$16 sps:$4 sm:$0xff]  }
 0x2cc   : > { %5525 = vmatpush1.bf16.msra.mxu0 %v8168_v19  ;;  %v8251_v19 = vld [vmem:[%s11775_s3 + $0x48c] ss:$16 sps:$4 sm:$0xff]  }
 0x2cd   : > { %5853 = vmatpush1.bf16.msra.mxu1 %v8171_v14  ;;  %5526 = vmatprep.subr.bf16.mxu0 %v8176_v15  ;;  %v8246_v14 = vld [vmem:[%s11775_s3 + $0x480] ss:$16 sps:$4 sm:$0xff]   ;;  %v8249_v15 = vld [vmem:[%s11775_s3 + $0x488] ss:$16 sps:$4 sm:$0xff]  }
 0x2ce   : > { %5854 = vmatprep.subr.bf16.mxu1 %v8179_v17  ;;  %v8254_v17 = vld [vmem:[%s11775_s3 + $0x4a4] ss:$16 sps:$4 sm:$0xff]  }
 0x2d0   : > { %5527 = vmatpush1.bf16.msra.mxu0 %v8174_v24  ;;  %v8257_v24 = vld [vmem:[%s11775_s3 + $0x4ac] ss:$16 sps:$4 sm:$0xff]  }
 0x2d1   : > { %5855 = vmatpush1.bf16.msra.mxu1 %v8177_v30  ;;  %5528 = vmatprep.subr.bf16.mxu0 %v8182_v20  ;;  %v8252_v30 = vld [vmem:[%s11775_s3 + $0x4a0] ss:$16 sps:$4 sm:$0xff]   ;;  %v8255_v20 = vld [vmem:[%s11775_s3 + $0x4a8] ss:$16 sps:$4 sm:$0xff]  }
 0x2d2   : > { %5856 = vmatprep.subr.bf16.mxu1 %v8185_v21  ;;  %v8260_v21 = vld [vmem:[%s11775_s3 + $0x4c4] ss:$16 sps:$4 sm:$0xff]  }
 0x2d4   : > { %5529 = vmatpush1.bf16.msra.mxu0 %v8180_v22  ;;  %v8263_v22 = vld [vmem:[%s11775_s3 + $0x4cc] ss:$16 sps:$4 sm:$0xff]  }
 0x2d5   : > { %5857 = vmatpush1.bf16.msra.mxu1 %v8183_v42  ;;  %5530 = vmatprep.subr.bf16.mxu0 %v8188_v25  ;;  %v8258_v42 = vld [vmem:[%s11775_s3 + $0x4c0] ss:$16 sps:$4 sm:$0xff]   ;;  %v8261_v25 = vld [vmem:[%s11775_s3 + $0x4c8] ss:$16 sps:$4 sm:$0xff]  }
 0x2d6   : > { %5858 = vmatprep.subr.bf16.mxu1 %v8191_v26  ;;  %v8266_v26 = vld [vmem:[%s11775_s3 + $0x4e4] ss:$16 sps:$4 sm:$0xff]  }
 0x2d8   : > { %5531 = vmatpush1.bf16.msra.mxu0 %v8186_v27  ;;  %v8269_v27 = vld [vmem:[%s11775_s3 + $0x4ec] ss:$16 sps:$4 sm:$0xff]  }
 0x2d9   : > { %5859 = vmatpush1.bf16.msra.mxu1 %v8189_v28  ;;  %5532 = vmatprep.subr.bf16.mxu0 %v8194_v29  ;;  %v8264_v28 = vld [vmem:[%s11775_s3 + $0x4e0] ss:$16 sps:$4 sm:$0xff]   ;;  %v8267_v29 = vld [vmem:[%s11775_s3 + $0x4e8] ss:$16 sps:$4 sm:$0xff]  }
 0x2da   : > { %5860 = vmatprep.subr.bf16.mxu1 %v8197_v31  ;;  %v8272_v31 = vld [vmem:[%s11775_s3 + $0x504] ss:$16 sps:$4 sm:$0xff]  }
 0x2dc   : > { %5533 = vmatpush1.bf16.msra.mxu0 %v8192_v32  ;;  %v8275_v32 = vld [vmem:[%s11775_s3 + $0x50c] ss:$16 sps:$4 sm:$0xff]  }
 0x2dd   : > { %5861 = vmatpush1.bf16.msra.mxu1 %v8195_v55  ;;  %5534 = vmatprep.subr.bf16.mxu0 %v8200_v48  ;;  %v8270_v55 = vld [vmem:[%s11775_s3 + $0x500] ss:$16 sps:$4 sm:$0xff]   ;;  %v8273_v48 = vld [vmem:[%s11775_s3 + $0x508] ss:$16 sps:$4 sm:$0xff]  }
 0x2de   : > { %5862 = vmatprep.subr.bf16.mxu1 %v8203_v33  ;;  %v8278_v33 = vld [vmem:[%s11775_s3 + $0x524] ss:$16 sps:$4 sm:$0xff]  }
 0x2e0   : > { %5535 = vmatpush1.bf16.msra.mxu0 %v8198_v39  ;;  %v8281_v39 = vld [vmem:[%s11775_s3 + $0x52c] ss:$16 sps:$4 sm:$0xff]  }
 0x2e1   : > { %5863 = vmatpush1.bf16.msra.mxu1 %v8201_v44  ;;  %5536 = vmatprep.subr.bf16.mxu0 %v8206_v35  ;;  %v8276_v44 = vld [vmem:[%s11775_s3 + $0x520] ss:$16 sps:$4 sm:$0xff]   ;;  %v8279_v35 = vld [vmem:[%s11775_s3 + $0x528] ss:$16 sps:$4 sm:$0xff]  }
 0x2e2   : > { %5864 = vmatprep.subr.bf16.mxu1 %v8209_v36  ;;  %v8284_v36 = vld [vmem:[%s11775_s3 + $0x544] ss:$16 sps:$4 sm:$0xff]  }
 0x2e4   : > { %5537 = vmatpush1.bf16.msra.mxu0 %v8204_v37  ;;  %v8287_v37 = vld [vmem:[%s11775_s3 + $0x54c] ss:$16 sps:$4 sm:$0xff]  }
 0x2e5   : > { %5865 = vmatpush1.bf16.msra.mxu1 %v8207_v16  ;;  %5538 = vmatprep.subr.bf16.mxu0 %v8212_v4  ;;  %v8282_v16 = vld [vmem:[%s11775_s3 + $0x540] ss:$16 sps:$4 sm:$0xff]   ;;  %v8285_v4 = vld [vmem:[%s11775_s3 + $0x548] ss:$16 sps:$4 sm:$0xff]  }
 0x2e6   : > { %5866 = vmatprep.subr.bf16.mxu1 %v8215_v52  ;;  %v8290_v52 = vld [vmem:[%s11775_s3 + $0x564] ss:$16 sps:$4 sm:$0xff]  }
 0x2e8   : > { %5539 = vmatpush1.bf16.msra.mxu0 %v8210_v38  ;;  %v8293_v38 = vld [vmem:[%s11775_s3 + $0x56c] ss:$16 sps:$4 sm:$0xff]  }
 0x2e9   : > { %5867 = vmatpush1.bf16.msra.mxu1 %v8213_v41  ;;  %5540 = vmatprep.subr.bf16.mxu0 %v8218_v43  ;;  %v8288_v41 = vld [vmem:[%s11775_s3 + $0x560] ss:$16 sps:$4 sm:$0xff]   ;;  %v8291_v43 = vld [vmem:[%s11775_s3 + $0x568] ss:$16 sps:$4 sm:$0xff]  }
 0x2ea   : > { %5868 = vmatprep.subr.bf16.mxu1 %v8221_v46  ;;  %v8296_v46 = vld [vmem:[%s11775_s3 + $0x584] ss:$16 sps:$4 sm:$0xff]  }
 0x2ec   : > { %5541 = vmatpush1.bf16.msra.mxu0 %v8216_v49  ;;  %v8299_v49 = vld [vmem:[%s11775_s3 + $0x58c] ss:$16 sps:$4 sm:$0xff]  }
 0x2ed   : > { %5869 = vmatpush1.bf16.msra.mxu1 %v8219_v50  ;;  %5551 = vmatprep.subr.bf16.mxu0 %v8224_v10  ;;  %v8297_v50 = vld [vmem:[%s11775_s3 + $0x588] ss:$16 sps:$4 sm:$0xff]   ;;  %v8302_v10 = vld [vmem:[%s11775_s3 + $0x5a4] ss:$16 sps:$4 sm:$0xff]  }
 0x2ee   : > { %5879 = vmatprep.subr.bf16.mxu1 %v8227_v53  ;;  %v8305_v53 = vld [vmem:[%s11775_s3 + $0x5ac] ss:$16 sps:$4 sm:$0xff]  }
 0x2ef   : > { %5543 = vmatmul.mubr.bf16.vlgmr.msra.gmra.mrb[0].mxu0 %v2361_v56 }
 0x2f0   : > { %5871 = vmatmul.mubr.bf16.vlgmr.msra.gmra.mrb[0].mxu1 %v2361_v56  ;;  %5552 = vmatpush1.bf16.msra.mxu0 %v8222_v6  ;;  %v8303_v6 = vld [vmem:[%s11775_s3 + $0x5a8] ss:$16 sps:$4 sm:$0xff]   ;;  %v8308_v56 = vld [vmem:[%s11775_s3 + $0x5c4] ss:$16 sps:$4 sm:$0xff]  }
 0x2f1   : > { %5880 = vmatpush1.bf16.msra.mxu1 %v8225_v7  ;;  %5553 = vmatprep.subr.bf16.mxu0 %v8230_v13  ;;  %v8311_v7 = vld [vmem:[%s11775_s3 + $0x5cc] ss:$16 sps:$4 sm:$0xff]   ;;  %v8306_v13 = vld [vmem:[%s11775_s3 + $0x5c0] ss:$16 sps:$4 sm:$0xff]  }
 0x2f2   : > { %5881 = vmatprep.subr.bf16.mxu1 %v8233_v57  ;;  %5583 = vmatprep.mubr.bf16.mxu0 %v2364_v23  ;;  %v2297_v57 = vsub.s32 4, %v9342_v63 }
 0x2f3   : > { %5911 = vmatprep.mubr.bf16.mxu1 %v2364_v23  ;;  %v8309_v23 = vld [vmem:[%s11775_s3 + $0x5c8] ss:$16 sps:$4 sm:$0xff]  }
 0x2f4   : > { %5554 = vmatpush1.bf16.msra.mxu0 %v8228_v45  ;;  %v8314_v45 = vld [vmem:[%s11775_s3 + $0x5e4] ss:$16 sps:$4 sm:$0xff]  }
 0x2f5   : > { %5882 = vmatpush1.bf16.msra.mxu1 %v8231_v58  ;;  %5555 = vmatprep.subr.bf16.mxu0 %v8236_v59  ;;  %v8317_v58 = vld [vmem:[%s11775_s3 + $0x5ec] ss:$16 sps:$4 sm:$0xff]   ;;  %v2309_v59 = vsub.s32 7, %v9342_v63 }
 0x2f6   : > { %5883 = vmatprep.subr.bf16.mxu1 %v8239_v60  ;;  %v8312_v60 = vld [vmem:[%s11775_s3 + $0x5e0] ss:$16 sps:$4 sm:$0xff]  }
 0x2f8   : > { %5556 = vmatpush1.bf16.msra.mxu0 %v8234_v61  ;;  %v2298_v61 = vrot.slane %v9896_v18, %v2297_v57 }
 0x2f9   : > { %5884 = vmatpush1.bf16.msra.mxu1 %v8237_v1  ;;  %5557 = vmatprep.subr.bf16.mxu0 %v8242_v2  ;;  %v8315_v1 = vld [vmem:[%s11775_s3 + $0x5e8] ss:$16 sps:$4 sm:$0xff]   ;;  %v8320_v2 = vld [vmem:[%s11775_s3 + $0x604] ss:$16 sps:$4 sm:$0xff]  }
 0x2fa   : > { %5885 = vmatprep.subr.bf16.mxu1 %v8245_v8  ;;  %v8323_v8 = vld [vmem:[%s11775_s3 + $0x60c] ss:$16 sps:$4 sm:$0xff]  }
 0x2fc   : > { %5558 = vmatpush1.bf16.msra.mxu0 %v8240_v11  ;;  %v2310_v11 = vrot.slane %v9896_v18, %v2309_v59 }
 0x2fd   : > { %5886 = vmatpush1.bf16.msra.mxu1 %v8243_v51  ;;  %5559 = vmatprep.subr.bf16.mxu0 %v8248_v12  ;;  %v8318_v51 = vld [vmem:[%s11775_s3 + $0x600] ss:$16 sps:$4 sm:$0xff]   ;;  %v2363_v12 = vpack.c.bf16 %v2298_v61, %v2298_v61  ;;  %v8392_v61 = vld [vmem:[%s11775_s3 + $0x784] ss:$16 sps:$4 sm:$0xff]  }
 0x2fe   : > { %5887 = vmatprep.subr.bf16.mxu1 %v8251_v19  ;;  %v8321_v19 = vld [vmem:[%s11775_s3 + $0x608] ss:$16 sps:$4 sm:$0xff]  }
 0x300   : > { %5560 = vmatpush1.bf16.msra.mxu0 %v8246_v14  ;;  %v8326_v14 = vld [vmem:[%s11775_s3 + $0x624] ss:$16 sps:$4 sm:$0xff]  }
 0x301   : > { %5888 = vmatpush1.bf16.msra.mxu1 %v8249_v15  ;;  %5561 = vmatprep.subr.bf16.mxu0 %v8254_v17  ;;  %v8329_v15 = vld [vmem:[%s11775_s3 + $0x62c] ss:$16 sps:$4 sm:$0xff]   ;;  %v2366_v17 = vpack.c.bf16 %v2310_v11, %v2310_v11  ;;  %v8398_v11 = vld [vmem:[%s11775_s3 + $0x7a4] ss:$16 sps:$4 sm:$0xff]  }
 0x302   : > { %5889 = vmatprep.subr.bf16.mxu1 %v8257_v24  ;;  %v8324_v24 = vld [vmem:[%s11775_s3 + $0x620] ss:$16 sps:$4 sm:$0xff]  }
 0x304   : > { %5562 = vmatpush1.bf16.msra.mxu0 %v8252_v30  ;;  %v8327_v30 = vld [vmem:[%s11775_s3 + $0x628] ss:$16 sps:$4 sm:$0xff]  }
 0x305   : > { %5890 = vmatpush1.bf16.msra.mxu1 %v8255_v20  ;;  %5563 = vmatprep.subr.bf16.mxu0 %v8260_v21  ;;  %v8332_v20 = vld [vmem:[%s11775_s3 + $0x644] ss:$16 sps:$4 sm:$0xff]   ;;  %v8335_v21 = vld [vmem:[%s11775_s3 + $0x64c] ss:$16 sps:$4 sm:$0xff]  }
 0x306   : > { %5891 = vmatprep.subr.bf16.mxu1 %v8263_v22  ;;  %v8330_v22 = vld [vmem:[%s11775_s3 + $0x640] ss:$16 sps:$4 sm:$0xff]  }
 0x308   : > { %5564 = vmatpush1.bf16.msra.mxu0 %v8258_v42  ;;  %v8333_v42 = vld [vmem:[%s11775_s3 + $0x648] ss:$16 sps:$4 sm:$0xff]  }
 0x309   : > { %5892 = vmatpush1.bf16.msra.mxu1 %v8261_v25  ;;  %5565 = vmatprep.subr.bf16.mxu0 %v8266_v26  ;;  %v8338_v25 = vld [vmem:[%s11775_s3 + $0x664] ss:$16 sps:$4 sm:$0xff]   ;;  %v8341_v26 = vld [vmem:[%s11775_s3 + $0x66c] ss:$16 sps:$4 sm:$0xff]  }
 0x30a   : > { %5893 = vmatprep.subr.bf16.mxu1 %v8269_v27  ;;  %v8336_v27 = vld [vmem:[%s11775_s3 + $0x660] ss:$16 sps:$4 sm:$0xff]  }
 0x30c   : > { %5566 = vmatpush1.bf16.msra.mxu0 %v8264_v28  ;;  %v8339_v28 = vld [vmem:[%s11775_s3 + $0x668] ss:$16 sps:$4 sm:$0xff]  }
 0x30d   : > { %5894 = vmatpush1.bf16.msra.mxu1 %v8267_v29  ;;  %5567 = vmatprep.subr.bf16.mxu0 %v8272_v31  ;;  %v8344_v29 = vld [vmem:[%s11775_s3 + $0x684] ss:$16 sps:$4 sm:$0xff]   ;;  %v8347_v31 = vld [vmem:[%s11775_s3 + $0x68c] ss:$16 sps:$4 sm:$0xff]  }
 0x30e   : > { %5895 = vmatprep.subr.bf16.mxu1 %v8275_v32  ;;  %v8342_v32 = vld [vmem:[%s11775_s3 + $0x680] ss:$16 sps:$4 sm:$0xff]  }
 0x310   : > { %5568 = vmatpush1.bf16.msra.mxu0 %v8270_v55  ;;  %v8345_v55 = vld [vmem:[%s11775_s3 + $0x688] ss:$16 sps:$4 sm:$0xff]  }
 0x311   : > { %5896 = vmatpush1.bf16.msra.mxu1 %v8273_v48  ;;  %5569 = vmatprep.subr.bf16.mxu0 %v8278_v33  ;;  %v8350_v48 = vld [vmem:[%s11775_s3 + $0x6a4] ss:$16 sps:$4 sm:$0xff]   ;;  %v8353_v33 = vld [vmem:[%s11775_s3 + $0x6ac] ss:$16 sps:$4 sm:$0xff]  }
 0x312   : > { %5897 = vmatprep.subr.bf16.mxu1 %v8281_v39  ;;  %v8348_v39 = vld [vmem:[%s11775_s3 + $0x6a0] ss:$16 sps:$4 sm:$0xff]  }
 0x314   : > { %5570 = vmatpush1.bf16.msra.mxu0 %v8276_v44  ;;  %v8351_v44 = vld [vmem:[%s11775_s3 + $0x6a8] ss:$16 sps:$4 sm:$0xff]  }
 0x315   : > { %5898 = vmatpush1.bf16.msra.mxu1 %v8279_v35  ;;  %5571 = vmatprep.subr.bf16.mxu0 %v8284_v36  ;;  %v8356_v35 = vld [vmem:[%s11775_s3 + $0x6c4] ss:$16 sps:$4 sm:$0xff]   ;;  %v8359_v36 = vld [vmem:[%s11775_s3 + $0x6cc] ss:$16 sps:$4 sm:$0xff]  }
 0x316   : > { %5899 = vmatprep.subr.bf16.mxu1 %v8287_v37  ;;  %v8354_v37 = vld [vmem:[%s11775_s3 + $0x6c0] ss:$16 sps:$4 sm:$0xff]  }
 0x318   : > { %5572 = vmatpush1.bf16.msra.mxu0 %v8282_v16  ;;  %v8357_v16 = vld [vmem:[%s11775_s3 + $0x6c8] ss:$16 sps:$4 sm:$0xff]  }
 0x319   : > { %5900 = vmatpush1.bf16.msra.mxu1 %v8285_v4  ;;  %5573 = vmatprep.subr.bf16.mxu0 %v8290_v52  ;;  %v8362_v4 = vld [vmem:[%s11775_s3 + $0x6e4] ss:$16 sps:$4 sm:$0xff]   ;;  %v8365_v52 = vld [vmem:[%s11775_s3 + $0x6ec] ss:$16 sps:$4 sm:$0xff]  }
 0x31a   : > { %5901 = vmatprep.subr.bf16.mxu1 %v8293_v38  ;;  %v8360_v38 = vld [vmem:[%s11775_s3 + $0x6e0] ss:$16 sps:$4 sm:$0xff]  }
 0x31c   : > { %5574 = vmatpush1.bf16.msra.mxu0 %v8288_v41  ;;  %v8363_v41 = vld [vmem:[%s11775_s3 + $0x6e8] ss:$16 sps:$4 sm:$0xff]  }
 0x31d   : > { %5902 = vmatpush1.bf16.msra.mxu1 %v8291_v43  ;;  %5575 = vmatprep.subr.bf16.mxu0 %v8296_v46  ;;  %v8368_v43 = vld [vmem:[%s11775_s3 + $0x704] ss:$16 sps:$4 sm:$0xff]   ;;  %v8371_v46 = vld [vmem:[%s11775_s3 + $0x70c] ss:$16 sps:$4 sm:$0xff]  }
 0x31e   : > { %5903 = vmatprep.subr.bf16.mxu1 %v8299_v49  ;;  %v8366_v49 = vld [vmem:[%s11775_s3 + $0x700] ss:$16 sps:$4 sm:$0xff]  }
 0x320   : > { %5576 = vmatpush1.bf16.msra.mxu0 %v8294_v9  ;;  %v8369_v9 = vld [vmem:[%s11775_s3 + $0x708] ss:$16 sps:$4 sm:$0xff]  }
 0x321   : > { %5904 = vmatpush1.bf16.msra.mxu1 %v8297_v50  ;;  %5577 = vmatprep.subr.bf16.mxu0 %v8302_v10  ;;  %v8374_v50 = vld [vmem:[%s11775_s3 + $0x724] ss:$16 sps:$4 sm:$0xff]   ;;  %v8377_v10 = vld [vmem:[%s11775_s3 + $0x72c] ss:$16 sps:$4 sm:$0xff]  }
 0x322   : > { %5905 = vmatprep.subr.bf16.mxu1 %v8305_v53  ;;  %v8372_v53 = vld [vmem:[%s11775_s3 + $0x720] ss:$16 sps:$4 sm:$0xff]  }
 0x324   : > { %5578 = vmatpush1.bf16.msra.mxu0 %v8300_v54  ;;  %v8375_v54 = vld [vmem:[%s11775_s3 + $0x728] ss:$16 sps:$4 sm:$0xff]  }
 0x325   : > { %5906 = vmatpush1.bf16.msra.mxu1 %v8303_v6  ;;  %5579 = vmatprep.subr.bf16.mxu0 %v8308_v56  ;;  %v8380_v6 = vld [vmem:[%s11775_s3 + $0x744] ss:$16 sps:$4 sm:$0xff]   ;;  %v8383_v56 = vld [vmem:[%s11775_s3 + $0x74c] ss:$16 sps:$4 sm:$0xff]  }
 0x326   : > { %5907 = vmatprep.subr.bf16.mxu1 %v8311_v7  ;;  %v8378_v7 = vld [vmem:[%s11775_s3 + $0x740] ss:$16 sps:$4 sm:$0xff]  }
 0x328   : > { %5580 = vmatpush1.bf16.msra.mxu0 %v8306_v13  ;;  %v8381_v13 = vld [vmem:[%s11775_s3 + $0x748] ss:$16 sps:$4 sm:$0xff]  }
 0x329   : > { %5908 = vmatpush1.bf16.msra.mxu1 %v8309_v23  ;;  %5581 = vmatprep.subr.bf16.mxu0 %v8314_v45  ;;  %v8386_v23 = vld [vmem:[%s11775_s3 + $0x764] ss:$16 sps:$4 sm:$0xff]   ;;  %v8389_v45 = vld [vmem:[%s11775_s3 + $0x76c] ss:$16 sps:$4 sm:$0xff]  }
 0x32a   : > { %5909 = vmatprep.subr.bf16.mxu1 %v8317_v58  ;;  %v8384_v58 = vld [vmem:[%s11775_s3 + $0x760] ss:$16 sps:$4 sm:$0xff]  }
 0x32c   : > { %5582 = vmatpush1.bf16.msra.mxu0 %v8312_v60  ;;  %v8387_v60 = vld [vmem:[%s11775_s3 + $0x768] ss:$16 sps:$4 sm:$0xff]  }
 0x32d   : > { %5910 = vmatpush1.bf16.msra.mxu1 %v8315_v1  ;;  %5592 = vmatprep.subr.bf16.mxu0 %v8320_v2  ;;  %v8395_v1 = vld [vmem:[%s11775_s3 + $0x78c] ss:$16 sps:$4 sm:$0xff]   ;;  %v8390_v2 = vld [vmem:[%s11775_s3 + $0x780] ss:$16 sps:$4 sm:$0xff]  }
 0x32e   : > { %5920 = vmatprep.subr.bf16.mxu1 %v8323_v8  ;;  %v8393_v8 = vld [vmem:[%s11775_s3 + $0x788] ss:$16 sps:$4 sm:$0xff]  }
 0x32f   : > { %5584 = vmatmul.mubr.bf16.vlgmr.msra.gmra.mrb[0].mxu0 %v2363_v12 }
 0x330   : > { %5912 = vmatmul.mubr.bf16.vlgmr.msra.gmra.mrb[0].mxu1 %v2363_v12  ;;  %5593 = vmatpush1.bf16.msra.mxu0 %v8318_v51  ;;  %v8401_v51 = vld [vmem:[%s11775_s3 + $0x7ac] ss:$16 sps:$4 sm:$0xff]   ;;  %v8396_v12 = vld [vmem:[%s11775_s3 + $0x7a0] ss:$16 sps:$4 sm:$0xff]  }
 0x331   : > { %5921 = vmatpush1.bf16.msra.mxu1 %v8321_v19  ;;  %5594 = vmatprep.subr.bf16.mxu0 %v8326_v14  ;;  %v8399_v19 = vld [vmem:[%s11775_s3 + $0x7a8] ss:$16 sps:$4 sm:$0xff]   ;;  %v8404_v14 = vld [vmem:[%s11775_s3 + $0x7c4] ss:$16 sps:$4 sm:$0xff]  }
 0x332   : > { %5922 = vmatprep.subr.bf16.mxu1 %v8329_v15  ;;  %5624 = vmatprep.mubr.bf16.mxu0 %v2366_v17  ;;  %v8407_v15 = vld [vmem:[%s11775_s3 + $0x7cc] ss:$16 sps:$4 sm:$0xff]  }
 0x333   : > { %5952 = vmatprep.mubr.bf16.mxu1 %v2366_v17  ;;  %v2305_v17 = vsub.s32 6, %v9342_v63  ;;  %v8803_v63 = vld [vmem:[%s11777_s5 + $0xc] ss:$16 sps:$4 sm:$0xff]  }
 0x334   : > { %5595 = vmatpush1.bf16.msra.mxu0 %v8324_v24  ;;  %v2274_v24 = vld [vmem:[#allocation2 + $0x8] sm:$0xff] }
 0x335   : > { %5923 = vmatpush1.bf16.msra.mxu1 %v8327_v30  ;;  %5596 = vmatprep.subr.bf16.mxu0 %v8332_v20  ;;  %v8402_v30 = vld [vmem:[%s11775_s3 + $0x7c0] ss:$16 sps:$4 sm:$0xff]   ;;  %v8405_v20 = vld [vmem:[%s11775_s3 + $0x7c8] ss:$16 sps:$4 sm:$0xff]  }
 0x336   : > { %5924 = vmatprep.subr.bf16.mxu1 %v8335_v21  ;;  %v8410_v21 = vld [vmem:[%s11775_s3 + $0x7e4] ss:$16 sps:$4 sm:$0xff]  }
 0x338   : > { %5597 = vmatpush1.bf16.msra.mxu0 %v8330_v22  ;;  %v8413_v22 = vld [vmem:[%s11775_s3 + $0x7ec] ss:$16 sps:$4 sm:$0xff]  }
 0x339   : > { %5925 = vmatpush1.bf16.msra.mxu1 %v8333_v42  ;;  %5598 = vmatprep.subr.bf16.mxu0 %v8338_v25  ;;  %v10546_v42 = vmul.f32 0.00390625, %v2274_v24  ;;  %v2306_v25 = vrot.slane %v9896_v18, %v2305_v17  ;;  %v8419_v18 = vld [vmem:[%s11775_s3 + $0x80c] ss:$16 sps:$4 sm:$0xff]  }
 0x33a   : > { %5926 = vmatprep.subr.bf16.mxu1 %v8341_v26  ;;  %v8408_v26 = vld [vmem:[%s11775_s3 + $0x7e0] ss:$16 sps:$4 sm:$0xff]   ;;  %v8479_v24 = vld [vmem:[%s11775_s3 + $0x94c] ss:$16 sps:$4 sm:$0xff]  }
 0x33c   : > { %5599 = vmatpush1.bf16.msra.mxu0 %v8336_v27  ;;  %v8411_v27 = vld [vmem:[%s11775_s3 + $0x7e8] ss:$16 sps:$4 sm:$0xff]  }
 0x33d   : > { %5927 = vmatpush1.bf16.msra.mxu1 %v8339_v28  ;;  %5600 = vmatprep.subr.bf16.mxu0 %v8344_v29  ;;  %v8416_v28 = vld [vmem:[%s11775_s3 + $0x804] ss:$16 sps:$4 sm:$0xff]   ;;  %v2318_v29 = vrot.slane %v10546_v42, %v9356_v3 }
 0x33e   : > { %5928 = vmatprep.subr.bf16.mxu1 %v8347_v31  ;;  %v2365_v31 = vpack.c.bf16 %v2306_v25, %v2306_v25  ;;  %v8480_v25 = vld [vmem:[%s11775_s3 + $0x960] ss:$16 sps:$4 sm:$0xff]  }
 0x340   : > { %5601 = vmatpush1.bf16.msra.mxu0 %v8342_v32  ;;  %v8414_v32 = vld [vmem:[%s11775_s3 + $0x800] ss:$16 sps:$4 sm:$0xff]  }
 0x341   : > { %5929 = vmatpush1.bf16.msra.mxu1 %v8345_v55  ;;  %5602 = vmatprep.subr.bf16.mxu0 %v8350_v48  ;;  %v8417_v55 = vld [vmem:[%s11775_s3 + $0x808] ss:$16 sps:$4 sm:$0xff]   ;;  %v8422_v48 = vld [vmem:[%s11775_s3 + $0x824] ss:$16 sps:$4 sm:$0xff]  }
 0x342   : > { %5930 = vmatprep.subr.bf16.mxu1 %v8353_v33  ;;  %v8425_v33 = vld [vmem:[%s11775_s3 + $0x82c] ss:$16 sps:$4 sm:$0xff]  }
 0x344   : > { %5603 = vmatpush1.bf16.msra.mxu0 %v8348_v39  ;;  %v2368_v39 = vpack.c.bf16 %v2318_v29, %v2318_v29  ;;  %v8489_v29 = vld [vmem:[%s11775_s3 + $0x988] ss:$16 sps:$4 sm:$0xff]  }
 0x345   : > { %5931 = vmatpush1.bf16.msra.mxu1 %v8351_v44  ;;  %5604 = vmatprep.subr.bf16.mxu0 %v8356_v35  ;;  %v8420_v44 = vld [vmem:[%s11775_s3 + $0x820] ss:$16 sps:$4 sm:$0xff]   ;;  %v8423_v35 = vld [vmem:[%s11775_s3 + $0x828] ss:$16 sps:$4 sm:$0xff]  }
 0x346   : > { %5932 = vmatprep.subr.bf16.mxu1 %v8359_v36  ;;  %v8428_v36 = vld [vmem:[%s11775_s3 + $0x844] ss:$16 sps:$4 sm:$0xff]  }
 0x348   : > { %5605 = vmatpush1.bf16.msra.mxu0 %v8354_v37  ;;  %v8431_v37 = vld [vmem:[%s11775_s3 + $0x84c] ss:$16 sps:$4 sm:$0xff]  }
 0x349   : > { %5933 = vmatpush1.bf16.msra.mxu1 %v8357_v16  ;;  %5606 = vmatprep.subr.bf16.mxu0 %v8362_v4  ;;  %v8426_v16 = vld [vmem:[%s11775_s3 + $0x840] ss:$16 sps:$4 sm:$0xff]   ;;  %v8429_v4 = vld [vmem:[%s11775_s3 + $0x848] ss:$16 sps:$4 sm:$0xff]  }
 0x34a   : > { %5934 = vmatprep.subr.bf16.mxu1 %v8365_v52  ;;  %v8434_v52 = vld [vmem:[%s11775_s3 + $0x864] ss:$16 sps:$4 sm:$0xff]  }
 0x34c   : > { %5607 = vmatpush1.bf16.msra.mxu0 %v8360_v38  ;;  %v8437_v38 = vld [vmem:[%s11775_s3 + $0x86c] ss:$16 sps:$4 sm:$0xff]  }
 0x34d   : > { %5935 = vmatpush1.bf16.msra.mxu1 %v8363_v41  ;;  %5608 = vmatprep.subr.bf16.mxu0 %v8368_v43  ;;  %v8432_v41 = vld [vmem:[%s11775_s3 + $0x860] ss:$16 sps:$4 sm:$0xff]   ;;  %v8435_v43 = vld [vmem:[%s11775_s3 + $0x868] ss:$16 sps:$4 sm:$0xff]  }
 0x34e   : > { %5936 = vmatprep.subr.bf16.mxu1 %v8371_v46  ;;  %v8440_v46 = vld [vmem:[%s11775_s3 + $0x884] ss:$16 sps:$4 sm:$0xff]  }
 0x350   : > { %5609 = vmatpush1.bf16.msra.mxu0 %v8366_v49  ;;  %v8443_v49 = vld [vmem:[%s11775_s3 + $0x88c] ss:$16 sps:$4 sm:$0xff]  }
 0x351   : > { %5937 = vmatpush1.bf16.msra.mxu1 %v8369_v9  ;;  %5610 = vmatprep.subr.bf16.mxu0 %v8374_v50  ;;  %v8438_v9 = vld [vmem:[%s11775_s3 + $0x880] ss:$16 sps:$4 sm:$0xff]   ;;  %v8441_v50 = vld [vmem:[%s11775_s3 + $0x888] ss:$16 sps:$4 sm:$0xff]  }
 0x352   : > { %5938 = vmatprep.subr.bf16.mxu1 %v8377_v10  ;;  %v8446_v10 = vld [vmem:[%s11775_s3 + $0x8a4] ss:$16 sps:$4 sm:$0xff]  }
 0x354   : > { %5611 = vmatpush1.bf16.msra.mxu0 %v8372_v53  ;;  %v8449_v53 = vld [vmem:[%s11775_s3 + $0x8ac] ss:$16 sps:$4 sm:$0xff]  }
 0x355   : > { %5939 = vmatpush1.bf16.msra.mxu1 %v8375_v54  ;;  %5612 = vmatprep.subr.bf16.mxu0 %v8380_v6  ;;  %v8444_v54 = vld [vmem:[%s11775_s3 + $0x8a0] ss:$16 sps:$4 sm:$0xff]   ;;  %v8447_v6 = vld [vmem:[%s11775_s3 + $0x8a8] ss:$16 sps:$4 sm:$0xff]  }
 0x356   : > { %5940 = vmatprep.subr.bf16.mxu1 %v8383_v56  ;;  %v8452_v56 = vld [vmem:[%s11775_s3 + $0x8c4] ss:$16 sps:$4 sm:$0xff]  }
 0x358   : > { %5613 = vmatpush1.bf16.msra.mxu0 %v8378_v7  ;;  %v8455_v7 = vld [vmem:[%s11775_s3 + $0x8cc] ss:$16 sps:$4 sm:$0xff]  }
 0x359   : > { %5941 = vmatpush1.bf16.msra.mxu1 %v8381_v13  ;;  %5614 = vmatprep.subr.bf16.mxu0 %v8386_v23  ;;  %v8450_v13 = vld [vmem:[%s11775_s3 + $0x8c0] ss:$16 sps:$4 sm:$0xff]   ;;  %v8453_v23 = vld [vmem:[%s11775_s3 + $0x8c8] ss:$16 sps:$4 sm:$0xff]  }
 0x35a   : > { %5942 = vmatprep.subr.bf16.mxu1 %v8389_v45  ;;  %v8458_v45 = vld [vmem:[%s11775_s3 + $0x8e4] ss:$16 sps:$4 sm:$0xff]  }
 0x35c   : > { %5615 = vmatpush1.bf16.msra.mxu0 %v8384_v58  ;;  %v8461_v58 = vld [vmem:[%s11775_s3 + $0x8ec] ss:$16 sps:$4 sm:$0xff]  }
 0x35d   : > { %5943 = vmatpush1.bf16.msra.mxu1 %v8387_v60  ;;  %5616 = vmatprep.subr.bf16.mxu0 %v8392_v61  ;;  %v8456_v60 = vld [vmem:[%s11775_s3 + $0x8e0] ss:$16 sps:$4 sm:$0xff]   ;;  %v8459_v61 = vld [vmem:[%s11775_s3 + $0x8e8] ss:$16 sps:$4 sm:$0xff]  }
 0x35e   : > { %5944 = vmatprep.subr.bf16.mxu1 %v8395_v1  ;;  %v8464_v1 = vld [vmem:[%s11775_s3 + $0x904] ss:$16 sps:$4 sm:$0xff]  }
 0x360   : > { %5617 = vmatpush1.bf16.msra.mxu0 %v8390_v2  ;;  %v8467_v2 = vld [vmem:[%s11775_s3 + $0x90c] ss:$16 sps:$4 sm:$0xff]  }
 0x361   : > { %5945 = vmatpush1.bf16.msra.mxu1 %v8393_v8  ;;  %5618 = vmatprep.subr.bf16.mxu0 %v8398_v11  ;;  %v8462_v8 = vld [vmem:[%s11775_s3 + $0x900] ss:$16 sps:$4 sm:$0xff]   ;;  %v8465_v11 = vld [vmem:[%s11775_s3 + $0x908] ss:$16 sps:$4 sm:$0xff]  }
 0x362   : > { %5946 = vmatprep.subr.bf16.mxu1 %v8401_v51  ;;  %v8470_v51 = vld [vmem:[%s11775_s3 + $0x924] ss:$16 sps:$4 sm:$0xff]  }
 0x364   : > { %5619 = vmatpush1.bf16.msra.mxu0 %v8396_v12  ;;  %v8473_v12 = vld [vmem:[%s11775_s3 + $0x92c] ss:$16 sps:$4 sm:$0xff]  }
 0x365   : > { %5947 = vmatpush1.bf16.msra.mxu1 %v8399_v19  ;;  %5620 = vmatprep.subr.bf16.mxu0 %v8404_v14  ;;  %v8468_v19 = vld [vmem:[%s11775_s3 + $0x920] ss:$16 sps:$4 sm:$0xff]   ;;  %v8471_v14 = vld [vmem:[%s11775_s3 + $0x928] ss:$16 sps:$4 sm:$0xff]  }
 0x366   : > { %5948 = vmatprep.subr.bf16.mxu1 %v8407_v15  ;;  %v8476_v15 = vld [vmem:[%s11775_s3 + $0x944] ss:$16 sps:$4 sm:$0xff]  }
 0x368   : > { %5621 = vmatpush1.bf16.msra.mxu0 %v8402_v30  ;;  %v8474_v30 = vld [vmem:[%s11775_s3 + $0x940] ss:$16 sps:$4 sm:$0xff]  }
 0x369   : > { %5949 = vmatpush1.bf16.msra.mxu1 %v8405_v20  ;;  %5622 = vmatprep.subr.bf16.mxu0 %v8410_v21  ;;  %v8477_v20 = vld [vmem:[%s11775_s3 + $0x948] ss:$16 sps:$4 sm:$0xff]   ;;  %v8482_v21 = vld [vmem:[%s11775_s3 + $0x964] ss:$16 sps:$4 sm:$0xff]  }
 0x36a   : > { %5950 = vmatprep.subr.bf16.mxu1 %v8413_v22  ;;  %v8485_v22 = vld [vmem:[%s11775_s3 + $0x96c] ss:$16 sps:$4 sm:$0xff]  }
 0x36c   : > { %5623 = vmatpush1.bf16.msra.mxu0 %v8408_v26  ;;  %v8483_v26 = vld [vmem:[%s11775_s3 + $0x968] ss:$16 sps:$4 sm:$0xff]  }
 0x36d   : > { %5951 = vmatpush1.bf16.msra.mxu1 %v8411_v27  ;;  %5633 = vmatprep.subr.bf16.mxu0 %v8416_v28  ;;  %v8488_v27 = vld [vmem:[%s11775_s3 + $0x984] ss:$16 sps:$4 sm:$0xff]   ;;  %v8491_v28 = vld [vmem:[%s11775_s3 + $0x98c] ss:$16 sps:$4 sm:$0xff]  }
 0x36e   : > { %5961 = vmatprep.subr.bf16.mxu1 %v8419_v18  ;;  %v8486_v18 = vld [vmem:[%s11775_s3 + $0x980] ss:$16 sps:$4 sm:$0xff]  }
 0x36f   : > { %5625 = vmatmul.mubr.bf16.vlgmr.msra.gmra.mrb[0].mxu0 %v2365_v31 }
 0x370   : > { %5953 = vmatmul.mubr.bf16.vlgmr.msra.gmra.mrb[0].mxu1 %v2365_v31  ;;  %5634 = vmatpush1.bf16.msra.mxu0 %v8414_v32  ;;  %v8494_v31 = vld [vmem:[%s11775_s3 + $0x9a4] ss:$16 sps:$4 sm:$0xff]   ;;  %v8497_v32 = vld [vmem:[%s11775_s3 + $0x9ac] ss:$16 sps:$4 sm:$0xff]  }
 0x371   : > { %5962 = vmatpush1.bf16.msra.mxu1 %v8417_v55  ;;  %5635 = vmatprep.subr.bf16.mxu0 %v8422_v48  ;;  %v8492_v55 = vld [vmem:[%s11775_s3 + $0x9a0] ss:$16 sps:$4 sm:$0xff]   ;;  %v8495_v48 = vld [vmem:[%s11775_s3 + $0x9a8] ss:$16 sps:$4 sm:$0xff]  }
 0x372   : > { %5963 = vmatprep.subr.bf16.mxu1 %v8425_v33  ;;  %5665 = vmatprep.mubr.bf16.mxu0 %v2368_v39  ;;  %v8500_v33 = vld [vmem:[%s11775_s3 + $0x9c4] ss:$16 sps:$4 sm:$0xff]  }
 0x373   : > { %5993 = vmatprep.mubr.bf16.mxu1 %v2368_v39  ;;  %v8503_v39 = vld [vmem:[%s11775_s3 + $0x9cc] ss:$16 sps:$4 sm:$0xff]  }
 0x374   : > { %5636 = vmatpush1.bf16.msra.mxu0 %v8420_v44  ;;  %v8498_v44 = vld [vmem:[%s11775_s3 + $0x9c0] ss:$16 sps:$4 sm:$0xff]  }
 0x375   : > { %5964 = vmatpush1.bf16.msra.mxu1 %v8423_v35  ;;  %5637 = vmatprep.subr.bf16.mxu0 %v8428_v36  ;;  %v8501_v35 = vld [vmem:[%s11775_s3 + $0x9c8] ss:$16 sps:$4 sm:$0xff]   ;;  %v8506_v36 = vld [vmem:[%s11775_s3 + $0x9e4] ss:$16 sps:$4 sm:$0xff]  }
 0x376   : > { %5965 = vmatprep.subr.bf16.mxu1 %v8431_v37  ;;  %v8509_v37 = vld [vmem:[%s11775_s3 + $0x9ec] ss:$16 sps:$4 sm:$0xff]  }
 0x378   : > { %5638 = vmatpush1.bf16.msra.mxu0 %v8426_v16  ;;  %v2314_v16 = vrot.slane %v10546_v42, %v9347_v0 }
 0x379   : > { %5966 = vmatpush1.bf16.msra.mxu1 %v8429_v4  ;;  %5639 = vmatprep.subr.bf16.mxu0 %v8434_v52  ;;  %v8504_v4 = vld [vmem:[%s11775_s3 + $0x9e0] ss:$16 sps:$4 sm:$0xff]   ;;  %v8507_v52 = vld [vmem:[%s11775_s3 + $0x9e8] ss:$16 sps:$4 sm:$0xff]  }
 0x37a   : > { %5967 = vmatprep.subr.bf16.mxu1 %v8437_v38  ;;  %v8512_v38 = vld [vmem:[%s11775_s3 + $0xa04] ss:$16 sps:$4 sm:$0xff]  }
 0x37c   : > { %5640 = vmatpush1.bf16.msra.mxu0 %v8432_v41  ;;  %v8515_v41 = vld [vmem:[%s11775_s3 + $0xa0c] ss:$16 sps:$4 sm:$0xff]  }
 0x37d   : > { %5968 = vmatpush1.bf16.msra.mxu1 %v8435_v43  ;;  %5641 = vmatprep.subr.bf16.mxu0 %v8440_v46  ;;  %v2326_v43 = vrot.slane %v10546_v42, %v9946_v34  ;;  %v2367_v46 = vpack.c.bf16 %v2314_v16, %v2314_v16  ;;  %v8576_v16 = vld [vmem:[%s11775_s3 + $0xb60] ss:$16 sps:$4 sm:$0xff]  }
 0x37e   : > { %5969 = vmatprep.subr.bf16.mxu1 %v8443_v49  ;;  %v8510_v49 = vld [vmem:[%s11775_s3 + $0xa00] ss:$16 sps:$4 sm:$0xff]  }
 0x380   : > { %5642 = vmatpush1.bf16.msra.mxu0 %v8438_v9  ;;  %v8513_v9 = vld [vmem:[%s11775_s3 + $0xa08] ss:$16 sps:$4 sm:$0xff]  }
 0x381   : > { %5970 = vmatpush1.bf16.msra.mxu1 %v8441_v50  ;;  %5643 = vmatprep.subr.bf16.mxu0 %v8446_v10  ;;  %v8518_v50 = vld [vmem:[%s11775_s3 + $0xa24] ss:$16 sps:$4 sm:$0xff]   ;;  %v8521_v10 = vld [vmem:[%s11775_s3 + $0xa2c] ss:$16 sps:$4 sm:$0xff]  }
 0x382   : > { %5971 = vmatprep.subr.bf16.mxu1 %v8449_v53  ;;  %v2370_v53 = vpack.c.bf16 %v2326_v43, %v2326_v43  ;;  %v8585_v43 = vld [vmem:[%s11775_s3 + $0xb88] ss:$16 sps:$4 sm:$0xff]  }
 0x384   : > { %5644 = vmatpush1.bf16.msra.mxu0 %v8444_v54  ;;  %v8516_v54 = vld [vmem:[%s11775_s3 + $0xa20] ss:$16 sps:$4 sm:$0xff]  }
 0x385   : > { %5972 = vmatpush1.bf16.msra.mxu1 %v8447_v6  ;;  %5645 = vmatprep.subr.bf16.mxu0 %v8452_v56  ;;  %v8519_v6 = vld [vmem:[%s11775_s3 + $0xa28] ss:$16 sps:$4 sm:$0xff]   ;;  %v8524_v56 = vld [vmem:[%s11775_s3 + $0xa44] ss:$16 sps:$4 sm:$0xff]  }
 0x386   : > { %5973 = vmatprep.subr.bf16.mxu1 %v8455_v7  ;;  %v8527_v7 = vld [vmem:[%s11775_s3 + $0xa4c] ss:$16 sps:$4 sm:$0xff]  }
 0x388   : > { %5646 = vmatpush1.bf16.msra.mxu0 %v8450_v13  ;;  %v8522_v13 = vld [vmem:[%s11775_s3 + $0xa40] ss:$16 sps:$4 sm:$0xff]  }
 0x389   : > { %5974 = vmatpush1.bf16.msra.mxu1 %v8453_v23  ;;  %5647 = vmatprep.subr.bf16.mxu0 %v8458_v45  ;;  %v8525_v23 = vld [vmem:[%s11775_s3 + $0xa48] ss:$16 sps:$4 sm:$0xff]   ;;  %v8530_v45 = vld [vmem:[%s11775_s3 + $0xa64] ss:$16 sps:$4 sm:$0xff]  }
 0x38a   : > { %5975 = vmatprep.subr.bf16.mxu1 %v8461_v58  ;;  %v8533_v58 = vld [vmem:[%s11775_s3 + $0xa6c] ss:$16 sps:$4 sm:$0xff]  }
 0x38c   : > { %5648 = vmatpush1.bf16.msra.mxu0 %v8456_v60  ;;  %v8528_v60 = vld [vmem:[%s11775_s3 + $0xa60] ss:$16 sps:$4 sm:$0xff]  }
 0x38d   : > { %5976 = vmatpush1.bf16.msra.mxu1 %v8459_v61  ;;  %5649 = vmatprep.subr.bf16.mxu0 %v8464_v1  ;;  %v8531_v61 = vld [vmem:[%s11775_s3 + $0xa68] ss:$16 sps:$4 sm:$0xff]   ;;  %v8536_v1 = vld [vmem:[%s11775_s3 + $0xa84] ss:$16 sps:$4 sm:$0xff]  }
 0x38e   : > { %5977 = vmatprep.subr.bf16.mxu1 %v8467_v2  ;;  %v8539_v2 = vld [vmem:[%s11775_s3 + $0xa8c] ss:$16 sps:$4 sm:$0xff]  }
 0x390   : > { %5650 = vmatpush1.bf16.msra.mxu0 %v8462_v8  ;;  %v8534_v8 = vld [vmem:[%s11775_s3 + $0xa80] ss:$16 sps:$4 sm:$0xff]  }
 0x391   : > { %5978 = vmatpush1.bf16.msra.mxu1 %v8465_v11  ;;  %5651 = vmatprep.subr.bf16.mxu0 %v8470_v51  ;;  %v8537_v11 = vld [vmem:[%s11775_s3 + $0xa88] ss:$16 sps:$4 sm:$0xff]   ;;  %v8542_v51 = vld [vmem:[%s11775_s3 + $0xaa4] ss:$16 sps:$4 sm:$0xff]  }
 0x392   : > { %5979 = vmatprep.subr.bf16.mxu1 %v8473_v12  ;;  %v8545_v12 = vld [vmem:[%s11775_s3 + $0xaac] ss:$16 sps:$4 sm:$0xff]  }
 0x394   : > { %5652 = vmatpush1.bf16.msra.mxu0 %v8468_v19  ;;  %v8540_v19 = vld [vmem:[%s11775_s3 + $0xaa0] ss:$16 sps:$4 sm:$0xff]  }
 0x395   : > { %5980 = vmatpush1.bf16.msra.mxu1 %v8471_v14  ;;  %5653 = vmatprep.subr.bf16.mxu0 %v8476_v15  ;;  %v8543_v14 = vld [vmem:[%s11775_s3 + $0xaa8] ss:$16 sps:$4 sm:$0xff]   ;;  %v8548_v15 = vld [vmem:[%s11775_s3 + $0xac4] ss:$16 sps:$4 sm:$0xff]  }
 0x396   : > { %5981 = vmatprep.subr.bf16.mxu1 %v8479_v24  ;;  %v8551_v24 = vld [vmem:[%s11775_s3 + $0xacc] ss:$16 sps:$4 sm:$0xff]  }
 0x398   : > { %5654 = vmatpush1.bf16.msra.mxu0 %v8474_v30  ;;  %v8546_v30 = vld [vmem:[%s11775_s3 + $0xac0] ss:$16 sps:$4 sm:$0xff]  }
 0x399   : > { %5982 = vmatpush1.bf16.msra.mxu1 %v8477_v20  ;;  %5655 = vmatprep.subr.bf16.mxu0 %v8482_v21  ;;  %v8549_v20 = vld [vmem:[%s11775_s3 + $0xac8] ss:$16 sps:$4 sm:$0xff]   ;;  %v8554_v21 = vld [vmem:[%s11775_s3 + $0xae4] ss:$16 sps:$4 sm:$0xff]  }
 0x39a   : > { %5983 = vmatprep.subr.bf16.mxu1 %v8485_v22  ;;  %v8557_v22 = vld [vmem:[%s11775_s3 + $0xaec] ss:$16 sps:$4 sm:$0xff]  }
 0x39c   : > { %5656 = vmatpush1.bf16.msra.mxu0 %v8480_v25  ;;  %v8552_v25 = vld [vmem:[%s11775_s3 + $0xae0] ss:$16 sps:$4 sm:$0xff]  }
 0x39d   : > { %5984 = vmatpush1.bf16.msra.mxu1 %v8483_v26  ;;  %5657 = vmatprep.subr.bf16.mxu0 %v8488_v27  ;;  %v8555_v26 = vld [vmem:[%s11775_s3 + $0xae8] ss:$16 sps:$4 sm:$0xff]   ;;  %v8560_v27 = vld [vmem:[%s11775_s3 + $0xb04] ss:$16 sps:$4 sm:$0xff]  }
 0x39e   : > { %5985 = vmatprep.subr.bf16.mxu1 %v8491_v28  ;;  %v8563_v28 = vld [vmem:[%s11775_s3 + $0xb0c] ss:$16 sps:$4 sm:$0xff]  }
 0x3a0   : > { %5658 = vmatpush1.bf16.msra.mxu0 %v8486_v18  ;;  %v8558_v18 = vld [vmem:[%s11775_s3 + $0xb00] ss:$16 sps:$4 sm:$0xff]  }
 0x3a1   : > { %5986 = vmatpush1.bf16.msra.mxu1 %v8489_v29  ;;  %5659 = vmatprep.subr.bf16.mxu0 %v8494_v31  ;;  %v8561_v29 = vld [vmem:[%s11775_s3 + $0xb08] ss:$16 sps:$4 sm:$0xff]   ;;  %v8566_v31 = vld [vmem:[%s11775_s3 + $0xb24] ss:$16 sps:$4 sm:$0xff]  }
 0x3a2   : > { %5987 = vmatprep.subr.bf16.mxu1 %v8497_v32  ;;  %v8569_v32 = vld [vmem:[%s11775_s3 + $0xb2c] ss:$16 sps:$4 sm:$0xff]  }
 0x3a4   : > { %5660 = vmatpush1.bf16.msra.mxu0 %v8492_v55  ;;  %v8564_v55 = vld [vmem:[%s11775_s3 + $0xb20] ss:$16 sps:$4 sm:$0xff]  }
 0x3a5   : > { %5988 = vmatpush1.bf16.msra.mxu1 %v8495_v48  ;;  %5661 = vmatprep.subr.bf16.mxu0 %v8500_v33  ;;  %v8567_v48 = vld [vmem:[%s11775_s3 + $0xb28] ss:$16 sps:$4 sm:$0xff]   ;;  %v8572_v33 = vld [vmem:[%s11775_s3 + $0xb44] ss:$16 sps:$4 sm:$0xff]  }
 0x3a6   : > { %5989 = vmatprep.subr.bf16.mxu1 %v8503_v39  ;;  %v8575_v39 = vld [vmem:[%s11775_s3 + $0xb4c] ss:$16 sps:$4 sm:$0xff]  }
 0x3a8   : > { %5662 = vmatpush1.bf16.msra.mxu0 %v8498_v44  ;;  %v8570_v44 = vld [vmem:[%s11775_s3 + $0xb40] ss:$16 sps:$4 sm:$0xff]  }
 0x3a9   : > { %5990 = vmatpush1.bf16.msra.mxu1 %v8501_v35  ;;  %5663 = vmatprep.subr.bf16.mxu0 %v8506_v36  ;;  %v8573_v35 = vld [vmem:[%s11775_s3 + $0xb48] ss:$16 sps:$4 sm:$0xff]   ;;  %v8578_v36 = vld [vmem:[%s11775_s3 + $0xb64] ss:$16 sps:$4 sm:$0xff]  }
 0x3aa   : > { %5991 = vmatprep.subr.bf16.mxu1 %v8509_v37  ;;  %v8581_v37 = vld [vmem:[%s11775_s3 + $0xb6c] ss:$16 sps:$4 sm:$0xff]  }
 0x3ac   : > { %5664 = vmatpush1.bf16.msra.mxu0 %v8504_v4  ;;  %v8579_v4 = vld [vmem:[%s11775_s3 + $0xb68] ss:$16 sps:$4 sm:$0xff]  }
 0x3ad   : > { %5992 = vmatpush1.bf16.msra.mxu1 %v8507_v52  ;;  %5674 = vmatprep.subr.bf16.mxu0 %v8512_v38  ;;  %v8584_v52 = vld [vmem:[%s11775_s3 + $0xb84] ss:$16 sps:$4 sm:$0xff]   ;;  %v8587_v38 = vld [vmem:[%s11775_s3 + $0xb8c] ss:$16 sps:$4 sm:$0xff]  }
 0x3ae   : > { %6002 = vmatprep.subr.bf16.mxu1 %v8515_v41  ;;  %v8582_v41 = vld [vmem:[%s11775_s3 + $0xb80] ss:$16 sps:$4 sm:$0xff]  }
 0x3af   : > { %5666 = vmatmul.mubr.bf16.vlgmr.msra.gmra.mrb[0].mxu0 %v2367_v46 }
 0x3b0   : > { %5994 = vmatmul.mubr.bf16.vlgmr.msra.gmra.mrb[0].mxu1 %v2367_v46  ;;  %5675 = vmatpush1.bf16.msra.mxu0 %v8510_v49  ;;  %v8590_v46 = vld [vmem:[%s11775_s3 + $0xba4] ss:$16 sps:$4 sm:$0xff]   ;;  %v8593_v49 = vld [vmem:[%s11775_s3 + $0xbac] ss:$16 sps:$4 sm:$0xff]  }
 0x3b1   : > { %6003 = vmatpush1.bf16.msra.mxu1 %v8513_v9  ;;  %5676 = vmatprep.subr.bf16.mxu0 %v8518_v50  ;;  %v8588_v9 = vld [vmem:[%s11775_s3 + $0xba0] ss:$16 sps:$4 sm:$0xff]   ;;  %v8591_v50 = vld [vmem:[%s11775_s3 + $0xba8] ss:$16 sps:$4 sm:$0xff]  }
 0x3b2   : > { %6004 = vmatprep.subr.bf16.mxu1 %v8521_v10  ;;  %5706 = vmatprep.mubr.bf16.mxu0 %v2370_v53  ;;  %v8596_v10 = vld [vmem:[%s11775_s3 + $0xbc4] ss:$16 sps:$4 sm:$0xff]  }
 0x3b3   : > { %6034 = vmatprep.mubr.bf16.mxu1 %v2370_v53  ;;  %v8599_v53 = vld [vmem:[%s11775_s3 + $0xbcc] ss:$16 sps:$4 sm:$0xff]  }
 0x3b4   : > { %5677 = vmatpush1.bf16.msra.mxu0 %v8516_v54  ;;  %v8594_v54 = vld [vmem:[%s11775_s3 + $0xbc0] ss:$16 sps:$4 sm:$0xff]  }
 0x3b5   : > { %6005 = vmatpush1.bf16.msra.mxu1 %v8519_v6  ;;  %5678 = vmatprep.subr.bf16.mxu0 %v8524_v56  ;;  %v8597_v6 = vld [vmem:[%s11775_s3 + $0xbc8] ss:$16 sps:$4 sm:$0xff]   ;;  %v8602_v56 = vld [vmem:[%s11775_s3 + $0xbe4] ss:$16 sps:$4 sm:$0xff]  }
 0x3b6   : > { %6006 = vmatprep.subr.bf16.mxu1 %v8527_v7  ;;  %v8605_v7 = vld [vmem:[%s11775_s3 + $0xbec] ss:$16 sps:$4 sm:$0xff]  }
 0x3b8   : > { %5679 = vmatpush1.bf16.msra.mxu0 %v8522_v13  ;;  %v2322_v13 = vrot.slane %v10546_v42, %v10136_v40 }
 0x3b9   : > { %6007 = vmatpush1.bf16.msra.mxu1 %v8525_v23  ;;  %5680 = vmatprep.subr.bf16.mxu0 %v8530_v45  ;;  %v8600_v23 = vld [vmem:[%s11775_s3 + $0xbe0] ss:$16 sps:$4 sm:$0xff]   ;;  %v8603_v45 = vld [vmem:[%s11775_s3 + $0xbe8] ss:$16 sps:$4 sm:$0xff]  }
 0x3ba   : > { %6008 = vmatprep.subr.bf16.mxu1 %v8533_v58  ;;  %v8608_v58 = vld [vmem:[%s11775_s3 + $0xc04] ss:$16 sps:$4 sm:$0xff]  }
 0x3bc   : > { %5681 = vmatpush1.bf16.msra.mxu0 %v8528_v60  ;;  %v8611_v60 = vld [vmem:[%s11775_s3 + $0xc0c] ss:$16 sps:$4 sm:$0xff]  }
 0x3bd   : > { %6009 = vmatpush1.bf16.msra.mxu1 %v8531_v61  ;;  %5682 = vmatprep.subr.bf16.mxu0 %v8536_v1  ;;  %v8606_v61 = vld [vmem:[%s11775_s3 + $0xc00] ss:$16 sps:$4 sm:$0xff]   ;;  %v2334_v1 = vrot.slane %v10546_v42, %v2301_v47 }
 0x3be   : > { %6010 = vmatprep.subr.bf16.mxu1 %v8539_v2  ;;  %v2369_v2 = vpack.c.bf16 %v2322_v13, %v2322_v13  ;;  %v8612_v47 = vld [vmem:[%s11775_s3 + $0xc20] ss:$16 sps:$4 sm:$0xff]   ;;  %v8675_v13 = vld [vmem:[%s11775_s3 + $0xd68] ss:$16 sps:$4 sm:$0xff]  }
 0x3c0   : > { %5683 = vmatpush1.bf16.msra.mxu0 %v8534_v8  ;;  %v8609_v8 = vld [vmem:[%s11775_s3 + $0xc08] ss:$16 sps:$4 sm:$0xff]  }
 0x3c1   : > { %6011 = vmatpush1.bf16.msra.mxu1 %v8537_v11  ;;  %5684 = vmatprep.subr.bf16.mxu0 %v8542_v51  ;;  %v8614_v11 = vld [vmem:[%s11775_s3 + $0xc24] ss:$16 sps:$4 sm:$0xff]   ;;  %v8617_v51 = vld [vmem:[%s11775_s3 + $0xc2c] ss:$16 sps:$4 sm:$0xff]  }
 0x3c2   : > { %6012 = vmatprep.subr.bf16.mxu1 %v8545_v12  ;;  %v2372_v12 = vpack.c.bf16 %v2334_v1, %v2334_v1  ;;  %v8689_v1 = vld [vmem:[%s11775_s3 + $0xdac] ss:$16 sps:$4 sm:$0xff]  }
 0x3c4   : > { %5685 = vmatpush1.bf16.msra.mxu0 %v8540_v19  ;;  %v8615_v19 = vld [vmem:[%s11775_s3 + $0xc28] ss:$16 sps:$4 sm:$0xff]  }
 0x3c5   : > { %6013 = vmatpush1.bf16.msra.mxu1 %v8543_v14  ;;  %5686 = vmatprep.subr.bf16.mxu0 %v8548_v15  ;;  %v8620_v14 = vld [vmem:[%s11775_s3 + $0xc44] ss:$16 sps:$4 sm:$0xff]   ;;  %v8623_v15 = vld [vmem:[%s11775_s3 + $0xc4c] ss:$16 sps:$4 sm:$0xff]  }
 0x3c6   : > { %6014 = vmatprep.subr.bf16.mxu1 %v8551_v24  ;;  %v8618_v24 = vld [vmem:[%s11775_s3 + $0xc40] ss:$16 sps:$4 sm:$0xff]  }
 0x3c8   : > { %5687 = vmatpush1.bf16.msra.mxu0 %v8546_v30  ;;  %v8621_v30 = vld [vmem:[%s11775_s3 + $0xc48] ss:$16 sps:$4 sm:$0xff]  }
 0x3c9   : > { %6015 = vmatpush1.bf16.msra.mxu1 %v8549_v20  ;;  %5688 = vmatprep.subr.bf16.mxu0 %v8554_v21  ;;  %v8626_v20 = vld [vmem:[%s11775_s3 + $0xc64] ss:$16 sps:$4 sm:$0xff]   ;;  %v8629_v21 = vld [vmem:[%s11775_s3 + $0xc6c] ss:$16 sps:$4 sm:$0xff]  }
 0x3ca   : > { %6016 = vmatprep.subr.bf16.mxu1 %v8557_v22  ;;  %v8624_v22 = vld [vmem:[%s11775_s3 + $0xc60] ss:$16 sps:$4 sm:$0xff]  }
 0x3cc   : > { %5689 = vmatpush1.bf16.msra.mxu0 %v8552_v25  ;;  %v8627_v25 = vld [vmem:[%s11775_s3 + $0xc68] ss:$16 sps:$4 sm:$0xff]  }
 0x3cd   : > { %6017 = vmatpush1.bf16.msra.mxu1 %v8555_v26  ;;  %5690 = vmatprep.subr.bf16.mxu0 %v8560_v27  ;;  %v8632_v26 = vld [vmem:[%s11775_s3 + $0xc84] ss:$16 sps:$4 sm:$0xff]   ;;  %v8635_v27 = vld [vmem:[%s11775_s3 + $0xc8c] ss:$16 sps:$4 sm:$0xff]  }
 0x3ce   : > { %6018 = vmatprep.subr.bf16.mxu1 %v8563_v28  ;;  %v8630_v28 = vld [vmem:[%s11775_s3 + $0xc80] ss:$16 sps:$4 sm:$0xff]  }
 0x3d0   : > { %5691 = vmatpush1.bf16.msra.mxu0 %v8558_v18  ;;  %v8633_v18 = vld [vmem:[%s11775_s3 + $0xc88] ss:$16 sps:$4 sm:$0xff]  }
 0x3d1   : > { %6019 = vmatpush1.bf16.msra.mxu1 %v8561_v29  ;;  %5692 = vmatprep.subr.bf16.mxu0 %v8566_v31  ;;  %v8638_v29 = vld [vmem:[%s11775_s3 + $0xca4] ss:$16 sps:$4 sm:$0xff]   ;;  %v8641_v31 = vld [vmem:[%s11775_s3 + $0xcac] ss:$16 sps:$4 sm:$0xff]  }
 0x3d2   : > { %6020 = vmatprep.subr.bf16.mxu1 %v8569_v32  ;;  %v8636_v32 = vld [vmem:[%s11775_s3 + $0xca0] ss:$16 sps:$4 sm:$0xff]  }
 0x3d4   : > { %5693 = vmatpush1.bf16.msra.mxu0 %v8564_v55  ;;  %v8639_v55 = vld [vmem:[%s11775_s3 + $0xca8] ss:$16 sps:$4 sm:$0xff]  }
 0x3d5   : > { %6021 = vmatpush1.bf16.msra.mxu1 %v8567_v48  ;;  %5694 = vmatprep.subr.bf16.mxu0 %v8572_v33  ;;  %v8644_v48 = vld [vmem:[%s11775_s3 + $0xcc4] ss:$16 sps:$4 sm:$0xff]   ;;  %v8647_v33 = vld [vmem:[%s11775_s3 + $0xccc] ss:$16 sps:$4 sm:$0xff]  }
 0x3d6   : > { %6022 = vmatprep.subr.bf16.mxu1 %v8575_v39  ;;  %v8642_v39 = vld [vmem:[%s11775_s3 + $0xcc0] ss:$16 sps:$4 sm:$0xff]  }
 0x3d8   : > { %5695 = vmatpush1.bf16.msra.mxu0 %v8570_v44  ;;  %v8645_v44 = vld [vmem:[%s11775_s3 + $0xcc8] ss:$16 sps:$4 sm:$0xff]  }
 0x3d9   : > { %6023 = vmatpush1.bf16.msra.mxu1 %v8573_v35  ;;  %5696 = vmatprep.subr.bf16.mxu0 %v8578_v36  ;;  %v8650_v35 = vld [vmem:[%s11775_s3 + $0xce4] ss:$16 sps:$4 sm:$0xff]   ;;  %v8653_v36 = vld [vmem:[%s11775_s3 + $0xcec] ss:$16 sps:$4 sm:$0xff]  }
 0x3da   : > { %6024 = vmatprep.subr.bf16.mxu1 %v8581_v37  ;;  %v8648_v37 = vld [vmem:[%s11775_s3 + $0xce0] ss:$16 sps:$4 sm:$0xff]  }
 0x3dc   : > { %5697 = vmatpush1.bf16.msra.mxu0 %v8576_v16  ;;  %v8651_v16 = vld [vmem:[%s11775_s3 + $0xce8] ss:$16 sps:$4 sm:$0xff]  }
 0x3dd   : > { %6025 = vmatpush1.bf16.msra.mxu1 %v8579_v4  ;;  %5698 = vmatprep.subr.bf16.mxu0 %v8584_v52  ;;  %v8656_v4 = vld [vmem:[%s11775_s3 + $0xd04] ss:$16 sps:$4 sm:$0xff]   ;;  %v8659_v52 = vld [vmem:[%s11775_s3 + $0xd0c] ss:$16 sps:$4 sm:$0xff]  }
 0x3de   : > { %6026 = vmatprep.subr.bf16.mxu1 %v8587_v38  ;;  %v8654_v38 = vld [vmem:[%s11775_s3 + $0xd00] ss:$16 sps:$4 sm:$0xff]  }
 0x3e0   : > { %5699 = vmatpush1.bf16.msra.mxu0 %v8582_v41  ;;  %v8657_v41 = vld [vmem:[%s11775_s3 + $0xd08] ss:$16 sps:$4 sm:$0xff]  }
 0x3e1   : > { %6027 = vmatpush1.bf16.msra.mxu1 %v8585_v43  ;;  %5700 = vmatprep.subr.bf16.mxu0 %v8590_v46  ;;  %v8662_v43 = vld [vmem:[%s11775_s3 + $0xd24] ss:$16 sps:$4 sm:$0xff]   ;;  %v8665_v46 = vld [vmem:[%s11775_s3 + $0xd2c] ss:$16 sps:$4 sm:$0xff]  }
 0x3e2   : > { %6028 = vmatprep.subr.bf16.mxu1 %v8593_v49  ;;  %v8660_v49 = vld [vmem:[%s11775_s3 + $0xd20] ss:$16 sps:$4 sm:$0xff]  }
 0x3e4   : > { %5701 = vmatpush1.bf16.msra.mxu0 %v8588_v9  ;;  %v8663_v9 = vld [vmem:[%s11775_s3 + $0xd28] ss:$16 sps:$4 sm:$0xff]  }
 0x3e5   : > { %6029 = vmatpush1.bf16.msra.mxu1 %v8591_v50  ;;  %5702 = vmatprep.subr.bf16.mxu0 %v8596_v10  ;;  %v8668_v50 = vld [vmem:[%s11775_s3 + $0xd44] ss:$16 sps:$4 sm:$0xff]   ;;  %v8671_v10 = vld [vmem:[%s11775_s3 + $0xd4c] ss:$16 sps:$4 sm:$0xff]  }
 0x3e6   : > { %6030 = vmatprep.subr.bf16.mxu1 %v8599_v53  ;;  %v8666_v53 = vld [vmem:[%s11775_s3 + $0xd40] ss:$16 sps:$4 sm:$0xff]  }
 0x3e8   : > { %5703 = vmatpush1.bf16.msra.mxu0 %v8594_v54  ;;  %v8669_v54 = vld [vmem:[%s11775_s3 + $0xd48] ss:$16 sps:$4 sm:$0xff]  }
 0x3e9   : > { %6031 = vmatpush1.bf16.msra.mxu1 %v8597_v6  ;;  %5704 = vmatprep.subr.bf16.mxu0 %v8602_v56  ;;  %v8674_v6 = vld [vmem:[%s11775_s3 + $0xd64] ss:$16 sps:$4 sm:$0xff]   ;;  %v8677_v56 = vld [vmem:[%s11775_s3 + $0xd6c] ss:$16 sps:$4 sm:$0xff]  }
 0x3ea   : > { %6032 = vmatprep.subr.bf16.mxu1 %v8605_v7  ;;  %v8672_v7 = vld [vmem:[%s11775_s3 + $0xd60] ss:$16 sps:$4 sm:$0xff]  }
 0x3ec   : > { %5705 = vmatpush1.bf16.msra.mxu0 %v8600_v23  ;;  %v8680_v23 = vld [vmem:[%s11775_s3 + $0xd84] ss:$16 sps:$4 sm:$0xff]  }
 0x3ed   : > { %6033 = vmatpush1.bf16.msra.mxu1 %v8603_v45  ;;  %5715 = vmatprep.subr.bf16.mxu0 %v8608_v58  ;;  %v8683_v45 = vld [vmem:[%s11775_s3 + $0xd8c] ss:$16 sps:$4 sm:$0xff]   ;;  %v8678_v58 = vld [vmem:[%s11775_s3 + $0xd80] ss:$16 sps:$4 sm:$0xff]  }
 0x3ee   : > { %6043 = vmatprep.subr.bf16.mxu1 %v8611_v60  ;;  %v8681_v60 = vld [vmem:[%s11775_s3 + $0xd88] ss:$16 sps:$4 sm:$0xff]  }
 0x3ef   : > { %5707 = vmatmul.mubr.bf16.vlgmr.msra.gmra.mrb[0].mxu0 %v2369_v2 }
 0x3f0   : > { %6035 = vmatmul.mubr.bf16.vlgmr.msra.gmra.mrb[0].mxu1 %v2369_v2  ;;  %5716 = vmatpush1.bf16.msra.mxu0 %v8606_v61  ;;  %v8686_v61 = vld [vmem:[%s11775_s3 + $0xda4] ss:$16 sps:$4 sm:$0xff]   ;;  %v8684_v2 = vld [vmem:[%s11775_s3 + $0xda0] ss:$16 sps:$4 sm:$0xff]  }
 0x3f1   : > { %6044 = vmatpush1.bf16.msra.mxu1 %v8609_v8  ;;  %5717 = vmatprep.subr.bf16.mxu0 %v8614_v11  ;;  %v8687_v8 = vld [vmem:[%s11775_s3 + $0xda8] ss:$16 sps:$4 sm:$0xff]   ;;  %v8692_v11 = vld [vmem:[%s11775_s3 + $0xdc4] ss:$16 sps:$4 sm:$0xff]  }
 0x3f2   : > { %6045 = vmatprep.subr.bf16.mxu1 %v8617_v51  ;;  %5747 = vmatprep.mubr.bf16.mxu0 %v2372_v12  ;;  %v8695_v51 = vld [vmem:[%s11775_s3 + $0xdcc] ss:$16 sps:$4 sm:$0xff]  }
 0x3f3   : > { %6075 = vmatprep.mubr.bf16.mxu1 %v2372_v12  ;;  %v8690_v12 = vld [vmem:[%s11775_s3 + $0xdc0] ss:$16 sps:$4 sm:$0xff]  }
 0x3f4   : > { %5718 = vmatpush1.bf16.msra.mxu0 %v8612_v47  ;;  %v8693_v47 = vld [vmem:[%s11775_s3 + $0xdc8] ss:$16 sps:$4 sm:$0xff]  }
 0x3f5   : > { %6046 = vmatpush1.bf16.msra.mxu1 %v8615_v19  ;;  %5719 = vmatprep.subr.bf16.mxu0 %v8620_v14  ;;  %v8698_v19 = vld [vmem:[%s11775_s3 + $0xde4] ss:$16 sps:$4 sm:$0xff]   ;;  %v8701_v14 = vld [vmem:[%s11775_s3 + $0xdec] ss:$16 sps:$4 sm:$0xff]  }
 0x3f6   : > { %6047 = vmatprep.subr.bf16.mxu1 %v8623_v15  ;;  %v2330_v15 = vrot.slane %v10546_v42, %v2297_v57  ;;  %v8707_v57 = vld [vmem:[%s11775_s3 + $0xe0c] ss:$16 sps:$4 sm:$0xff]  }
 0x3f8   : > { %5720 = vmatpush1.bf16.msra.mxu0 %v8618_v24  ;;  %v8696_v24 = vld [vmem:[%s11775_s3 + $0xde0] ss:$16 sps:$4 sm:$0xff]  }
 0x3f9   : > { %6048 = vmatpush1.bf16.msra.mxu1 %v8621_v30  ;;  %5721 = vmatprep.subr.bf16.mxu0 %v8626_v20  ;;  %v8699_v30 = vld [vmem:[%s11775_s3 + $0xde8] ss:$16 sps:$4 sm:$0xff]   ;;  %v8704_v20 = vld [vmem:[%s11775_s3 + $0xe04] ss:$16 sps:$4 sm:$0xff]  }
 0x3fa   : > { %6049 = vmatprep.subr.bf16.mxu1 %v8629_v21  ;;  %v2342_v21 = vrot.slane %v10546_v42, %v2309_v59  ;;  %v8713_v59 = vld [vmem:[%s11775_s3 + $0xe2c] ss:$16 sps:$4 sm:$0xff]  }
 0x3fc   : > { %5722 = vmatpush1.bf16.msra.mxu0 %v8624_v22  ;;  %v2371_v22 = vpack.c.bf16 %v2330_v15, %v2330_v15  ;;  %v8779_v15 = vld [vmem:[%s11775_s3 + $0xf8c] ss:$16 sps:$4 sm:$0xff]  }
 0x3fd   : > { %6050 = vmatpush1.bf16.msra.mxu1 %v8627_v25  ;;  %5723 = vmatprep.subr.bf16.mxu0 %v8632_v26  ;;  %v8702_v25 = vld [vmem:[%s11775_s3 + $0xe00] ss:$16 sps:$4 sm:$0xff]   ;;  %v8705_v26 = vld [vmem:[%s11775_s3 + $0xe08] ss:$16 sps:$4 sm:$0xff]  }
 0x3fe   : > { %6051 = vmatprep.subr.bf16.mxu1 %v8635_v27  ;;  %v8710_v27 = vld [vmem:[%s11775_s3 + $0xe24] ss:$16 sps:$4 sm:$0xff]  }
 0x400   : > { %5724 = vmatpush1.bf16.msra.mxu0 %v8630_v28  ;;  %v2374_v28 = vpack.c.bf16 %v2342_v21, %v2342_v21  ;;  %v8780_v21 = vld [vmem:[%s11775_s3 + $0xfa0] ss:$16 sps:$4 sm:$0xff]  }
 0x401   : > { %6052 = vmatpush1.bf16.msra.mxu1 %v8633_v18  ;;  %5725 = vmatprep.subr.bf16.mxu0 %v8638_v29  ;;  %v8708_v18 = vld [vmem:[%s11775_s3 + $0xe20] ss:$16 sps:$4 sm:$0xff]   ;;  %v8711_v29 = vld [vmem:[%s11775_s3 + $0xe28] ss:$16 sps:$4 sm:$0xff]  }
 0x402   : > { %6053 = vmatprep.subr.bf16.mxu1 %v8641_v31  ;;  %v8716_v31 = vld [vmem:[%s11775_s3 + $0xe44] ss:$16 sps:$4 sm:$0xff]  }
 0x404   : > { %5726 = vmatpush1.bf16.msra.mxu0 %v8636_v32  ;;  %v8719_v32 = vld [vmem:[%s11775_s3 + $0xe4c] ss:$16 sps:$4 sm:$0xff]  }
 0x405   : > { %6054 = vmatpush1.bf16.msra.mxu1 %v8639_v55  ;;  %5727 = vmatprep.subr.bf16.mxu0 %v8644_v48  ;;  %v8714_v55 = vld [vmem:[%s11775_s3 + $0xe40] ss:$16 sps:$4 sm:$0xff]   ;;  %v8717_v48 = vld [vmem:[%s11775_s3 + $0xe48] ss:$16 sps:$4 sm:$0xff]  }
 0x406   : > { %6055 = vmatprep.subr.bf16.mxu1 %v8647_v33  ;;  %v8722_v33 = vld [vmem:[%s11775_s3 + $0xe64] ss:$16 sps:$4 sm:$0xff]  }
 0x408   : > { %5728 = vmatpush1.bf16.msra.mxu0 %v8642_v39  ;;  %v8725_v39 = vld [vmem:[%s11775_s3 + $0xe6c] ss:$16 sps:$4 sm:$0xff]  }
 0x409   : > { %6056 = vmatpush1.bf16.msra.mxu1 %v8645_v44  ;;  %5729 = vmatprep.subr.bf16.mxu0 %v8650_v35  ;;  %v8720_v44 = vld [vmem:[%s11775_s3 + $0xe60] ss:$16 sps:$4 sm:$0xff]   ;;  %v8723_v35 = vld [vmem:[%s11775_s3 + $0xe68] ss:$16 sps:$4 sm:$0xff]  }
 0x40a   : > { %6057 = vmatprep.subr.bf16.mxu1 %v8653_v36  ;;  %v8728_v36 = vld [vmem:[%s11775_s3 + $0xe84] ss:$16 sps:$4 sm:$0xff]  }
 0x40c   : > { %5730 = vmatpush1.bf16.msra.mxu0 %v8648_v37  ;;  %v8731_v37 = vld [vmem:[%s11775_s3 + $0xe8c] ss:$16 sps:$4 sm:$0xff]  }
 0x40d   : > { %6058 = vmatpush1.bf16.msra.mxu1 %v8651_v16  ;;  %5731 = vmatprep.subr.bf16.mxu0 %v8656_v4  ;;  %v8726_v16 = vld [vmem:[%s11775_s3 + $0xe80] ss:$16 sps:$4 sm:$0xff]   ;;  %v8729_v4 = vld [vmem:[%s11775_s3 + $0xe88] ss:$16 sps:$4 sm:$0xff]  }
 0x40e   : > { %6059 = vmatprep.subr.bf16.mxu1 %v8659_v52  ;;  %v8734_v52 = vld [vmem:[%s11775_s3 + $0xea4] ss:$16 sps:$4 sm:$0xff]  }
 0x410   : > { %5732 = vmatpush1.bf16.msra.mxu0 %v8654_v38  ;;  %v8737_v38 = vld [vmem:[%s11775_s3 + $0xeac] ss:$16 sps:$4 sm:$0xff]  }
 0x411   : > { %6060 = vmatpush1.bf16.msra.mxu1 %v8657_v41  ;;  %5733 = vmatprep.subr.bf16.mxu0 %v8662_v43  ;;  %v8732_v41 = vld [vmem:[%s11775_s3 + $0xea0] ss:$16 sps:$4 sm:$0xff]   ;;  %v8735_v43 = vld [vmem:[%s11775_s3 + $0xea8] ss:$16 sps:$4 sm:$0xff]  }
 0x412   : > { %6061 = vmatprep.subr.bf16.mxu1 %v8665_v46  ;;  %v8740_v46 = vld [vmem:[%s11775_s3 + $0xec4] ss:$16 sps:$4 sm:$0xff]  }
 0x414   : > { %5734 = vmatpush1.bf16.msra.mxu0 %v8660_v49  ;;  %v8743_v49 = vld [vmem:[%s11775_s3 + $0xecc] ss:$16 sps:$4 sm:$0xff]  }
 0x415   : > { %6062 = vmatpush1.bf16.msra.mxu1 %v8663_v9  ;;  %5735 = vmatprep.subr.bf16.mxu0 %v8668_v50  ;;  %v8738_v9 = vld [vmem:[%s11775_s3 + $0xec0] ss:$16 sps:$4 sm:$0xff]   ;;  %v8741_v50 = vld [vmem:[%s11775_s3 + $0xec8] ss:$16 sps:$4 sm:$0xff]  }
 0x416   : > { %6063 = vmatprep.subr.bf16.mxu1 %v8671_v10  ;;  %v8746_v10 = vld [vmem:[%s11775_s3 + $0xee4] ss:$16 sps:$4 sm:$0xff]  }
 0x418   : > { %5736 = vmatpush1.bf16.msra.mxu0 %v8666_v53  ;;  %v8749_v53 = vld [vmem:[%s11775_s3 + $0xeec] ss:$16 sps:$4 sm:$0xff]  }
 0x419   : > { %6064 = vmatpush1.bf16.msra.mxu1 %v8669_v54  ;;  %5737 = vmatprep.subr.bf16.mxu0 %v8674_v6  ;;  %v8744_v54 = vld [vmem:[%s11775_s3 + $0xee0] ss:$16 sps:$4 sm:$0xff]   ;;  %v8747_v6 = vld [vmem:[%s11775_s3 + $0xee8] ss:$16 sps:$4 sm:$0xff]  }
 0x41a   : > { %6065 = vmatprep.subr.bf16.mxu1 %v8677_v56  ;;  %v8752_v56 = vld [vmem:[%s11775_s3 + $0xf04] ss:$16 sps:$4 sm:$0xff]  }
 0x41c   : > { %5738 = vmatpush1.bf16.msra.mxu0 %v8672_v7  ;;  %v8755_v7 = vld [vmem:[%s11775_s3 + $0xf0c] ss:$16 sps:$4 sm:$0xff]  }
 0x41d   : > { %6066 = vmatpush1.bf16.msra.mxu1 %v8675_v13  ;;  %5739 = vmatprep.subr.bf16.mxu0 %v8680_v23  ;;  %v8750_v13 = vld [vmem:[%s11775_s3 + $0xf00] ss:$16 sps:$4 sm:$0xff]   ;;  %v8753_v23 = vld [vmem:[%s11775_s3 + $0xf08] ss:$16 sps:$4 sm:$0xff]  }
 0x41e   : > { %6067 = vmatprep.subr.bf16.mxu1 %v8683_v45  ;;  %v8758_v45 = vld [vmem:[%s11775_s3 + $0xf24] ss:$16 sps:$4 sm:$0xff]  }
 0x420   : > { %5740 = vmatpush1.bf16.msra.mxu0 %v8678_v58  ;;  %v8761_v58 = vld [vmem:[%s11775_s3 + $0xf2c] ss:$16 sps:$4 sm:$0xff]  }
 0x421   : > { %6068 = vmatpush1.bf16.msra.mxu1 %v8681_v60  ;;  %5741 = vmatprep.subr.bf16.mxu0 %v8686_v61  ;;  %v8756_v60 = vld [vmem:[%s11775_s3 + $0xf20] ss:$16 sps:$4 sm:$0xff]   ;;  %v8759_v61 = vld [vmem:[%s11775_s3 + $0xf28] ss:$16 sps:$4 sm:$0xff]  }
 0x422   : > { %6069 = vmatprep.subr.bf16.mxu1 %v8689_v1  ;;  %v8764_v1 = vld [vmem:[%s11775_s3 + $0xf44] ss:$16 sps:$4 sm:$0xff]  }
 0x424   : > { %5742 = vmatpush1.bf16.msra.mxu0 %v8684_v2  ;;  %v8767_v2 = vld [vmem:[%s11775_s3 + $0xf4c] ss:$16 sps:$4 sm:$0xff]  }
 0x425   : > { %6070 = vmatpush1.bf16.msra.mxu1 %v8687_v8  ;;  %5743 = vmatprep.subr.bf16.mxu0 %v8692_v11  ;;  %v8762_v8 = vld [vmem:[%s11775_s3 + $0xf40] ss:$16 sps:$4 sm:$0xff]   ;;  %v8765_v11 = vld [vmem:[%s11775_s3 + $0xf48] ss:$16 sps:$4 sm:$0xff]  }
 0x426   : > { %6071 = vmatprep.subr.bf16.mxu1 %v8695_v51  ;;  %v8770_v51 = vld [vmem:[%s11775_s3 + $0xf64] ss:$16 sps:$4 sm:$0xff]  }
 0x428   : > { %5744 = vmatpush1.bf16.msra.mxu0 %v8690_v12  ;;  %v8773_v12 = vld [vmem:[%s11775_s3 + $0xf6c] ss:$16 sps:$4 sm:$0xff]  }
 0x429   : > { %6072 = vmatpush1.bf16.msra.mxu1 %v8693_v47  ;;  %5745 = vmatprep.subr.bf16.mxu0 %v8698_v19  ;;  %v8768_v47 = vld [vmem:[%s11775_s3 + $0xf60] ss:$16 sps:$4 sm:$0xff]   ;;  %v8771_v19 = vld [vmem:[%s11775_s3 + $0xf68] ss:$16 sps:$4 sm:$0xff]  }
 0x42a   : > { %6073 = vmatprep.subr.bf16.mxu1 %v8701_v14  ;;  %v8776_v14 = vld [vmem:[%s11775_s3 + $0xf84] ss:$16 sps:$4 sm:$0xff]  }
 0x42c   : > { %5746 = vmatpush1.bf16.msra.mxu0 %v8696_v24  ;;  %v8774_v24 = vld [vmem:[%s11775_s3 + $0xf80] ss:$16 sps:$4 sm:$0xff]  }
 0x42d   : > { %6074 = vmatpush1.bf16.msra.mxu1 %v8699_v30  ;;  %5756 = vmatprep.subr.bf16.mxu0 %v8704_v20  ;;  %v8777_v30 = vld [vmem:[%s11775_s3 + $0xf88] ss:$16 sps:$4 sm:$0xff]   ;;  %v8782_v20 = vld [vmem:[%s11775_s3 + $0xfa4] ss:$16 sps:$4 sm:$0xff]  }
 0x42e   : > { %6084 = vmatprep.subr.bf16.mxu1 %v8707_v57  ;;  %v8785_v57 = vld [vmem:[%s11775_s3 + $0xfac] ss:$16 sps:$4 sm:$0xff]  }
 0x42f   : > { %5748 = vmatmul.mubr.bf16.vlgmr.msra.gmra.mrb[0].mxu0 %v2371_v22 }
 0x430   : > { %6076 = vmatmul.mubr.bf16.vlgmr.msra.gmra.mrb[0].mxu1 %v2371_v22  ;;  %5757 = vmatpush1.bf16.msra.mxu0 %v8702_v25  ;;  %v8783_v22 = vld [vmem:[%s11775_s3 + $0xfa8] ss:$16 sps:$4 sm:$0xff]   ;;  %v8788_v25 = vld [vmem:[%s11775_s3 + $0xfc4] ss:$16 sps:$4 sm:$0xff]  }
 0x431   : > { %6085 = vmatpush1.bf16.msra.mxu1 %v8705_v26  ;;  %5758 = vmatprep.subr.bf16.mxu0 %v8710_v27  ;;  %v8791_v26 = vld [vmem:[%s11775_s3 + $0xfcc] ss:$16 sps:$4 sm:$0xff]   ;;  %v8786_v27 = vld [vmem:[%s11775_s3 + $0xfc0] ss:$16 sps:$4 sm:$0xff]  }
 0x432   : > { %6086 = vmatprep.subr.bf16.mxu1 %v8713_v59  ;;  %5788 = vmatprep.mubr.bf16.mxu0 %v2374_v28  ;;  %v8789_v59 = vld [vmem:[%s11775_s3 + $0xfc8] ss:$16 sps:$4 sm:$0xff]  }
 0x433   : > { %6116 = vmatprep.mubr.bf16.mxu1 %v2374_v28  ;;  %v8794_v28 = vld [vmem:[%s11775_s3 + $0xfe4] ss:$16 sps:$4 sm:$0xff]  }
 0x434   : > { %5759 = vmatpush1.bf16.msra.mxu0 %v8708_v18  ;;  %v8797_v18 = vld [vmem:[%s11775_s3 + $0xfec] ss:$16 sps:$4 sm:$0xff]  }
 0x435   : > { %6087 = vmatpush1.bf16.msra.mxu1 %v8711_v29  ;;  %5760 = vmatprep.subr.bf16.mxu0 %v8716_v31  ;;  %v2338_v29 = vrot.slane %v10546_v42, %v2305_v17  ;;  %v8792_v31 = vld [vmem:[%s11775_s3 + $0xfe0] ss:$16 sps:$4 sm:$0xff]  }
 0x436   : > { %6088 = vmatprep.subr.bf16.mxu1 %v8719_v32  ;;  %v8795_v32 = vld [vmem:[%s11775_s3 + $0xfe8] ss:$16 sps:$4 sm:$0xff]   ;;  %v8798_v42 = vld [vmem:[%s11777_s5] ss:$16 sps:$4 sm:$0xff]  }
 0x437   : > { %v2373_v17 = vpack.c.bf16 %v2338_v29, %v2338_v29  ;;  %v8876_v29 = vld [vmem:[%s11777_s5 + $0x1a0] ss:$16 sps:$4 sm:$0xff]  }
 0x438   : > { %5761 = vmatpush1.bf16.msra.mxu0 %v8714_v55  ;;  %v8800_v55 = vld [vmem:[%s11777_s5 + $0x4] ss:$16 sps:$4 sm:$0xff]  }
 0x439   : > { %6089 = vmatpush1.bf16.msra.mxu1 %v8717_v48  ;;  %5762 = vmatprep.subr.bf16.mxu0 %v8722_v33  ;;  %v8801_v48 = vld [vmem:[%s11777_s5 + $0x8] ss:$16 sps:$4 sm:$0xff]   ;;  %v8806_v33 = vld [vmem:[%s11777_s5 + $0x24] ss:$16 sps:$4 sm:$0xff]  }
 0x43a   : > { %6090 = vmatprep.subr.bf16.mxu1 %v8725_v39  ;;  %v8809_v39 = vld [vmem:[%s11777_s5 + $0x2c] ss:$16 sps:$4 sm:$0xff]  }
 0x43c   : > { %5763 = vmatpush1.bf16.msra.mxu0 %v8720_v44  ;;  %v8804_v44 = vld [vmem:[%s11777_s5 + $0x20] ss:$16 sps:$4 sm:$0xff]  }
 0x43d   : > { %6091 = vmatpush1.bf16.msra.mxu1 %v8723_v35  ;;  %5764 = vmatprep.subr.bf16.mxu0 %v8728_v36  ;;  %v8807_v35 = vld [vmem:[%s11777_s5 + $0x28] ss:$16 sps:$4 sm:$0xff]   ;;  %v8812_v36 = vld [vmem:[%s11777_s5 + $0x44] ss:$16 sps:$4 sm:$0xff]  }
 0x43e   : > { %6092 = vmatprep.subr.bf16.mxu1 %v8731_v37  ;;  %v8815_v37 = vld [vmem:[%s11777_s5 + $0x4c] ss:$16 sps:$4 sm:$0xff]  }
 0x440   : > { %5765 = vmatpush1.bf16.msra.mxu0 %v8726_v16  ;;  %v8810_v16 = vld [vmem:[%s11777_s5 + $0x40] ss:$16 sps:$4 sm:$0xff]  }
 0x441   : > { %6093 = vmatpush1.bf16.msra.mxu1 %v8729_v4  ;;  %5766 = vmatprep.subr.bf16.mxu0 %v8734_v52  ;;  %v8813_v4 = vld [vmem:[%s11777_s5 + $0x48] ss:$16 sps:$4 sm:$0xff]   ;;  %v8818_v52 = vld [vmem:[%s11777_s5 + $0x64] ss:$16 sps:$4 sm:$0xff]  }
 0x442   : > { %6094 = vmatprep.subr.bf16.mxu1 %v8737_v38  ;;  %v8821_v38 = vld [vmem:[%s11777_s5 + $0x6c] ss:$16 sps:$4 sm:$0xff]  }
 0x444   : > { %5767 = vmatpush1.bf16.msra.mxu0 %v8732_v41  ;;  %v8816_v41 = vld [vmem:[%s11777_s5 + $0x60] ss:$16 sps:$4 sm:$0xff]  }
 0x445   : > { %6095 = vmatpush1.bf16.msra.mxu1 %v8735_v43  ;;  %5768 = vmatprep.subr.bf16.mxu0 %v8740_v46  ;;  %v8819_v43 = vld [vmem:[%s11777_s5 + $0x68] ss:$16 sps:$4 sm:$0xff]   ;;  %v8824_v46 = vld [vmem:[%s11777_s5 + $0x84] ss:$16 sps:$4 sm:$0xff]  }
 0x446   : > { %6096 = vmatprep.subr.bf16.mxu1 %v8743_v49  ;;  %v8827_v49 = vld [vmem:[%s11777_s5 + $0x8c] ss:$16 sps:$4 sm:$0xff]  }
 0x448   : > { %5769 = vmatpush1.bf16.msra.mxu0 %v8738_v9  ;;  %v8822_v9 = vld [vmem:[%s11777_s5 + $0x80] ss:$16 sps:$4 sm:$0xff]  }
 0x449   : > { %6097 = vmatpush1.bf16.msra.mxu1 %v8741_v50  ;;  %5770 = vmatprep.subr.bf16.mxu0 %v8746_v10  ;;  %v8825_v50 = vld [vmem:[%s11777_s5 + $0x88] ss:$16 sps:$4 sm:$0xff]   ;;  %v8830_v10 = vld [vmem:[%s11777_s5 + $0xa4] ss:$16 sps:$4 sm:$0xff]  }
 0x44a   : > { %6098 = vmatprep.subr.bf16.mxu1 %v8749_v53  ;;  %v8833_v53 = vld [vmem:[%s11777_s5 + $0xac] ss:$16 sps:$4 sm:$0xff]  }
 0x44c   : > { %5771 = vmatpush1.bf16.msra.mxu0 %v8744_v54  ;;  %v8828_v54 = vld [vmem:[%s11777_s5 + $0xa0] ss:$16 sps:$4 sm:$0xff]  }
 0x44d   : > { %6099 = vmatpush1.bf16.msra.mxu1 %v8747_v6  ;;  %5772 = vmatprep.subr.bf16.mxu0 %v8752_v56  ;;  %v8831_v6 = vld [vmem:[%s11777_s5 + $0xa8] ss:$16 sps:$4 sm:$0xff]   ;;  %v8836_v56 = vld [vmem:[%s11777_s5 + $0xc4] ss:$16 sps:$4 sm:$0xff]  }
 0x44e   : > { %6100 = vmatprep.subr.bf16.mxu1 %v8755_v7  ;;  %v8839_v7 = vld [vmem:[%s11777_s5 + $0xcc] ss:$16 sps:$4 sm:$0xff]  }
 0x450   : > { %5773 = vmatpush1.bf16.msra.mxu0 %v8750_v13  ;;  %v8834_v13 = vld [vmem:[%s11777_s5 + $0xc0] ss:$16 sps:$4 sm:$0xff]  }
 0x451   : > { %6101 = vmatpush1.bf16.msra.mxu1 %v8753_v23  ;;  %5774 = vmatprep.subr.bf16.mxu0 %v8758_v45  ;;  %v8837_v23 = vld [vmem:[%s11777_s5 + $0xc8] ss:$16 sps:$4 sm:$0xff]   ;;  %v8842_v45 = vld [vmem:[%s11777_s5 + $0xe4] ss:$16 sps:$4 sm:$0xff]  }
 0x452   : > { %6102 = vmatprep.subr.bf16.mxu1 %v8761_v58  ;;  %v8845_v58 = vld [vmem:[%s11777_s5 + $0xec] ss:$16 sps:$4 sm:$0xff]  }
 0x454   : > { %5775 = vmatpush1.bf16.msra.mxu0 %v8756_v60  ;;  %v8840_v60 = vld [vmem:[%s11777_s5 + $0xe0] ss:$16 sps:$4 sm:$0xff]  }
 0x455   : > { %6103 = vmatpush1.bf16.msra.mxu1 %v8759_v61  ;;  %5776 = vmatprep.subr.bf16.mxu0 %v8764_v1  ;;  %v8843_v61 = vld [vmem:[%s11777_s5 + $0xe8] ss:$16 sps:$4 sm:$0xff]   ;;  %v8848_v1 = vld [vmem:[%s11777_s5 + $0x104] ss:$16 sps:$4 sm:$0xff]  }
 0x456   : > { %6104 = vmatprep.subr.bf16.mxu1 %v8767_v2  ;;  %v8851_v2 = vld [vmem:[%s11777_s5 + $0x10c] ss:$16 sps:$4 sm:$0xff]  }
 0x458   : > { %5777 = vmatpush1.bf16.msra.mxu0 %v8762_v8  ;;  %v8846_v8 = vld [vmem:[%s11777_s5 + $0x100] ss:$16 sps:$4 sm:$0xff]  }
 0x459   : > { %6105 = vmatpush1.bf16.msra.mxu1 %v8765_v11  ;;  %5778 = vmatprep.subr.bf16.mxu0 %v8770_v51  ;;  %v8849_v11 = vld [vmem:[%s11777_s5 + $0x108] ss:$16 sps:$4 sm:$0xff]   ;;  %v8854_v51 = vld [vmem:[%s11777_s5 + $0x124] ss:$16 sps:$4 sm:$0xff]  }
 0x45a   : > { %6106 = vmatprep.subr.bf16.mxu1 %v8773_v12  ;;  %v8857_v12 = vld [vmem:[%s11777_s5 + $0x12c] ss:$16 sps:$4 sm:$0xff]  }
 0x45c   : > { %5779 = vmatpush1.bf16.msra.mxu0 %v8768_v47  ;;  %v8852_v47 = vld [vmem:[%s11777_s5 + $0x120] ss:$16 sps:$4 sm:$0xff]  }
 0x45d   : > { %6107 = vmatpush1.bf16.msra.mxu1 %v8771_v19  ;;  %5780 = vmatprep.subr.bf16.mxu0 %v8776_v14  ;;  %v8855_v19 = vld [vmem:[%s11777_s5 + $0x128] ss:$16 sps:$4 sm:$0xff]   ;;  %v8860_v14 = vld [vmem:[%s11777_s5 + $0x144] ss:$16 sps:$4 sm:$0xff]  }
 0x45e   : > { %6108 = vmatprep.subr.bf16.mxu1 %v8779_v15  ;;  %v8863_v15 = vld [vmem:[%s11777_s5 + $0x14c] ss:$16 sps:$4 sm:$0xff]  }
 0x460   : > { %5781 = vmatpush1.bf16.msra.mxu0 %v8774_v24  ;;  %v8858_v24 = vld [vmem:[%s11777_s5 + $0x140] ss:$16 sps:$4 sm:$0xff]  }
 0x461   : > { %6109 = vmatpush1.bf16.msra.mxu1 %v8777_v30  ;;  %5782 = vmatprep.subr.bf16.mxu0 %v8782_v20  ;;  %v8861_v30 = vld [vmem:[%s11777_s5 + $0x148] ss:$16 sps:$4 sm:$0xff]   ;;  %v8866_v20 = vld [vmem:[%s11777_s5 + $0x164] ss:$16 sps:$4 sm:$0xff]  }
 0x462   : > { %6110 = vmatprep.subr.bf16.mxu1 %v8785_v57  ;;  %v8869_v57 = vld [vmem:[%s11777_s5 + $0x16c] ss:$16 sps:$4 sm:$0xff]  }
 0x464   : > { %5783 = vmatpush1.bf16.msra.mxu0 %v8780_v21  ;;  %v8864_v21 = vld [vmem:[%s11777_s5 + $0x160] ss:$16 sps:$4 sm:$0xff]  }
 0x465   : > { %6111 = vmatpush1.bf16.msra.mxu1 %v8783_v22  ;;  %5784 = vmatprep.subr.bf16.mxu0 %v8788_v25  ;;  %v8867_v22 = vld [vmem:[%s11777_s5 + $0x168] ss:$16 sps:$4 sm:$0xff]   ;;  %v8872_v25 = vld [vmem:[%s11777_s5 + $0x184] ss:$16 sps:$4 sm:$0xff]  }
 0x466   : > { %6112 = vmatprep.subr.bf16.mxu1 %v8791_v26  ;;  %v8875_v26 = vld [vmem:[%s11777_s5 + $0x18c] ss:$16 sps:$4 sm:$0xff]  }
 0x468   : > { %5785 = vmatpush1.bf16.msra.mxu0 %v8786_v27  ;;  %v8870_v27 = vld [vmem:[%s11777_s5 + $0x180] ss:$16 sps:$4 sm:$0xff]  }
 0x469   : > { %6113 = vmatpush1.bf16.msra.mxu1 %v8789_v59  ;;  %5786 = vmatprep.subr.bf16.mxu0 %v8794_v28  ;;  %v8873_v59 = vld [vmem:[%s11777_s5 + $0x188] ss:$16 sps:$4 sm:$0xff]   ;;  %v8878_v28 = vld [vmem:[%s11777_s5 + $0x1a4] ss:$16 sps:$4 sm:$0xff]  }
 0x46a   : > { %6114 = vmatprep.subr.bf16.mxu1 %v8797_v18  ;;  %v8881_v18 = vld [vmem:[%s11777_s5 + $0x1ac] ss:$16 sps:$4 sm:$0xff]  }
 0x46c   : > { %5787 = vmatpush1.bf16.msra.mxu0 %v8792_v31  ;;  %v8879_v31 = vld [vmem:[%s11777_s5 + $0x1a8] ss:$16 sps:$4 sm:$0xff]  }
 0x46d   : > { %6115 = vmatpush1.bf16.msra.mxu1 %v8795_v32  ;;  %6923 = vmatprep.subr.bf16.mxu0 %v8800_v55  ;;  %v8884_v32 = vld [vmem:[%s11777_s5 + $0x1c4] ss:$16 sps:$4 sm:$0xff]   ;;  %v8887_v55 = vld [vmem:[%s11777_s5 + $0x1cc] ss:$16 sps:$4 sm:$0xff]  }
 0x46e   : > { %7005 = vmatprep.subr.bf16.mxu1 %v8803_v63  ;;  %v8882_v63 = vld [vmem:[%s11777_s5 + $0x1c0] ss:$16 sps:$4 sm:$0xff]  }
 0x46f   : > { %5789 = vmatmul.mubr.bf16.vlgmr.msra.gmra.mrb[0].mxu0 %v2373_v17 }
 0x470   : > { %6117 = vmatmul.mubr.bf16.vlgmr.msra.gmra.mrb[0].mxu1 %v2373_v17  ;;  %6924 = vmatpush1.bf16.msra.mxu0 %v8798_v42  ;;  %v8885_v17 = vld [vmem:[%s11777_s5 + $0x1c8] ss:$16 sps:$4 sm:$0xff]   ;;  %v8890_v42 = vld [vmem:[%s11777_s5 + $0x1e4] ss:$16 sps:$4 sm:$0xff]  }
 0x471   : > { %7006 = vmatpush1.bf16.msra.mxu1 %v8801_v48  ;;  %6925 = vmatprep.subr.bf16.mxu0 %v8806_v33  ;;  %v8893_v48 = vld [vmem:[%s11777_s5 + $0x1ec] ss:$16 sps:$4 sm:$0xff]   ;;  %v8888_v33 = vld [vmem:[%s11777_s5 + $0x1e0] ss:$16 sps:$4 sm:$0xff]  }
 0x472   : > { %7007 = vmatprep.subr.bf16.mxu1 %v8809_v39  ;;  %v8891_v39 = vld [vmem:[%s11777_s5 + $0x1e8] ss:$16 sps:$4 sm:$0xff]  }
 0x474   : > { %6926 = vmatpush1.bf16.msra.mxu0 %v8804_v44  ;;  %v8896_v44 = vld [vmem:[%s11777_s5 + $0x204] ss:$16 sps:$4 sm:$0xff]  }
 0x475   : > { %7008 = vmatpush1.bf16.msra.mxu1 %v8807_v35  ;;  %6927 = vmatprep.subr.bf16.mxu0 %v8812_v36  ;;  %v8899_v35 = vld [vmem:[%s11777_s5 + $0x20c] ss:$16 sps:$4 sm:$0xff]   ;;  %v11546_v36 = vld [vmem:[%s11776_s4] sm:$0xf] }
 0x476   : > { %7009 = vmatprep.subr.bf16.mxu1 %v8815_v37  ;;  %v5452_v37 = vrot.slane %v11546_v36, %v9347_v0 }
 0x478   : > { %6928 = vmatpush1.bf16.msra.mxu0 %v8810_v16  ;;  %v5456_v16 = vrot.slane %v11546_v36, %v9356_v3 }
 0x479   : > { %7010 = vmatpush1.bf16.msra.mxu1 %v8813_v4  ;;  %6929 = vmatprep.subr.bf16.mxu0 %v8818_v52  ;;  %v5464_v4 = vrot.slane %v11546_v36, %v9946_v34 }
 0x47a   : > { %7011 = vmatprep.subr.bf16.mxu1 %v8821_v38 }
 0x47c   : > { %6930 = vmatpush1.bf16.msra.mxu0 %v8816_v41 }
 0x47d   : > { %7012 = vmatpush1.bf16.msra.mxu1 %v8819_v43  ;;  %6931 = vmatprep.subr.bf16.mxu0 %v8824_v46 }
 0x47e   : > { %7013 = vmatprep.subr.bf16.mxu1 %v8827_v49 }
 0x480   : > { %6932 = vmatpush1.bf16.msra.mxu0 %v8822_v9 }
 0x481   : > { %7014 = vmatpush1.bf16.msra.mxu1 %v8825_v50  ;;  %6933 = vmatprep.subr.bf16.mxu0 %v8830_v10 }
 0x482   : > { %7015 = vmatprep.subr.bf16.mxu1 %v8833_v53 }
 0x484   : > { %6934 = vmatpush1.bf16.msra.mxu0 %v8828_v54 }
 0x485   : > { %7016 = vmatpush1.bf16.msra.mxu1 %v8831_v6  ;;  %6935 = vmatprep.subr.bf16.mxu0 %v8836_v56 }
 0x486   : > { %7017 = vmatprep.subr.bf16.mxu1 %v8839_v7 }
 0x488   : > { %6936 = vmatpush1.bf16.msra.mxu0 %v8834_v13 }
 0x489   : > { %7018 = vmatpush1.bf16.msra.mxu1 %v8837_v23  ;;  %6937 = vmatprep.subr.bf16.mxu0 %v8842_v45  ;;  %v8894_v23 = vld [vmem:[%s11777_s5 + $0x200] ss:$16 sps:$4 sm:$0xff]   ;;  %v8897_v45 = vld [vmem:[%s11777_s5 + $0x208] ss:$16 sps:$4 sm:$0xff]  }
 0x48a   : > { %7019 = vmatprep.subr.bf16.mxu1 %v8845_v58 }
 0x48c   : > { %6938 = vmatpush1.bf16.msra.mxu0 %v8840_v60  ;;  %v8902_v60 = vld [vmem:[%s11777_s5 + $0x224] ss:$16 sps:$4 sm:$0xff]  }
 0x48d   : > { %7020 = vmatpush1.bf16.msra.mxu1 %v8843_v61  ;;  %6939 = vmatprep.subr.bf16.mxu0 %v8848_v1  ;;  %v8905_v61 = vld [vmem:[%s11777_s5 + $0x22c] ss:$16 sps:$4 sm:$0xff]  }
 0x48e   : > { %7021 = vmatprep.subr.bf16.mxu1 %v8851_v2  ;;  %v8900_v2 = vld [vmem:[%s11777_s5 + $0x220] ss:$16 sps:$4 sm:$0xff]  }
 0x490   : > { %6940 = vmatpush1.bf16.msra.mxu0 %v8846_v8  ;;  %v8903_v8 = vld [vmem:[%s11777_s5 + $0x228] ss:$16 sps:$4 sm:$0xff]  }
 0x491   : > { %7022 = vmatpush1.bf16.msra.mxu1 %v8849_v11  ;;  %6941 = vmatprep.subr.bf16.mxu0 %v8854_v51  ;;  %v8908_v11 = vld [vmem:[%s11777_s5 + $0x244] ss:$16 sps:$4 sm:$0xff]   ;;  %v8911_v51 = vld [vmem:[%s11777_s5 + $0x24c] ss:$16 sps:$4 sm:$0xff]  }
 0x492   : > { %7023 = vmatprep.subr.bf16.mxu1 %v8857_v12  ;;  %v8906_v12 = vld [vmem:[%s11777_s5 + $0x240] ss:$16 sps:$4 sm:$0xff]  }
 0x494   : > { %6942 = vmatpush1.bf16.msra.mxu0 %v8852_v47  ;;  %v8909_v47 = vld [vmem:[%s11777_s5 + $0x248] ss:$16 sps:$4 sm:$0xff]  }
 0x495   : > { %7024 = vmatpush1.bf16.msra.mxu1 %v8855_v19  ;;  %6943 = vmatprep.subr.bf16.mxu0 %v8860_v14  ;;  %v8914_v19 = vld [vmem:[%s11777_s5 + $0x264] ss:$16 sps:$4 sm:$0xff]   ;;  %v8917_v14 = vld [vmem:[%s11777_s5 + $0x26c] ss:$16 sps:$4 sm:$0xff]  }
 0x496   : > { %7025 = vmatprep.subr.bf16.mxu1 %v8863_v15  ;;  %v8912_v15 = vld [vmem:[%s11777_s5 + $0x260] ss:$16 sps:$4 sm:$0xff]  }
 0x498   : > { %6944 = vmatpush1.bf16.msra.mxu0 %v8858_v24  ;;  %v8915_v24 = vld [vmem:[%s11777_s5 + $0x268] ss:$16 sps:$4 sm:$0xff]  }
 0x499   : > { %7026 = vmatpush1.bf16.msra.mxu1 %v8861_v30  ;;  %6945 = vmatprep.subr.bf16.mxu0 %v8866_v20  ;;  %v8920_v30 = vld [vmem:[%s11777_s5 + $0x284] ss:$16 sps:$4 sm:$0xff]   ;;  %v8923_v20 = vld [vmem:[%s11777_s5 + $0x28c] ss:$16 sps:$4 sm:$0xff]  }
 0x49a   : > { %7027 = vmatprep.subr.bf16.mxu1 %v8869_v57  ;;  %v8918_v57 = vld [vmem:[%s11777_s5 + $0x280] ss:$16 sps:$4 sm:$0xff]  }
 0x49c   : > { %6946 = vmatpush1.bf16.msra.mxu0 %v8864_v21  ;;  %v8921_v21 = vld [vmem:[%s11777_s5 + $0x288] ss:$16 sps:$4 sm:$0xff]  }
 0x49d   : > { %7028 = vmatpush1.bf16.msra.mxu1 %v8867_v22  ;;  %6947 = vmatprep.subr.bf16.mxu0 %v8872_v25  ;;  %v8926_v22 = vld [vmem:[%s11777_s5 + $0x2a4] ss:$16 sps:$4 sm:$0xff]   ;;  %v8929_v25 = vld [vmem:[%s11777_s5 + $0x2ac] ss:$16 sps:$4 sm:$0xff]  }
 0x49e   : > { %7029 = vmatprep.subr.bf16.mxu1 %v8875_v26  ;;  %v8924_v26 = vld [vmem:[%s11777_s5 + $0x2a0] ss:$16 sps:$4 sm:$0xff]  }
 0x4a0   : > { %6948 = vmatpush1.bf16.msra.mxu0 %v8870_v27  ;;  %v8927_v27 = vld [vmem:[%s11777_s5 + $0x2a8] ss:$16 sps:$4 sm:$0xff]  }
 0x4a1   : > { %7030 = vmatpush1.bf16.msra.mxu1 %v8873_v59  ;;  %6949 = vmatprep.subr.bf16.mxu0 %v8878_v28  ;;  %v8932_v59 = vld [vmem:[%s11777_s5 + $0x2c4] ss:$16 sps:$4 sm:$0xff]   ;;  %v8935_v28 = vld [vmem:[%s11777_s5 + $0x2cc] ss:$16 sps:$4 sm:$0xff]  }
 0x4a2   : > { %7031 = vmatprep.subr.bf16.mxu1 %v8881_v18  ;;  %v8930_v18 = vld [vmem:[%s11777_s5 + $0x2c0] ss:$16 sps:$4 sm:$0xff]  }
 0x4a4   : > { %6950 = vmatpush1.bf16.msra.mxu0 %v8876_v29  ;;  %v8933_v29 = vld [vmem:[%s11777_s5 + $0x2c8] ss:$16 sps:$4 sm:$0xff]  }
 0x4a5   : > { %7032 = vmatpush1.bf16.msra.mxu1 %v8879_v31  ;;  %6951 = vmatprep.subr.bf16.mxu0 %v8884_v32  ;;  %v8938_v31 = vld [vmem:[%s11777_s5 + $0x2e4] ss:$16 sps:$4 sm:$0xff]   ;;  %v8941_v32 = vld [vmem:[%s11777_s5 + $0x2ec] ss:$16 sps:$4 sm:$0xff]  }
 0x4a6   : > { %7033 = vmatprep.subr.bf16.mxu1 %v8887_v55  ;;  %v8936_v55 = vld [vmem:[%s11777_s5 + $0x2e0] ss:$16 sps:$4 sm:$0xff]  }
 0x4a8   : > { %6952 = vmatpush1.bf16.msra.mxu0 %v8882_v63  ;;  %v8939_v63 = vld [vmem:[%s11777_s5 + $0x2e8] ss:$16 sps:$4 sm:$0xff]  }
 0x4a9   : > { %7034 = vmatpush1.bf16.msra.mxu1 %v8885_v17  ;;  %6953 = vmatprep.subr.bf16.mxu0 %v8890_v42  ;;  %v8944_v17 = vld [vmem:[%s11777_s5 + $0x304] ss:$16 sps:$4 sm:$0xff]   ;;  %v8947_v42 = vld [vmem:[%s11777_s5 + $0x30c] ss:$16 sps:$4 sm:$0xff]  }
 0x4aa   : > { %7035 = vmatprep.subr.bf16.mxu1 %v8893_v48  ;;  %v8942_v48 = vld [vmem:[%s11777_s5 + $0x300] ss:$16 sps:$4 sm:$0xff]  }
 0x4ac   : > { %6954 = vmatpush1.bf16.msra.mxu0 %v8888_v33  ;;  %v8945_v33 = vld [vmem:[%s11777_s5 + $0x308] ss:$16 sps:$4 sm:$0xff]  }
 0x4ad   : > { %7036 = vmatpush1.bf16.msra.mxu1 %v8891_v39  ;;  %6964 = vmatprep.subr.bf16.mxu0 %v8896_v44  ;;  %v8950_v39 = vld [vmem:[%s11777_s5 + $0x324] ss:$16 sps:$4 sm:$0xff]   ;;  %v8953_v44 = vld [vmem:[%s11777_s5 + $0x32c] ss:$16 sps:$4 sm:$0xff]  }
 0x4ae   : > { %7046 = vmatprep.subr.bf16.mxu1 %v8899_v35  ;;  %v8948_v35 = vld [vmem:[%s11777_s5 + $0x320] ss:$16 sps:$4 sm:$0xff]  }
 0x542   : > { %v5790_v52 = vpop.f32.mrb[0].mxu0 }
 0x543   : > { %v11554_v38 = vpop.f32.mrb[0].mxu1  ;;  %v7913_v41 = vadd.f32 %v5790_v52, %v5452_v37  ;;  %v5792_v43 = vpop.f32.mrb[1].mxu0  ;;  %v8951_v37 = vld [vmem:[%s11777_s5 + $0x328] ss:$16 sps:$4 sm:$0xff]   ;;  %v8954_v52 = vld [vmem:[%s11777_s5 + $0x340] ss:$16 sps:$4 sm:$0xff]  }
 0x544   : > { %v6120_v46 = vpop.f32.mrb[1].mxu1  ;;  %v7914_v49 = vadd.f32 %v5792_v43, %v5456_v16  ;;  %v5794_v50 = vpop.f32.mrb[2].mxu0  ;;  %v8956_v16 = vld [vmem:[%s11777_s5 + $0x344] ss:$16 sps:$4 sm:$0xff]  }
 0x545   : > { %v7916_v9 = vadd.f32 %v6120_v46, %v5464_v4  ;;  %v6122_v10 = vpop.f32.mrb[2].mxu1  ;;  %v6125_v53 = vmax.f32 %v7913_v41, 0.0  ;;  %v5795_v54 = vpop.f32.mrb[3].mxu0  ;;  %v8959_v4 = vld [vmem:[%s11777_s5 + $0x34c] ss:$16 sps:$4 sm:$0xff]  }
 0x546   : > { %v6123_v6 = vpop.f32.mrb[3].mxu1  ;;  %v6126_v56 = vmax.f32 %v7914_v49, 0.0  ;;  %v8957_v41 = vld [vmem:[%s11777_s5 + $0x348] ss:$16 sps:$4 sm:$0xff]   ;;  %v8962_v43 = vld [vmem:[%s11777_s5 + $0x364] ss:$16 sps:$4 sm:$0xff]  }
 0x547   : > { %v6128_v7 = vmax.f32 %v7916_v9, 0.0  ;;  %v6129_v58 = vpack.c.bf16 %v6125_v53, %v6125_v53  ;;  %v8965_v46 = vld [vmem:[%s11777_s5 + $0x36c] ss:$16 sps:$4 sm:$0xff]   ;;  %v8960_v49 = vld [vmem:[%s11777_s5 + $0x360] ss:$16 sps:$4 sm:$0xff]  }
 0x548   : > { %v6130_v13 = vpack.c.bf16 %v6126_v56, %v6126_v56  ;;  %v8963_v9 = vld [vmem:[%s11777_s5 + $0x368] ss:$16 sps:$4 sm:$0xff]   ;;  %v8968_v50 = vld [vmem:[%s11777_s5 + $0x384] ss:$16 sps:$4 sm:$0xff]   ;;  %v8971_v10 = vld [vmem:[%s11777_s5 + $0x38c] ss:$16 sps:$4 sm:$0xff]  }
 0x549   : > { %v6132_v1 = vpack.c.bf16 %v6128_v7, %v6128_v7  ;;  %v8966_v53 = vld [vmem:[%s11777_s5 + $0x380] ss:$16 sps:$4 sm:$0xff]   ;;  %v8969_v54 = vld [vmem:[%s11777_s5 + $0x388] ss:$16 sps:$4 sm:$0xff]   ;;  %v8974_v6 = vld [vmem:[%s11777_s5 + $0x3a4] ss:$16 sps:$4 sm:$0xff]  }
 0x54a   : > { %6955 = vmatprep.mubr.bf16.mxu0 %v6130_v13  ;;  %7037 = vmatprep.mubr.bf16.mxu1 %v6130_v13  ;;  %v8977_v56 = vld [vmem:[%s11777_s5 + $0x3ac] ss:$16 sps:$4 sm:$0xff]   ;;  %v8972_v7 = vld [vmem:[%s11777_s5 + $0x3a0] ss:$16 sps:$4 sm:$0xff]   ;;  %v8975_v13 = vld [vmem:[%s11777_s5 + $0x3a8] ss:$16 sps:$4 sm:$0xff]  }
 0x54b   : > { %6956 = vmatmul.mubr.bf16.vlgmr.msra.gmra.mrb[4].mxu0 %v6129_v58  ;;  %7038 = vmatmul.mubr.bf16.vlgmr.msra.gmra.mrb[4].mxu1 %v6129_v58  ;;  %v8983_v58 = vld [vmem:[%s11777_s5 + $0x3cc] ss:$16 sps:$4 sm:$0xff]  }
 0x54c   : > { %6965 = vmatpush1.bf16.msra.mxu0 %v8894_v23  ;;  %7047 = vmatpush1.bf16.msra.mxu1 %v8897_v45  ;;  %v5460_v23 = vrot.slane %v11546_v36, %v10136_v40  ;;  %v8980_v45 = vld [vmem:[%s11777_s5 + $0x3c4] ss:$16 sps:$4 sm:$0xff]   ;;  %v8981_v36 = vld [vmem:[%s11777_s5 + $0x3c8] ss:$16 sps:$4 sm:$0xff]  }
 0x54d   : > { %6996 = vmatprep.mubr.bf16.mxu0 %v6132_v1  ;;  %7078 = vmatprep.mubr.bf16.mxu1 %v6132_v1  ;;  %v8986_v1 = vld [vmem:[%s11777_s5 + $0x3e4] ss:$16 sps:$4 sm:$0xff]  }
 0x54e   : > { %6966 = vmatprep.subr.bf16.mxu0 %v8902_v60  ;;  %7048 = vmatprep.subr.bf16.mxu1 %v8905_v61  ;;  %v8978_v60 = vld [vmem:[%s11777_s5 + $0x3c0] ss:$16 sps:$4 sm:$0xff]   ;;  %v7915_v61 = vadd.f32 %v11554_v38, %v5460_v23  ;;  %v8987_v38 = vld [vmem:[%s11777_s5 + $0x3e8] ss:$16 sps:$4 sm:$0xff]  }
 0x550   : > { %6967 = vmatpush1.bf16.msra.mxu0 %v8900_v2  ;;  %7049 = vmatpush1.bf16.msra.mxu1 %v8903_v8  ;;  %v8989_v2 = vld [vmem:[%s11777_s5 + $0x3ec] ss:$16 sps:$4 sm:$0xff]   ;;  %v8984_v8 = vld [vmem:[%s11777_s5 + $0x3e0] ss:$16 sps:$4 sm:$0xff]  }
 0x551   : > { %6968 = vmatprep.subr.bf16.mxu0 %v8908_v11  ;;  %7050 = vmatprep.subr.bf16.mxu1 %v8911_v51  ;;  %v6127_v11 = vmax.f32 %v7915_v61, 0.0 }
 0x553   : > { %v6131_v51 = vpack.c.bf16 %v6127_v11, %v6127_v11 }
 0x554   : > { %6969 = vmatpush1.bf16.msra.mxu0 %v8906_v12  ;;  %7051 = vmatpush1.bf16.msra.mxu1 %v8909_v47  ;;  %v6261_v12 = vld [vmem:[%s11778_s6] sm:$0xf] }
 0x555   : > { %6970 = vmatprep.subr.bf16.mxu0 %v8914_v19  ;;  %7052 = vmatprep.subr.bf16.mxu1 %v8917_v14  ;;  %v6906_v47 = vrot.slane %v6261_v12, %v9347_v0  ;;  %v6914_v19 = vrot.slane %v6261_v12, %v10136_v40  ;;  %v6910_v14 = vrot.slane %v6261_v12, %v9356_v3 }
 0x558   : > { %6971 = vmatpush1.bf16.msra.mxu0 %v8912_v15  ;;  %7053 = vmatpush1.bf16.msra.mxu1 %v8915_v24  ;;  %v6918_v15 = vrot.slane %v6261_v12, %v9946_v34 }
 0x559   : > { %6972 = vmatprep.subr.bf16.mxu0 %v8920_v30  ;;  %7054 = vmatprep.subr.bf16.mxu1 %v8923_v20 }
 0x55c   : > { %6973 = vmatpush1.bf16.msra.mxu0 %v8918_v57  ;;  %7055 = vmatpush1.bf16.msra.mxu1 %v8921_v21 }
 0x55d   : > { %6974 = vmatprep.subr.bf16.mxu0 %v8926_v22  ;;  %7056 = vmatprep.subr.bf16.mxu1 %v8929_v25 }
 0x560   : > { %6975 = vmatpush1.bf16.msra.mxu0 %v8924_v26  ;;  %7057 = vmatpush1.bf16.msra.mxu1 %v8927_v27 }
 0x561   : > { %6976 = vmatprep.subr.bf16.mxu0 %v8932_v59  ;;  %7058 = vmatprep.subr.bf16.mxu1 %v8935_v28 }
 0x564   : > { %6977 = vmatpush1.bf16.msra.mxu0 %v8930_v18  ;;  %7059 = vmatpush1.bf16.msra.mxu1 %v8933_v29 }
 0x565   : > { %6978 = vmatprep.subr.bf16.mxu0 %v8938_v31  ;;  %7060 = vmatprep.subr.bf16.mxu1 %v8941_v32 }
 0x568   : > { %6979 = vmatpush1.bf16.msra.mxu0 %v8936_v55  ;;  %7061 = vmatpush1.bf16.msra.mxu1 %v8939_v63 }
 0x569   : > { %6980 = vmatprep.subr.bf16.mxu0 %v8944_v17  ;;  %7062 = vmatprep.subr.bf16.mxu1 %v8947_v42 }
 0x56c   : > { %6981 = vmatpush1.bf16.msra.mxu0 %v8942_v48  ;;  %7063 = vmatpush1.bf16.msra.mxu1 %v8945_v33 }
 0x56d   : > { %6982 = vmatprep.subr.bf16.mxu0 %v8950_v39  ;;  %7064 = vmatprep.subr.bf16.mxu1 %v8953_v44 }
 0x570   : > { %6983 = vmatpush1.bf16.msra.mxu0 %v8948_v35  ;;  %7065 = vmatpush1.bf16.msra.mxu1 %v8951_v37 }
 0x571   : > { %6984 = vmatprep.subr.bf16.mxu0 %v8956_v16  ;;  %7066 = vmatprep.subr.bf16.mxu1 %v8959_v4 }
 0x574   : > { %6985 = vmatpush1.bf16.msra.mxu0 %v8954_v52  ;;  %7067 = vmatpush1.bf16.msra.mxu1 %v8957_v41 }
 0x575   : > { %6986 = vmatprep.subr.bf16.mxu0 %v8962_v43  ;;  %7068 = vmatprep.subr.bf16.mxu1 %v8965_v46 }
 0x578   : > { %6987 = vmatpush1.bf16.msra.mxu0 %v8960_v49  ;;  %7069 = vmatpush1.bf16.msra.mxu1 %v8963_v9 }
 0x579   : > { %6988 = vmatprep.subr.bf16.mxu0 %v8968_v50  ;;  %7070 = vmatprep.subr.bf16.mxu1 %v8971_v10 }
 0x57c   : > { %6989 = vmatpush1.bf16.msra.mxu0 %v8966_v53  ;;  %7071 = vmatpush1.bf16.msra.mxu1 %v8969_v54 }
 0x57d   : > { %6990 = vmatprep.subr.bf16.mxu0 %v8974_v6  ;;  %7072 = vmatprep.subr.bf16.mxu1 %v8977_v56 }
 0x580   : > { %6991 = vmatpush1.bf16.msra.mxu0 %v8972_v7  ;;  %7073 = vmatpush1.bf16.msra.mxu1 %v8975_v13 }
 0x581   : > { %6992 = vmatprep.subr.bf16.mxu0 %v8980_v45  ;;  %7074 = vmatprep.subr.bf16.mxu1 %v8983_v58 }
 0x584   : > { %6993 = vmatpush1.bf16.msra.mxu0 %v8978_v60  ;;  %7075 = vmatpush1.bf16.msra.mxu1 %v8981_v36 }
 0x585   : > { %6994 = vmatprep.subr.bf16.mxu0 %v8986_v1  ;;  %7076 = vmatprep.subr.bf16.mxu1 %v8989_v2 }
 0x588   : > { %6995 = vmatpush1.bf16.msra.mxu0 %v8984_v8  ;;  %7077 = vmatpush1.bf16.msra.mxu1 %v8987_v38 }
 0x58b   : > { %6997 = vmatmul.mubr.bf16.vlgmr.msra.gmra.mrb[4].mxu0 %v6131_v51  ;;  %7079 = vmatmul.mubr.bf16.vlgmr.msra.gmra.mrb[4].mxu1 %v6131_v51 }
 0x65e   : > { %v6998_v24 = vpop.f32.mrb[4].mxu0  ;;  %v7080_v30 = vpop.f32.mrb[4].mxu1 }
 0x65f   : > { %v7917_v20 = vadd.f32 %v6998_v24, %v6906_v47  ;;  %v7919_v57 = vadd.f32 %v7080_v30, %v6914_v19  ;;  %v7000_v21 = vpop.f32.mrb[5].mxu0  ;;  %v7082_v22 = vpop.f32.mrb[5].mxu1 }
 0x660   : > { %v7918_v25 = vadd.f32 %v7000_v21, %v6910_v14  ;;  %v7920_v26 = vadd.f32 %v7082_v22, %v6918_v15  ;;  %v7002_v27 = vpop.f32.mrb[6].mxu0  ;;  %v7084_v59 = vpop.f32.mrb[6].mxu1 }
 0x661   : > { %v7003_v28 = vpop.f32.mrb[7].mxu0  ;;  %v7085_v18 = vpop.f32.mrb[7].mxu1 }
 0x662   : > { %v7091_v0 = vcombine.low %v7917_v20, %v7918_v25  ;;  %v7092_v29 = vcombine.low %v7919_v57, %v7920_v26 }
 0x664   : > { %v7099_v40 = vrot.slane %v7091_v0, %v9487_v5  ;;  %v7106_v3 = vrot.slane %v7092_v29, %v9487_v5 }
 0x666   : > { %v7107_v34 = vcombine.low %v7099_v40, %v7106_v3 }
 0x668   : > { %v7114_v31 = vrot.slane %v7107_v34, %v9487_v5 }
 0x66a   : > { %7118 = vst.msk [vmem:[%s9111_s14] sm:$0xf] %vm7116_vm4, %v7114_v31 }
 0x66b PF: > { %s17_s28 = sadd.s32 1, %s9028_s28   ;;  %s11782_s24 = smov %s9020_s26 }
 0x66c   : > { %p14_p9 = scmp.ge.s32.totalorder %s17_s28, 6   ;;  %s11783_s25 = smov %s9024_s27 }
 0x66d   : > { %s11784_s26 = smov %s11787_s29  ;;  %s11785_s27 = smov %s11791_s30 }
 0x66e   :  { %16 = sbr.rel (!%p14_p9) target bundleno = 3 (0x3), region = 86 }

</bundles_post_ra>
